<compile_context>
chip_gen: v5e
topology: v5e:2x2
jax: 0.10.0
libtpu: 0.0.40
codegen_flags: <defaults>
</compile_context>

<pallas_src>
import jax
import jax.numpy as jnp
from jax.experimental import pallas as pl
from jax.experimental.pallas import tpu as pltpu


# ----------------------------- Pallas kernel ------------------------------


def _bam_kernel(x_ref, fc1w_ref, fc1b_ref, fc2w_ref, fc2b_ref,
                wr_ref, br_ref, wd1_ref, bd1_ref, wd2_ref, bd2_ref,
                wf_ref, bf_ref, o_ref, pad_ref):
    # x_ref:   (1, H, W, C)   f32
    # fc1w:    (C, Cr)  bf16   fc1b: (1, Cr) f32   (BN folded)
    # fc2w:    (Cr, C)  bf16   fc2b: (1, C)  f32
    # wr:      (C, Cr)  bf16   br:   (1, Cr) f32   (BN folded)
    # wd1/wd2: (9*Cr, Cr) bf16 (im2col layout, BN folded)  bd1/bd2: (1, Cr) f32
    # wf:      (1, Cr)  f32    bf:   (1, 1)  f32
    # pad_ref: (H+8, W+16, Cr) f32 scratch (zero halo for the dilated convs)
    _, H, W, C = x_ref.shape
    Cr = wr_ref.shape[1]
    HW = H * W
    bf16 = jnp.bfloat16

    x = x_ref[0].reshape(HW, C)                       # f32
    xb = x.astype(bf16)

    # ---------------- channel gate ----------------
    gap = jnp.mean(x, axis=0, keepdims=True)          # (1, C) global avg pool
    h = jnp.dot(gap.astype(bf16), fc1w_ref[...],
                preferred_element_type=jnp.float32) + fc1b_ref[...]
    h = jnp.maximum(h, 0.0)                           # (1, Cr)
    c_att = jnp.dot(h.astype(bf16), fc2w_ref[...],
                    preferred_element_type=jnp.float32) + fc2b_ref[...]  # (1, C)

    # ---------------- spatial gate ----------------
    # 1x1 reduce + folded BN + relu
    t = jnp.dot(xb, wr_ref[...],
                preferred_element_type=jnp.float32) + br_ref[...]
    t = jnp.maximum(t, 0.0)                           # (HW, Cr) f32

    # Zero ONLY the halo border strips (not the whole buffer) every grid step.
    # The interior [4:4+H, 8:8+W] is fully overwritten by each conv's interior
    # write, and zeroing per-step (instead of only at program_id==0) keeps the
    # kernel correct when the batch axis is split across TensorCores.
    zdt = pad_ref.dtype
    pad_ref[0:4, :, :] = jnp.zeros((4, W + 16, Cr), zdt)
    pad_ref[4 + H:8 + H, :, :] = jnp.zeros((4, W + 16, Cr), zdt)
    pad_ref[4:4 + H, 4:8, :] = jnp.zeros((H, 4, Cr), zdt)
    pad_ref[4:4 + H, 8 + W:12 + W, :] = jnp.zeros((H, 4, Cr), zdt)

    def dilated_conv_relu(t_in, w_ref, b_ref):
        # interior write at an 8-aligned sublane (W-axis) offset
        pad_ref[4:4 + H, 8:8 + W, :] = t_in.reshape(H, W, Cr)
        # im2col: gather the 9 dilated taps (row offsets 0/4/8 are on the free
        # leading dim; column offsets 4/8/12) and pack them along the lane
        # axis.  One bf16 cast and ONE MXU push (K = 9*Cr) per conv layer.
        slabs = []
        for ky in range(3):
            for kx in range(3):
                r0 = 4 * ky
                c0 = 4 + 4 * kx
                slabs.append(pad_ref[r0:r0 + H, c0:c0 + W, :].reshape(HW, Cr))
        lhs = jnp.concatenate(slabs, axis=1).astype(bf16)       # (HW, 9*Cr)
        acc = jnp.dot(lhs, w_ref[...],
                      preferred_element_type=jnp.float32)       # (HW, Cr)
        return jnp.maximum(acc + b_ref[...], 0.0)

    t = dilated_conv_relu(t, wd1_ref, bd1_ref)
    t = dilated_conv_relu(t, wd2_ref, bd2_ref)

    # final 1x1 conv to a single channel: tiny lane reduce on the VPU/XLU
    s = jnp.sum(t * wf_ref[...], axis=1, keepdims=True) + bf_ref[...]  # (HW, 1)

    # ---------------- gate & apply ----------------
    # att = 1 + sigmoid(c_att * s); numerically stable (exp of non-positive
    # argument only), divide via approx reciprocal on the EUP slot.
    z = c_att * s                                     # (HW, C) broadcast
    e = jnp.exp(-jnp.abs(z))
    r = pl.reciprocal(1.0 + e, approx=True)
    sig = jnp.where(z >= 0.0, r, e * r)
    o_ref[0] = ((1.0 + sig) * x).reshape(H, W, C).astype(o_ref.dtype)


# ------------------------------ wrapper ------------------------------------


def _fold_linear_bn(w, b, bn_stats, eps=1e-5):
    """Fold eval-mode BN (running stats) into the preceding linear/conv."""
    gamma, beta, mean, var = bn_stats
    scale = gamma / jnp.sqrt(var + eps)
    shift = beta - mean * scale
    return w * scale, b * scale + shift    # scale broadcasts over the out-channel axis


def _ceil_to(a, b):
    return -(-a // b) * b


def _padded_vmem_bytes(shape, dtype):
    """Tile-padded VMEM footprint of one buffer ((8|16) sublanes x 128 lanes)."""
    it = jnp.dtype(dtype).itemsize
    sub = 8 * (4 // it)
    if len(shape) == 1:
        return _ceil_to(shape[0] * it, 512)
    lead = 1
    for d in shape[:-2]:
        lead *= d
    return lead * _ceil_to(shape[-2], sub) * _ceil_to(shape[-1], 128) * it


def bam_forward(x_nchw, params):
    """BAM forward. x_nchw: (N, C, H, W) float32."""
    x = jnp.transpose(x_nchw, (0, 2, 3, 1))           # NCHW -> NHWC (glue)
    N, H, W, C = x.shape
    Cr = params["fc1_w"].shape[1]
    assert Cr >= 1, "gate_channel must be >= reduction_ratio"
    bf16 = jnp.bfloat16

    # fold BN into weights/biases (eval semantics) BEFORE any reshaping
    fc1w, fc1b = _fold_linear_bn(params["fc1_w"], params["fc1_b"], params["bn_c"])
    wr, br = _fold_linear_bn(params["wr"], params["br"], params["bn_r"])
    wd1, bd1 = _fold_linear_bn(params["wd1"], params["bd1"], params["bn_d1"])
    wd2, bd2 = _fold_linear_bn(params["wd2"], params["bd2"], params["bn_d2"])
    fc2w, fc2b = params["fc2_w"], params["fc2_b"]
    wf, bias_f = params["wf"], params["bf"]

    # im2col weight layout for the dilated convs: (3,3,Cr,Cr) HWIO -> (9*Cr, Cr).
    # Row order (ky, kx, cin) matches the kernel's tap concatenation order.
    wd1 = wd1.reshape(9 * Cr, Cr).astype(bf16)
    wd2 = wd2.reshape(9 * Cr, Cr).astype(bf16)

    fc1w = fc1w.astype(bf16)
    fc1b = fc1b.reshape(1, Cr)
    fc2w = fc2w.astype(bf16)
    fc2b = fc2b.reshape(1, C)
    wr = wr.astype(bf16)
    br = br.reshape(1, Cr)
    bd1 = bd1.reshape(1, Cr)
    bd2 = bd2.reshape(1, Cr)
    wf = wf[:, 0].reshape(1, Cr)                      # f32, VPU epilogue
    bias_f = bias_f.reshape(1, 1)

    weights = (fc1w, fc1b, fc2w, fc2b, wr, br, wd1, bd1, wd2, bd2, wf, bias_f)
    weight_specs = [
        pl.BlockSpec(w.shape, lambda n, nd=w.ndim: (0,) * nd) for w in weights
    ]

    # ---- VMEM budget (tile-padded), passed as an explicit scoped limit ----
    vmem = 2 * 2 * _padded_vmem_bytes((1, H, W, C), jnp.float32)      # x in/out, dbl-buffered
    vmem += sum(2 * _padded_vmem_bytes(w.shape, w.dtype) for w in weights)
    vmem += _padded_vmem_bytes((H + 8, W + 16, Cr), jnp.float32)      # halo scratch
    vmem += 8 * _padded_vmem_bytes((H * W, max(C, 128)), jnp.float32)  # live intermediates
    vmem_limit = int(min(max(int(vmem * 1.5), 16 << 20), 100 << 20))

    # ---- advisory cost estimate for the XLA scheduler ----
    flops_per_n = (
        2 * H * W * C * Cr                 # 1x1 reduce conv
        + 2 * (2 * H * W * 9 * Cr * Cr)    # two dilated convs (im2col matmuls)
        + 2 * H * W * Cr                   # final 1x1 conv
        + 2 * (2 * C * Cr)                 # channel-gate FCs
        + 8 * H * W * C                    # gate epilogue
    )
    cost = pl.CostEstimate(
        flops=int(N * flops_per_n),
        transcendentals=int(N * H * W * C),
        bytes_accessed=int(2 * N * H * W * C * 4
                           + sum(int(w.size) * w.dtype.itemsize for w in weights)),
    )

    out = pl.pallas_call(
        _bam_kernel,
        out_shape=jax.ShapeDtypeStruct((N, H, W, C), x.dtype),
        grid=(N,),
        in_specs=[pl.BlockSpec((1, H, W, C), lambda n: (n, 0, 0, 0))] + weight_specs,
        out_specs=pl.BlockSpec((1, H, W, C), lambda n: (n, 0, 0, 0)),
        scratch_shapes=[pltpu.VMEM((H + 8, W + 16, Cr), jnp.float32)],
        compiler_params=pltpu.CompilerParams(
            dimension_semantics=("parallel",),
            vmem_limit_bytes=vmem_limit),
        cost_estimate=cost,
    )(x, *weights)

    return jnp.transpose(out, (0, 3, 1, 2))           # NHWC -> NCHW


# ------------------------- pure-JAX reference ------------------------------


def _ref_forward(x_nchw, p, eps=1e-5):
    def bn(h, stats):
        gamma, beta, mean, var = stats
        return (h - mean) / jnp.sqrt(var + eps) * gamma + beta

    # channel gate
    gap = jnp.mean(x_nchw, axis=(2, 3))                       # (N, C)
    h = gap @ p["fc1_w"] + p["fc1_b"]
    h = jax.nn.relu(bn(h, p["bn_c"]))
    c_att = h @ p["fc2_w"] + p["fc2_b"]                       # (N, C)
    c_att = c_att[:, :, None, None]

    # spatial gate (NHWC)
    x = jnp.transpose(x_nchw, (0, 2, 3, 1))

    def conv(h, w_hwio, pad, dil):
        return jax.lax.conv_general_dilated(
            h, w_hwio, window_strides=(1, 1),
            padding=[(pad, pad), (pad, pad)],
            rhs_dilation=(dil, dil),
            dimension_numbers=("NHWC", "HWIO", "NHWC"))

    t = conv(x, p["wr"][None, None], 0, 1) + p["br"]
    t = jax.nn.relu(bn(t, p["bn_r"]))
    t = conv(t, p["wd1"], 4, 4) + p["bd1"]
    t = jax.nn.relu(bn(t, p["bn_d1"]))
    t = conv(t, p["wd2"], 4, 4) + p["bd2"]
    t = jax.nn.relu(bn(t, p["bn_d2"]))
    s = conv(t, p["wf"][None, None], 0, 1) + p["bf"]          # (N, H, W, 1)
    s = jnp.transpose(s, (0, 3, 1, 2))                        # (N, 1, H, W)

    att = 1.0 + jax.nn.sigmoid(c_att * s)
    return att * x_nchw


# --------------------------------- main -------------------------------------


def _make_params(key, C, reduction_ratio=16):
    Cr = C // reduction_ratio
    ks = jax.random.split(key, 16)

    def bn_params(k, c):
        k0, k1, k2, k3 = jax.random.split(k, 4)
        gamma = 1.0 + 0.1 * jax.random.normal(k0, (c,), jnp.float32)
        beta = 0.1 * jax.random.normal(k1, (c,), jnp.float32)
        mean = 0.1 * jax.random.normal(k2, (c,), jnp.float32)
        var = jax.random.uniform(k3, (c,), jnp.float32, 0.5, 1.5)
        return (gamma, beta, mean, var)

    return {
        # weights stored matmul-friendly: (Cin, Cout) for 1x1/FC, HWIO for 3x3.
        "fc1_w": 0.2 * jax.random.normal(ks[0], (C, Cr), jnp.float32),
        "fc1_b": 0.1 * jax.random.normal(ks[1], (Cr,), jnp.float32),
        "bn_c": bn_params(ks[2], Cr),
        "fc2_w": 0.2 * jax.random.normal(ks[3], (Cr, C), jnp.float32),
        "fc2_b": 0.1 * jax.random.normal(ks[4], (C,), jnp.float32),
        "wr": 0.2 * jax.random.normal(ks[5], (C, Cr), jnp.float32),
        "br": 0.1 * jax.random.normal(ks[6], (Cr,), jnp.float32),
        "bn_r": bn_params(ks[7], Cr),
        "wd1": 0.2 * jax.random.normal(ks[8], (3, 3, Cr, Cr), jnp.float32),
        "bd1": 0.1 * jax.random.normal(ks[9], (Cr,), jnp.float32),
        "bn_d1": bn_params(ks[10], Cr),
        "wd2": 0.2 * jax.random.normal(ks[11], (3, 3, Cr, Cr), jnp.float32),
        "bd2": 0.1 * jax.random.normal(ks[12], (Cr,), jnp.float32),
        "bn_d2": bn_params(ks[13], Cr),
        "wf": 0.2 * jax.random.normal(ks[14], (Cr, 1), jnp.float32),
        "bf": 0.1 * jax.random.normal(ks[15], (1,), jnp.float32),
    }


if __name__ == "__main__":
    # gate_channel must be >= reduction_ratio (16) for a nonzero bottleneck.
    N, C, H, W = 2, 64, 16, 16

    key = jax.random.PRNGKey(0)
    kx, kp = jax.random.split(key)
    x = jax.random.normal(kx, (N, C, H, W), jnp.float32)
    params = _make_params(kp, C)

    out = jax.block_until_ready(bam_forward(x, params))
    ref = jax.block_until_ready(_ref_forward(x, params))

    assert out.shape == (N, C, H, W)
    max_err = float(jnp.max(jnp.abs(out - ref)))
    # bf16 MXU operands with f32 accumulation + approx reciprocal in the gate.
    assert jnp.allclose(out, ref, atol=2e-2, rtol=2e-2), max_err

    print("KERNEL_OK")
</pallas_src>

<mosaic_0001>
module attributes {stable_mosaic.version = 11 : i64} {
  func.func @_bam_kernel(%arg0: i32, %arg1: memref<1x16x16x64xf32, #tpu.memory_space<vmem>>, %arg2: memref<64x4xbf16, #tpu.memory_space<vmem>>, %arg3: memref<1x4xf32, #tpu.memory_space<vmem>>, %arg4: memref<4x64xbf16, #tpu.memory_space<vmem>>, %arg5: memref<1x64xf32, #tpu.memory_space<vmem>>, %arg6: memref<64x4xbf16, #tpu.memory_space<vmem>>, %arg7: memref<1x4xf32, #tpu.memory_space<vmem>>, %arg8: memref<36x4xbf16, #tpu.memory_space<vmem>>, %arg9: memref<1x4xf32, #tpu.memory_space<vmem>>, %arg10: memref<36x4xbf16, #tpu.memory_space<vmem>>, %arg11: memref<1x4xf32, #tpu.memory_space<vmem>>, %arg12: memref<1x4xf32, #tpu.memory_space<vmem>>, %arg13: memref<1x1xf32, #tpu.memory_space<vmem>>, %arg14: memref<1x16x16x64xf32, #tpu.memory_space<vmem>>, %arg15: memref<24x32x4xf32, #tpu.memory_space<vmem>>) attributes {dimension_semantics = [#tpu.dimension_semantics<parallel>], iteration_bounds = array<i64: 2>, scalar_prefetch = 0 : i64, scratch_operands = 1 : i64, tpu.core_type = #tpu.core_type<tc>, window_params = [{transform_indices = @transform_0, window_bounds = array<i64: 1, 16, 16, 64>}, {pipeline_mode = #tpu.pipeline_mode<synchronous>, transform_indices = @transform_1, window_bounds = array<i64: 64, 4>}, {pipeline_mode = #tpu.pipeline_mode<synchronous>, transform_indices = @transform_2, window_bounds = array<i64: 1, 4>}, {pipeline_mode = #tpu.pipeline_mode<synchronous>, transform_indices = @transform_3, window_bounds = array<i64: 4, 64>}, {pipeline_mode = #tpu.pipeline_mode<synchronous>, transform_indices = @transform_4, window_bounds = array<i64: 1, 64>}, {pipeline_mode = #tpu.pipeline_mode<synchronous>, transform_indices = @transform_5, window_bounds = array<i64: 64, 4>}, {pipeline_mode = #tpu.pipeline_mode<synchronous>, transform_indices = @transform_6, window_bounds = array<i64: 1, 4>}, {pipeline_mode = #tpu.pipeline_mode<synchronous>, transform_indices = @transform_7, window_bounds = array<i64: 36, 4>}, {pipeline_mode = #tpu.pipeline_mode<synchronous>, transform_indices = @transform_8, window_bounds = array<i64: 1, 4>}, {pipeline_mode = #tpu.pipeline_mode<synchronous>, transform_indices = @transform_9, window_bounds = array<i64: 36, 4>}, {pipeline_mode = #tpu.pipeline_mode<synchronous>, transform_indices = @transform_10, window_bounds = array<i64: 1, 4>}, {pipeline_mode = #tpu.pipeline_mode<synchronous>, transform_indices = @transform_11, window_bounds = array<i64: 1, 4>}, {pipeline_mode = #tpu.pipeline_mode<synchronous>, transform_indices = @transform_12, window_bounds = array<i64: 1, 1>}, {transform_indices = @transform_13, window_bounds = array<i64: 1, 16, 16, 64>}]} {
    %c0 = arith.constant 0 : index
    %c0_0 = arith.constant 0 : index
    %c0_1 = arith.constant 0 : index
    %c0_2 = arith.constant 0 : index
    %0 = vector.load %arg1[%c0, %c0_0, %c0_1, %c0_2] : memref<1x16x16x64xf32, #tpu.memory_space<vmem>>, vector<1x16x16x64xf32>
    %1 = vector.shape_cast %0 : vector<1x16x16x64xf32> to vector<16x16x64xf32>
    %2 = vector.shape_cast %1 : vector<16x16x64xf32> to vector<256x64xf32>
    %3 = arith.truncf %2 : vector<256x64xf32> to vector<256x64xbf16>
    %cst = arith.constant dense<0.000000e+00> : vector<64xf32>
    %4 = vector.multi_reduction <add>, %2, %cst [0] : vector<256x64xf32> to vector<64xf32>
    %5 = vector.shape_cast %4 : vector<64xf32> to vector<1x64xf32>
    %cst_3 = arith.constant 2.560000e+02 : f32
    %6 = vector.broadcast %cst_3 : f32 to vector<1x64xf32>
    %7 = arith.divf %5, %6 : vector<1x64xf32>
    %8 = arith.truncf %7 : vector<1x64xf32> to vector<1x64xbf16>
    %c0_4 = arith.constant 0 : index
    %c0_5 = arith.constant 0 : index
    %9 = vector.load %arg2[%c0_4, %c0_5] : memref<64x4xbf16, #tpu.memory_space<vmem>>, vector<64x4xbf16>
    %cst_6 = arith.constant dense<0.000000e+00> : vector<1x4xf32>
    %10 = tpu.matmul %8, %9, %cst_6 {dimension_numbers = #tpu.dot_dimension_numbers<[1], [0], [0], [1], [0, 0, 1, 1], [], []>} : vector<1x64xbf16>, vector<64x4xbf16>, vector<1x4xf32> -> vector<1x4xf32>
    %c0_7 = arith.constant 0 : index
    %c0_8 = arith.constant 0 : index
    %11 = vector.load %arg3[%c0_7, %c0_8] : memref<1x4xf32, #tpu.memory_space<vmem>>, vector<1x4xf32>
    %12 = arith.addf %10, %11 : vector<1x4xf32>
    %cst_9 = arith.constant 0.000000e+00 : f32
    %13 = vector.broadcast %cst_9 : f32 to vector<1x4xf32>
    %14 = arith.maximumf %12, %13 : vector<1x4xf32>
    %15 = arith.truncf %14 : vector<1x4xf32> to vector<1x4xbf16>
    %c0_10 = arith.constant 0 : index
    %c0_11 = arith.constant 0 : index
    %16 = vector.load %arg4[%c0_10, %c0_11] : memref<4x64xbf16, #tpu.memory_space<vmem>>, vector<4x64xbf16>
    %cst_12 = arith.constant dense<0.000000e+00> : vector<1x64xf32>
    %17 = tpu.matmul %15, %16, %cst_12 {dimension_numbers = #tpu.dot_dimension_numbers<[1], [0], [0], [1], [0, 0, 1, 1], [], []>} : vector<1x4xbf16>, vector<4x64xbf16>, vector<1x64xf32> -> vector<1x64xf32>
    %c0_13 = arith.constant 0 : index
    %c0_14 = arith.constant 0 : index
    %18 = vector.load %arg5[%c0_13, %c0_14] : memref<1x64xf32, #tpu.memory_space<vmem>>, vector<1x64xf32>
    %19 = arith.addf %17, %18 : vector<1x64xf32>
    %c0_15 = arith.constant 0 : index
    %c0_16 = arith.constant 0 : index
    %20 = vector.load %arg6[%c0_15, %c0_16] : memref<64x4xbf16, #tpu.memory_space<vmem>>, vector<64x4xbf16>
    %cst_17 = arith.constant dense<0.000000e+00> : vector<256x4xf32>
    %21 = tpu.matmul %3, %20, %cst_17 {dimension_numbers = #tpu.dot_dimension_numbers<[1], [0], [0], [1], [0, 0, 1, 1], [], []>} : vector<256x64xbf16>, vector<64x4xbf16>, vector<256x4xf32> -> vector<256x4xf32>
    %c0_18 = arith.constant 0 : index
    %c0_19 = arith.constant 0 : index
    %22 = vector.load %arg7[%c0_18, %c0_19] : memref<1x4xf32, #tpu.memory_space<vmem>>, vector<1x4xf32>
    %23 = vector.broadcast %22 : vector<1x4xf32> to vector<256x4xf32>
    %24 = arith.addf %21, %23 : vector<256x4xf32>
    %cst_20 = arith.constant 0.000000e+00 : f32
    %25 = vector.broadcast %cst_20 : f32 to vector<256x4xf32>
    %26 = arith.maximumf %24, %25 : vector<256x4xf32>
    %cst_21 = arith.constant 0.000000e+00 : f32
    %27 = vector.broadcast %cst_21 : f32 to vector<4x32x4xf32>
    %c0_22 = arith.constant 0 : index
    %c0_23 = arith.constant 0 : index
    %c0_24 = arith.constant 0 : index
    %28 = vector.load %arg15[%c0_22, %c0_23, %c0_24] : memref<24x32x4xf32, #tpu.memory_space<vmem>>, vector<4x32x4xf32>
    tpu.vector_store %arg15[%c0_22, %c0_23, %c0_24], %27 {strides = array<i32>} : memref<24x32x4xf32, #tpu.memory_space<vmem>>, vector<4x32x4xf32>,
    %cst_25 = arith.constant 0.000000e+00 : f32
    %29 = vector.broadcast %cst_25 : f32 to vector<4x32x4xf32>
    %c20 = arith.constant 20 : index
    %c0_26 = arith.constant 0 : index
    %c0_27 = arith.constant 0 : index
    %30 = vector.load %arg15[%c20, %c0_26, %c0_27] : memref<24x32x4xf32, #tpu.memory_space<vmem>>, vector<4x32x4xf32>
    tpu.vector_store %arg15[%c20, %c0_26, %c0_27], %29 {strides = array<i32>} : memref<24x32x4xf32, #tpu.memory_space<vmem>>, vector<4x32x4xf32>,
    %cst_28 = arith.constant 0.000000e+00 : f32
    %31 = vector.broadcast %cst_28 : f32 to vector<16x4x4xf32>
    %c4 = arith.constant 4 : index
    %c4_29 = arith.constant 4 : index
    %c0_30 = arith.constant 0 : index
    %32 = vector.load %arg15[%c4, %c4_29, %c0_30] : memref<24x32x4xf32, #tpu.memory_space<vmem>>, vector<16x4x4xf32>
    tpu.vector_store %arg15[%c4, %c4_29, %c0_30], %31 {strides = array<i32>} : memref<24x32x4xf32, #tpu.memory_space<vmem>>, vector<16x4x4xf32>,
    %cst_31 = arith.constant 0.000000e+00 : f32
    %33 = vector.broadcast %cst_31 : f32 to vector<16x4x4xf32>
    %c4_32 = arith.constant 4 : index
    %c24 = arith.constant 24 : index
    %c0_33 = arith.constant 0 : index
    %34 = vector.load %arg15[%c4_32, %c24, %c0_33] : memref<24x32x4xf32, #tpu.memory_space<vmem>>, vector<16x4x4xf32>
    tpu.vector_store %arg15[%c4_32, %c24, %c0_33], %33 {strides = array<i32>} : memref<24x32x4xf32, #tpu.memory_space<vmem>>, vector<16x4x4xf32>,
    %35 = vector.shape_cast %26 : vector<256x4xf32> to vector<16x16x4xf32>
    %c4_34 = arith.constant 4 : index
    %c8 = arith.constant 8 : index
    %c0_35 = arith.constant 0 : index
    %36 = vector.load %arg15[%c4_34, %c8, %c0_35] : memref<24x32x4xf32, #tpu.memory_space<vmem>>, vector<16x16x4xf32>
    tpu.vector_store %arg15[%c4_34, %c8, %c0_35], %35 {strides = array<i32>} : memref<24x32x4xf32, #tpu.memory_space<vmem>>, vector<16x16x4xf32>,
    %c0_36 = arith.constant 0 : index
    %c4_37 = arith.constant 4 : index
    %c0_38 = arith.constant 0 : index
    %37 = vector.load %arg15[%c0_36, %c4_37, %c0_38] : memref<24x32x4xf32, #tpu.memory_space<vmem>>, vector<16x16x4xf32>
    %38 = vector.shape_cast %37 : vector<16x16x4xf32> to vector<256x4xf32>
    %c0_39 = arith.constant 0 : index
    %c8_40 = arith.constant 8 : index
    %c0_41 = arith.constant 0 : index
    %39 = vector.load %arg15[%c0_39, %c8_40, %c0_41] : memref<24x32x4xf32, #tpu.memory_space<vmem>>, vector<16x16x4xf32>
    %40 = vector.shape_cast %39 : vector<16x16x4xf32> to vector<256x4xf32>
    %c0_42 = arith.constant 0 : index
    %c12 = arith.constant 12 : index
    %c0_43 = arith.constant 0 : index
    %41 = vector.load %arg15[%c0_42, %c12, %c0_43] : memref<24x32x4xf32, #tpu.memory_space<vmem>>, vector<16x16x4xf32>
    %42 = vector.shape_cast %41 : vector<16x16x4xf32> to vector<256x4xf32>
    %c4_44 = arith.constant 4 : index
    %c4_45 = arith.constant 4 : index
    %c0_46 = arith.constant 0 : index
    %43 = vector.load %arg15[%c4_44, %c4_45, %c0_46] : memref<24x32x4xf32, #tpu.memory_space<vmem>>, vector<16x16x4xf32>
    %44 = vector.shape_cast %43 : vector<16x16x4xf32> to vector<256x4xf32>
    %c4_47 = arith.constant 4 : index
    %c8_48 = arith.constant 8 : index
    %c0_49 = arith.constant 0 : index
    %45 = vector.load %arg15[%c4_47, %c8_48, %c0_49] : memref<24x32x4xf32, #tpu.memory_space<vmem>>, vector<16x16x4xf32>
    %46 = vector.shape_cast %45 : vector<16x16x4xf32> to vector<256x4xf32>
    %c4_50 = arith.constant 4 : index
    %c12_51 = arith.constant 12 : index
    %c0_52 = arith.constant 0 : index
    %47 = vector.load %arg15[%c4_50, %c12_51, %c0_52] : memref<24x32x4xf32, #tpu.memory_space<vmem>>, vector<16x16x4xf32>
    %48 = vector.shape_cast %47 : vector<16x16x4xf32> to vector<256x4xf32>
    %c8_53 = arith.constant 8 : index
    %c4_54 = arith.constant 4 : index
    %c0_55 = arith.constant 0 : index
    %49 = vector.load %arg15[%c8_53, %c4_54, %c0_55] : memref<24x32x4xf32, #tpu.memory_space<vmem>>, vector<16x16x4xf32>
    %50 = vector.shape_cast %49 : vector<16x16x4xf32> to vector<256x4xf32>
    %c8_56 = arith.constant 8 : index
    %c8_57 = arith.constant 8 : index
    %c0_58 = arith.constant 0 : index
    %51 = vector.load %arg15[%c8_56, %c8_57, %c0_58] : memref<24x32x4xf32, #tpu.memory_space<vmem>>, vector<16x16x4xf32>
    %52 = vector.shape_cast %51 : vector<16x16x4xf32> to vector<256x4xf32>
    %c8_59 = arith.constant 8 : index
    %c12_60 = arith.constant 12 : index
    %c0_61 = arith.constant 0 : index
    %53 = vector.load %arg15[%c8_59, %c12_60, %c0_61] : memref<24x32x4xf32, #tpu.memory_space<vmem>>, vector<16x16x4xf32>
    %54 = vector.shape_cast %53 : vector<16x16x4xf32> to vector<256x4xf32>
    %55 = tpu.concatenate %38, %40, %42, %44, %46, %48, %50, %52, %54 in 1 : vector<256x4xf32>, vector<256x4xf32>, vector<256x4xf32>, vector<256x4xf32>, vector<256x4xf32>, vector<256x4xf32>, vector<256x4xf32>, vector<256x4xf32>, vector<256x4xf32> -> vector<256x36xf32>
    %56 = arith.truncf %55 : vector<256x36xf32> to vector<256x36xbf16>
    %c0_62 = arith.constant 0 : index
    %c0_63 = arith.constant 0 : index
    %57 = vector.load %arg8[%c0_62, %c0_63] : memref<36x4xbf16, #tpu.memory_space<vmem>>, vector<36x4xbf16>
    %cst_64 = arith.constant dense<0.000000e+00> : vector<256x4xf32>
    %58 = tpu.matmul %56, %57, %cst_64 {dimension_numbers = #tpu.dot_dimension_numbers<[1], [0], [0], [1], [0, 0, 1, 1], [], []>} : vector<256x36xbf16>, vector<36x4xbf16>, vector<256x4xf32> -> vector<256x4xf32>
    %c0_65 = arith.constant 0 : index
    %c0_66 = arith.constant 0 : index
    %59 = vector.load %arg9[%c0_65, %c0_66] : memref<1x4xf32, #tpu.memory_space<vmem>>, vector<1x4xf32>
    %60 = vector.broadcast %59 : vector<1x4xf32> to vector<256x4xf32>
    %61 = arith.addf %58, %60 : vector<256x4xf32>
    %cst_67 = arith.constant 0.000000e+00 : f32
    %62 = vector.broadcast %cst_67 : f32 to vector<256x4xf32>
    %63 = arith.maximumf %61, %62 : vector<256x4xf32>
    %64 = vector.shape_cast %63 : vector<256x4xf32> to vector<16x16x4xf32>
    %c4_68 = arith.constant 4 : index
    %c8_69 = arith.constant 8 : index
    %c0_70 = arith.constant 0 : index
    %65 = vector.load %arg15[%c4_68, %c8_69, %c0_70] : memref<24x32x4xf32, #tpu.memory_space<vmem>>, vector<16x16x4xf32>
    tpu.vector_store %arg15[%c4_68, %c8_69, %c0_70], %64 {strides = array<i32>} : memref<24x32x4xf32, #tpu.memory_space<vmem>>, vector<16x16x4xf32>,
    %c0_71 = arith.constant 0 : index
    %c4_72 = arith.constant 4 : index
    %c0_73 = arith.constant 0 : index
    %66 = vector.load %arg15[%c0_71, %c4_72, %c0_73] : memref<24x32x4xf32, #tpu.memory_space<vmem>>, vector<16x16x4xf32>
    %67 = vector.shape_cast %66 : vector<16x16x4xf32> to vector<256x4xf32>
    %c0_74 = arith.constant 0 : index
    %c8_75 = arith.constant 8 : index
    %c0_76 = arith.constant 0 : index
    %68 = vector.load %arg15[%c0_74, %c8_75, %c0_76] : memref<24x32x4xf32, #tpu.memory_space<vmem>>, vector<16x16x4xf32>
    %69 = vector.shape_cast %68 : vector<16x16x4xf32> to vector<256x4xf32>
    %c0_77 = arith.constant 0 : index
    %c12_78 = arith.constant 12 : index
    %c0_79 = arith.constant 0 : index
    %70 = vector.load %arg15[%c0_77, %c12_78, %c0_79] : memref<24x32x4xf32, #tpu.memory_space<vmem>>, vector<16x16x4xf32>
    %71 = vector.shape_cast %70 : vector<16x16x4xf32> to vector<256x4xf32>
    %c4_80 = arith.constant 4 : index
    %c4_81 = arith.constant 4 : index
    %c0_82 = arith.constant 0 : index
    %72 = vector.load %arg15[%c4_80, %c4_81, %c0_82] : memref<24x32x4xf32, #tpu.memory_space<vmem>>, vector<16x16x4xf32>
    %73 = vector.shape_cast %72 : vector<16x16x4xf32> to vector<256x4xf32>
    %c4_83 = arith.constant 4 : index
    %c8_84 = arith.constant 8 : index
    %c0_85 = arith.constant 0 : index
    %74 = vector.load %arg15[%c4_83, %c8_84, %c0_85] : memref<24x32x4xf32, #tpu.memory_space<vmem>>, vector<16x16x4xf32>
    %75 = vector.shape_cast %74 : vector<16x16x4xf32> to vector<256x4xf32>
    %c4_86 = arith.constant 4 : index
    %c12_87 = arith.constant 12 : index
    %c0_88 = arith.constant 0 : index
    %76 = vector.load %arg15[%c4_86, %c12_87, %c0_88] : memref<24x32x4xf32, #tpu.memory_space<vmem>>, vector<16x16x4xf32>
    %77 = vector.shape_cast %76 : vector<16x16x4xf32> to vector<256x4xf32>
    %c8_89 = arith.constant 8 : index
    %c4_90 = arith.constant 4 : index
    %c0_91 = arith.constant 0 : index
    %78 = vector.load %arg15[%c8_89, %c4_90, %c0_91] : memref<24x32x4xf32, #tpu.memory_space<vmem>>, vector<16x16x4xf32>
    %79 = vector.shape_cast %78 : vector<16x16x4xf32> to vector<256x4xf32>
    %c8_92 = arith.constant 8 : index
    %c8_93 = arith.constant 8 : index
    %c0_94 = arith.constant 0 : index
    %80 = vector.load %arg15[%c8_92, %c8_93, %c0_94] : memref<24x32x4xf32, #tpu.memory_space<vmem>>, vector<16x16x4xf32>
    %81 = vector.shape_cast %80 : vector<16x16x4xf32> to vector<256x4xf32>
    %c8_95 = arith.constant 8 : index
    %c12_96 = arith.constant 12 : index
    %c0_97 = arith.constant 0 : index
    %82 = vector.load %arg15[%c8_95, %c12_96, %c0_97] : memref<24x32x4xf32, #tpu.memory_space<vmem>>, vector<16x16x4xf32>
    %83 = vector.shape_cast %82 : vector<16x16x4xf32> to vector<256x4xf32>
    %84 = tpu.concatenate %67, %69, %71, %73, %75, %77, %79, %81, %83 in 1 : vector<256x4xf32>, vector<256x4xf32>, vector<256x4xf32>, vector<256x4xf32>, vector<256x4xf32>, vector<256x4xf32>, vector<256x4xf32>, vector<256x4xf32>, vector<256x4xf32> -> vector<256x36xf32>
    %85 = arith.truncf %84 : vector<256x36xf32> to vector<256x36xbf16>
    %c0_98 = arith.constant 0 : index
    %c0_99 = arith.constant 0 : index
    %86 = vector.load %arg10[%c0_98, %c0_99] : memref<36x4xbf16, #tpu.memory_space<vmem>>, vector<36x4xbf16>
    %cst_100 = arith.constant dense<0.000000e+00> : vector<256x4xf32>
    %87 = tpu.matmul %85, %86, %cst_100 {dimension_numbers = #tpu.dot_dimension_numbers<[1], [0], [0], [1], [0, 0, 1, 1], [], []>} : vector<256x36xbf16>, vector<36x4xbf16>, vector<256x4xf32> -> vector<256x4xf32>
    %c0_101 = arith.constant 0 : index
    %c0_102 = arith.constant 0 : index
    %88 = vector.load %arg11[%c0_101, %c0_102] : memref<1x4xf32, #tpu.memory_space<vmem>>, vector<1x4xf32>
    %89 = vector.broadcast %88 : vector<1x4xf32> to vector<256x4xf32>
    %90 = arith.addf %87, %89 : vector<256x4xf32>
    %cst_103 = arith.constant 0.000000e+00 : f32
    %91 = vector.broadcast %cst_103 : f32 to vector<256x4xf32>
    %92 = arith.maximumf %90, %91 : vector<256x4xf32>
    %c0_104 = arith.constant 0 : index
    %c0_105 = arith.constant 0 : index
    %93 = vector.load %arg12[%c0_104, %c0_105] : memref<1x4xf32, #tpu.memory_space<vmem>>, vector<1x4xf32>
    %94 = vector.broadcast %93 : vector<1x4xf32> to vector<256x4xf32>
    %95 = arith.mulf %92, %94 : vector<256x4xf32>
    %cst_106 = arith.constant dense<0.000000e+00> : vector<256xf32>
    %96 = vector.multi_reduction <add>, %95, %cst_106 [1] : vector<256x4xf32> to vector<256xf32>
    %97 = vector.shape_cast %96 : vector<256xf32> to vector<256x1xf32>
    %c0_107 = arith.constant 0 : index
    %c0_108 = arith.constant 0 : index
    %98 = vector.load %arg13[%c0_107, %c0_108] : memref<1x1xf32, #tpu.memory_space<vmem>>, vector<1x1xf32>
    %99 = vector.broadcast %98 : vector<1x1xf32> to vector<256x1xf32>
    %100 = arith.addf %97, %99 : vector<256x1xf32>
    %101 = vector.broadcast %19 : vector<1x64xf32> to vector<256x64xf32>
    %102 = vector.broadcast %100 : vector<256x1xf32> to vector<256x64xf32>
    %103 = arith.mulf %101, %102 : vector<256x64xf32>
    %104 = math.absf %103 : vector<256x64xf32>
    %cst_109 = arith.constant 0.000000e+00 : f32
    %105 = vector.broadcast %cst_109 : f32 to vector<256x64xf32>
    %106 = arith.subf %105, %104 : vector<256x64xf32>
    %107 = math.exp %106 : vector<256x64xf32>
    %cst_110 = arith.constant 1.000000e+00 : f32
    %108 = vector.broadcast %cst_110 : f32 to vector<256x64xf32>
    %109 = arith.addf %108, %107 : vector<256x64xf32>
    %110 = tpu.reciprocal %109 {approx = true} : vector<256x64xf32> -> vector<256x64xf32>
    %cst_111 = arith.constant 0.000000e+00 : f32
    %111 = vector.broadcast %cst_111 : f32 to vector<256x64xf32>
    %112 = arith.cmpf oge, %103, %111 : vector<256x64xf32>
    %113 = arith.mulf %107, %110 : vector<256x64xf32>
    %114 = arith.select %112, %110, %113 : vector<256x64xi1>, vector<256x64xf32>
    %cst_112 = arith.constant 1.000000e+00 : f32
    %115 = vector.broadcast %cst_112 : f32 to vector<256x64xf32>
    %116 = arith.addf %115, %114 : vector<256x64xf32>
    %117 = arith.mulf %116, %2 : vector<256x64xf32>
    %118 = vector.shape_cast %117 : vector<256x64xf32> to vector<16x16x64xf32>
    %c0_113 = arith.constant 0 : index
    %c0_114 = arith.constant 0 : index
    %c0_115 = arith.constant 0 : index
    %c0_116 = arith.constant 0 : index
    %119 = vector.load %arg14[%c0_113, %c0_114, %c0_115, %c0_116] : memref<1x16x16x64xf32, #tpu.memory_space<vmem>>, vector<1x16x16x64xf32>
    %120 = vector.shape_cast %119 : vector<1x16x16x64xf32> to vector<16x16x64xf32>
    %121 = vector.shape_cast %118 : vector<16x16x64xf32> to vector<1x16x16x64xf32>
    tpu.vector_store %arg14[%c0_113, %c0_114, %c0_115, %c0_116], %121 {strides = array<i32>} : memref<1x16x16x64xf32, #tpu.memory_space<vmem>>, vector<1x16x16x64xf32>,
    return
  }
  func.func @transform_0(%arg0: i32) -> (i32, i32, i32, i32) {
    %c0_i32 = arith.constant 0 : i32
    %c0_i32_0 = arith.constant 0 : i32
    %c0_i32_1 = arith.constant 0 : i32
    %c0_i32_2 = arith.constant 0 : i32
    return %arg0, %c0_i32, %c0_i32_0, %c0_i32_1 : i32, i32, i32, i32
  }
  func.func @transform_1(%arg0: i32) -> (i32, i32) {
    %c0_i32 = arith.constant 0 : i32
    %c0_i32_0 = arith.constant 0 : i32
    %c0_i32_1 = arith.constant 0 : i32
    return %c0_i32, %c0_i32_0 : i32, i32
  }
  func.func @transform_2(%arg0: i32) -> (i32, i32) {
    %c0_i32 = arith.constant 0 : i32
    %c0_i32_0 = arith.constant 0 : i32
    %c0_i32_1 = arith.constant 0 : i32
    return %c0_i32, %c0_i32_0 : i32, i32
  }
  func.func @transform_3(%arg0: i32) -> (i32, i32) {
    %c0_i32 = arith.constant 0 : i32
    %c0_i32_0 = arith.constant 0 : i32
    %c0_i32_1 = arith.constant 0 : i32
    return %c0_i32, %c0_i32_0 : i32, i32
  }
  func.func @transform_4(%arg0: i32) -> (i32, i32) {
    %c0_i32 = arith.constant 0 : i32
    %c0_i32_0 = arith.constant 0 : i32
    %c0_i32_1 = arith.constant 0 : i32
    return %c0_i32, %c0_i32_0 : i32, i32
  }
  func.func @transform_5(%arg0: i32) -> (i32, i32) {
    %c0_i32 = arith.constant 0 : i32
    %c0_i32_0 = arith.constant 0 : i32
    %c0_i32_1 = arith.constant 0 : i32
    return %c0_i32, %c0_i32_0 : i32, i32
  }
  func.func @transform_6(%arg0: i32) -> (i32, i32) {
    %c0_i32 = arith.constant 0 : i32
    %c0_i32_0 = arith.constant 0 : i32
    %c0_i32_1 = arith.constant 0 : i32
    return %c0_i32, %c0_i32_0 : i32, i32
  }
  func.func @transform_7(%arg0: i32) -> (i32, i32) {
    %c0_i32 = arith.constant 0 : i32
    %c0_i32_0 = arith.constant 0 : i32
    %c0_i32_1 = arith.constant 0 : i32
    return %c0_i32, %c0_i32_0 : i32, i32
  }
  func.func @transform_8(%arg0: i32) -> (i32, i32) {
    %c0_i32 = arith.constant 0 : i32
    %c0_i32_0 = arith.constant 0 : i32
    %c0_i32_1 = arith.constant 0 : i32
    return %c0_i32, %c0_i32_0 : i32, i32
  }
  func.func @transform_9(%arg0: i32) -> (i32, i32) {
    %c0_i32 = arith.constant 0 : i32
    %c0_i32_0 = arith.constant 0 : i32
    %c0_i32_1 = arith.constant 0 : i32
    return %c0_i32, %c0_i32_0 : i32, i32
  }
  func.func @transform_10(%arg0: i32) -> (i32, i32) {
    %c0_i32 = arith.constant 0 : i32
    %c0_i32_0 = arith.constant 0 : i32
    %c0_i32_1 = arith.constant 0 : i32
    return %c0_i32, %c0_i32_0 : i32, i32
  }
  func.func @transform_11(%arg0: i32) -> (i32, i32) {
    %c0_i32 = arith.constant 0 : i32
    %c0_i32_0 = arith.constant 0 : i32
    %c0_i32_1 = arith.constant 0 : i32
    return %c0_i32, %c0_i32_0 : i32, i32
  }
  func.func @transform_12(%arg0: i32) -> (i32, i32) {
    %c0_i32 = arith.constant 0 : i32
    %c0_i32_0 = arith.constant 0 : i32
    %c0_i32_1 = arith.constant 0 : i32
    return %c0_i32, %c0_i32_0 : i32, i32
  }
  func.func @transform_13(%arg0: i32) -> (i32, i32, i32, i32) {
    %c0_i32 = arith.constant 0 : i32
    %c0_i32_0 = arith.constant 0 : i32
    %c0_i32_1 = arith.constant 0 : i32
    %c0_i32_2 = arith.constant 0 : i32
    return %arg0, %c0_i32, %c0_i32_0, %c0_i32_1 : i32, i32, i32, i32
  }
}

</mosaic_0001>

<bundles_post_ra>
// kernel: tpu_custom_call.1
= control target key start
LH: loop header
LB: loop body
LE: loop exit
PB: predicated region body
PF: predicated region fallthrough
CT: control target
= control target key end

     0   :  { %s10029_s0 = inlined_call_operand.hbm [shape: f32[2,16,16,64], index: 0, kind: input, shape index: {}]   ;;  %s10030_s1 = inlined_call_operand.vmem [shape: bf16[64,4], index: 1, kind: input, shape index: {}]   ;;  %s10031_s2 = inlined_call_operand.vmem [shape: f32[1,4], index: 2, kind: input, shape index: {}]   ;;  %s10032_s3 = inlined_call_operand.vmem [shape: bf16[4,64], index: 3, kind: input, shape index: {}]   ;;  %s10033_s4 = inlined_call_operand.vmem [shape: f32[1,64], index: 4, kind: input, shape index: {}]   ;;  %s10034_s5 = inlined_call_operand.vmem [shape: bf16[64,4], index: 5, kind: input, shape index: {}]   ;;  %s10035_s6 = inlined_call_operand.vmem [shape: f32[1,4], index: 6, kind: input, shape index: {}]   ;;  %s10036_s7 = inlined_call_operand.vmem [shape: bf16[36,4], index: 7, kind: input, shape index: {}]   ;;  %s10037_s8 = inlined_call_operand.vmem [shape: f32[1,4], index: 8, kind: input, shape index: {}]   ;;  %s10038_s9 = inlined_call_operand.vmem [shape: bf16[36,4], index: 9, kind: input, shape index: {}]   ;;  %s10039_s10 = inlined_call_operand.vmem [shape: f32[1,4], index: 10, kind: input, shape index: {}]   ;;  %s10040_s11 = inlined_call_operand.vmem [shape: f32[1,4], index: 11, kind: input, shape index: {}]   ;;  %s10041_s12 = inlined_call_operand.<no memory space> [shape: f32[1,1], index: 12, kind: input, shape index: {}]   ;;  %s10042_s13 = inlined_call_operand.hbm [shape: f32[2,16,16,64], index: 13, kind: output, shape index: {}]  }
   0x1   :  { %v18_v0 = vstv %s10041_s12 }
   0x2   :  { %19 = vst [vmem:[#allocation3] sm:$0x1] %v18_v0 }
   0x3   :  { %20 = vsyncpa [#allocation5], 0 }
   0x4   :  { %22 = vsyncpa [#allocation5 + $0x1], 0 }
   0x5   :  { %23 = vsyncpa [#allocation6], 0 }
   0x6   :  { %25 = vsyncpa [#allocation6 + $0x1], 0  ;;  %s7110_s27 = smov 0   ;;  %s7112_s28 = smov 0  }
   0x7   :  { %s7114_s29 = smov 0   ;;  %s7116_s30 = smov 0  }
   0x8 LB: > { %10098 = sst [smem:[#allocation10_spill]] %s7009_s27  ;;  %s7131_s12 = sadd.s32 4294967295, %s7021_s30   ;;  %s7021_s30 = sphi %s7116_s30, %s10220_s30   ;;  %s7017_s29 = sphi %s7114_s29, %s10222_s29   ;;  %s7013_s28 = sphi %s7112_s28, %s10224_s28   ;;  %s7009_s27 = sphi %s7110_s27, %s10223_s27  }
   0x9   : > { %10099 = sst [smem:[#allocation11_spill]] %s7017_s29  ;;  %s5244_s14 = sadd.s32 4294967294, %s7021_s30  }
   0xa   : > { %s7135_s15 = sadd.s32 1, %s7021_s30   ;;  %s38_s16 = sadd.s32 1, %s7017_s29 }
   0xb   : > { %10100 = sst [smem:[#allocation12_spill]] %s7135_s15  ;;  %s35_s17 = ssub.s32 %s7021_s30, %s7135_s15 }
   0xc   : > { %p45_p0 = scmp.ne.s32.totalorder %s7017_s29, %s7013_s28  ;;  %p36_p1 = scmp.eq.s32.totalorder %s35_s17, 0 }
   0xd   : > { %p46_p2 = scmp.eq.s32.totalorder %s7021_s30, 0  ;;  %p51_p3 = scmp.ne.s32.totalorder %s7013_s28, %s7009_s27 }
   0xe   : > { %p52_p4 = scmp.eq.s32.totalorder %s7131_s12, 0  ;;  %p327_p7 = scmp.eq.s32.totalorder %s7131_s12, 1 }
   0xf   : > { %s7147_s18 = scalar_select %p36_p1, %s7017_s29, %s38_s16  }
  0x10   : > { %p7149_p5 = por %p46_p2, %p45_p0  ;;  %p7153_p6 = por %p52_p4, %p51_p3 }
  0x11   : > { %10101 = sst [smem:[#allocation13_spill]] %s7147_s18  ;;  %p333_p8 = scmp.eq.s32.totalorder %s5244_s14, 1 }
  0x12   : > { %p5392_p10 = scmp.lt.s32.totalorder %s7021_s30, 2  ;;  %p7160_p11 = por %p327_p7, %p45_p0 }
  0x13   : > { %p7164_p12 = por %p333_p8, %p51_p3  ;;  %s389_s23 = sand.u32 1, %s7017_s29  }
  0x14   : > { %s10104_s21 = scalar_select %p7160_p11, 1, 0 }
  0x15   : > { %s10106_s22 = scalar_select %p7164_p12, 1, 0 }
  0x16   : > { %10105 = sst [smem:[#allocation14_spill]] %s10104_s21  ;;  %s5356_s24 = sshll.u32 %s7021_s30, 8 }
  0x17   : > { %10107 = sst [smem:[#allocation15_spill]] %s10106_s22  ;;  %s5247_s25 = sshll.u32 %s389_s23, 8 }
  0x18   : > { %s398_s17 = scalar_lea.hbm %s10029_s0, %s5356_s24  ;;  %s393_s14 = scalar_lea.vmem [#allocation4], %s5247_s25 }
  0x19   : > { %s399_s18 = sshll.u32 %s398_s17, 4  ;;  %s401_s15 = sshll.u32 %s393_s14, 4  ;;  %s400_s18 = int_to_ptr.hbm [resolvable:$true] %s399_s18  ;;  %s402_s15 = int_to_ptr.vmem [resolvable:$true] %s401_s15 }
  0x1a   : > { %p7175_p13 = pnand %p5392_p10, %p7149_p5  ;;  %p5250_p0 = scmp.ge.s32.totalorder %s7021_s30, 1 }
  0x1b   : > { %p409_p1 = scmp.lt.s32.totalorder %s7021_s30, 3  ;;  %s390_s29 = scalar_lea.sflag [#allocation5], %s389_s23 }
  0x1c   : > { %s6925_s22 = sshra.s32 %s400_s18, 4  ;;  %p6929_p3 = pneg %p7175_p13  ;;  %s6926_s22 = int_to_ptr.hbm [resolvable:$true] %s6925_s22 }
  0x1d   : > { %s6927_s21 = scalar_lea.hbm %s6926_s22, 256  ;;  %s6932_s19 = scalar_lea.hbm %s10029_s0, 512 }
  0x1e   : > { %p6928_p2 = scmp.ne.s32.totalorder %s6926_s22, %s6927_s21  ;;  %p6933_p5 = scmp.lt.s32.totalorder %s6926_s22, %s10029_s0 }
  0x1f   : > { %p6934_p8 = scmp.lt.s32.totalorder %s6932_s19, %s6927_s21 }
  0x20   : > { %p6930_p4 = pnand %p6929_p3, %p6928_p2 }
  0x21   : > { %p6935_p10 = por %p6934_p8, %p6933_p5 }
  0x22   : > { %p6931_p7 = pneg %p6930_p4 }
  0x24   : > { %p6936_p9 = pnand %p6935_p10, %p6931_p7 }
  0x26   : > { %6939 = shalt.err (!%p6936_p9)
}
  0x27   : > { %s7023_s23 = smov 128   ;;  %s7024_s17 = smov 8  }
  0x28   : > { %5387 = dma.hbm_to_vmem [thread:$0]  (!%p7175_p13), %s400_s18, 4096, %s402_s15, %s390_s29, %s7023_s23, %s7023_s23, %s7024_s17  }
  0x29   : > { %p410_p2 = pnand %p5250_p0, %p409_p1 }
  0x2b   : > { %413 = sbr.rel (%p410_p2) target bundleno = 1838 (0x72e), region = 72 }
  0x30   : > { %s7196_s14 = sand.u32 1, %s7013_s28  }
  0x31   : > { %s5251_s21 = sshll.u32 %s7196_s14, 8  ;;  %s416_s22 = scalar_lea.sflag [#allocation5], %s7196_s14 }
  0x32   : > { %s7202_s24 = scalar_lea.vmem [#allocation4], %s5251_s21 }
  0x33   : > { %7000 = dma.done.wait (%p7153_p6), %s416_s22, 4096  }
  0x34   : > { %7002 = vsyncadd (%p7153_p6), %s416_s22, 4294963200  ;;  %v7211_v1 = vld [vmem:[%s10034_s5 + $0x18] sm:$0xff]  ;;  %v7214_v2 = vld [vmem:[%s7202_s24] sm:$0xff]  ;;  %vm512_vm0 = vcmask 523264   ;;  %vm644_vm1 = vcmask 31744   ;;  %v7025_v37 = vmov 0.0  }
  0x35   : > { %v7217_v3 = vld [vmem:[%s7202_s24 + $0x8] sm:$0xff]  ;;  %5370 = vmatpush.bf16.msra.mxu2 %v7211_v1  ;;  %v7226_v5 = vld [vmem:[%s7202_s24 + $0x10] sm:$0xff]  ;;  %v7229_v6 = vld [vmem:[%s7202_s24 + $0x18] sm:$0xff]  ;;  %v513_v7 = vsel %vm512_vm0, %v7214_v2, 0.0  ;;  %871 = vst.msk [vmem:[#allocation2 + $0x8] sm:$0xff] %vm644_vm1, %v7025_v37  ;;  %s7026_s16 = smov 4  }
  0x36   : > { %v7223_v4 = vld [vmem:[%s10034_s5 + $0x10] sm:$0xff]  ;;  %v514_v8 = vsel %vm512_vm0, %v7217_v3, 0.0  ;;  %v7236_v9 = vld [vmem:[%s7202_s24 + $0x20] sm:$0xff]  ;;  %v516_v11 = vsel %vm512_vm0, %v7226_v5, 0.0  ;;  %v518_v12 = vsel %vm512_vm0, %v7229_v6, 0.0  ;;  %v471_v22 = vld [vmem:[%s7202_s24 + $0x38] sm:$0xff] }
  0x37   : > { %v515_v10 = vadd.f32 %v514_v8, %v513_v7  ;;  %v7243_v13 = vld [vmem:[%s7202_s24 + $0x28] sm:$0xff]  ;;  %v520_v16 = vsel %vm512_vm0, %v7236_v9, 0.0  ;;  %v470_v19 = vld [vmem:[%s7202_s24 + $0x30] sm:$0xff]  ;;  %v7260_v21 = vld [vmem:[%s10034_s5] sm:$0xff]  ;;  %v526_v25 = vsel %vm512_vm0, %v471_v22, 0.0  ;;  %872 = vst.msk [vmem:[#allocation2 + $0x10] sm:$0xff] %vm644_vm1, %v7025_v37 }
  0x38   : > { %v7249_v15 = vld [vmem:[%s10034_s5 + $0x8] sm:$0xff]  ;;  %v522_v18 = vsel %vm512_vm0, %v7243_v13, 0.0  ;;  %v524_v23 = vsel %vm512_vm0, %v470_v19, 0.0  ;;  %v499_v26 = vpack.c.bf16 %v471_v22, %v470_v19  ;;  %v7270_v32 = vld [vmem:[%s7202_s24 + $0x50] sm:$0xff]  ;;  %v7275_v35 = vld [vmem:[%s7202_s24 + $0x58] sm:$0xff]  ;;  %870 = vst.msk [vmem:[#allocation2] sm:$0xff] %vm644_vm1, %v7025_v37 }
  0x39   : > { %v517_v14 = vadd.f32 %v516_v11, %v515_v10  ;;  %5371 = vmatpush.bf16.msra.mxu2 %v7223_v4  ;;  %v472_v28 = vld [vmem:[%s7202_s24 + $0x40] sm:$0xff]  ;;  %v473_v31 = vld [vmem:[%s7202_s24 + $0x48] sm:$0xff]  ;;  %v532_v36 = vsel %vm512_vm0, %v7270_v32, 0.0  ;;  %v534_v40 = vsel %vm512_vm0, %v7275_v35, 0.0  ;;  %873 = vst.msk [vmem:[#allocation2 + $0x18] sm:$0xff] %vm644_vm1, %v7025_v37  ;;  %v7302_v45 = vld [vmem:[%s7202_s24 + $0x70] sm:$0xff] }
  0x3a   : > { %v528_v29 = vsel %vm512_vm0, %v472_v28, 0.0  ;;  %v530_v33 = vsel %vm512_vm0, %v473_v31, 0.0  ;;  %v7284_v39 = vld [vmem:[%s7202_s24 + $0x60] sm:$0xff]  ;;  %v7293_v42 = vld [vmem:[%s7202_s24 + $0x68] sm:$0xff]  ;;  %874 = vst.msk [vmem:[#allocation2 + $0x20] sm:$0xff] %vm644_vm1, %v7025_v37  ;;  %v7311_v49 = vld [vmem:[%s7202_s24 + $0x78] sm:$0xff]  ;;  %v500_v56 = vpack.c.bf16 %v473_v31, %v472_v28 }
  0x3b   : > { %v519_v17 = vadd.f32 %v518_v12, %v517_v14  ;;  %v536_v43 = vsel %vm512_vm0, %v7284_v39, 0.0  ;;  %875 = vst.msk [vmem:[#allocation2 + $0x28] sm:$0xff] %vm644_vm1, %v7025_v37  ;;  %v538_v46 = vsel %vm512_vm0, %v7293_v42, 0.0  ;;  %v540_v51 = vsel %vm512_vm0, %v7302_v45, 0.0  ;;  %v7322_v54 = vld [vmem:[%s7202_s24 + $0x80] sm:$0xff]  ;;  %v7333_v57 = vld [vmem:[%s7202_s24 + $0x88] sm:$0xff] }
  0x3c   : > { %876 = vst.msk [vmem:[#allocation2 + $0x30] sm:$0xff] %vm644_vm1, %v7025_v37  ;;  %v1001_v47 = vld [vmem:[#allocation2 + $0x8] sm:$0xff]  ;;  %v542_v55 = vsel %vm512_vm0, %v7311_v49, 0.0  ;;  %v544_v59 = vsel %vm512_vm0, %v7322_v54, 0.0  ;;  %v7342_v60 = vld [vmem:[%s7202_s24 + $0x90] sm:$0xff]  ;;  %v7347_v62 = vld [vmem:[%s7202_s24 + $0x98] sm:$0xff] }
  0x3d   : > { %v521_v20 = vadd.f32 %v520_v16, %v519_v17  ;;  %5372 = vmatpush.bf16.msra.mxu2 %v7249_v15  ;;  %877 = vst.msk [vmem:[#allocation2 + $0x38] sm:$0xff] %vm644_vm1, %v7025_v37  ;;  %v546_v63 = vsel %vm512_vm0, %v7333_v57, 0.0  ;;  %v5360_v8 = vld [vmem:[%s10030_s1 + $0x18] sm:$0xff]  ;;  %v548_v14 = vsel %vm512_vm0, %v7342_v60, 0.0  ;;  %v7366_v17 = vld [vmem:[%s7202_s24 + $0xa0] sm:$0xff]  ;;  %v7379_v22 = vld [vmem:[%s7202_s24 + $0xa8] sm:$0xff] }
  0x3e   : > { %v1002_v50 = vld [vmem:[#allocation2 + $0x10] sm:$0xff]  ;;  %878 = vst.msk [vmem:[#allocation2 + $0x40] sm:$0xff] %vm644_vm1, %v7025_v37  ;;  %631 = vmatpush.bf16.msra.mxu0 %v5360_v8  ;;  %v554_v31 = vsel %vm512_vm0, %v7379_v22, 0.0  ;;  %s7027_s22 = smov 8   ;;  %v7028_v8 = vmov 256.0   ;;  %s7029_s20 = smov 24  }
  0x3f   : > { %v523_v24 = vadd.f32 %v522_v18, %v521_v20  ;;  %v7317_v52 = vpack.i.bf16 %v1002_v50, %v1001_v47  ;;  %879 = vst.msk [vmem:[#allocation2 + $0x48] sm:$0xff] %vm644_vm1, %v7025_v37  ;;  %v550_v20 = vsel %vm512_vm0, %v7347_v62, 0.0  ;;  %6718 = vrcp.f32 %v7028_v8  ;;  %s7030_s26 = smov 28   ;;  %s7031_s23 = smov 32  }
  0x40   : > { %880 = vst.msk [vmem:[#allocation2 + $0x50] sm:$0xff] %vm644_vm1, %v7025_v37  ;;  %vm904_vm3 = vcmask 27648   ;;  %s7032_s29 = smov 16   ;;  %s7033_s15 = smov 20   ;;  %vm648_vm4 = vcmask 1041408   ;;  %vm2234_vm5 = vcmask 64512  }
  0x41   : > { %v525_v27 = vadd.f32 %v524_v23, %v523_v24  ;;  %5373 = vmatpush.bf16.msra.mxu2 %v7260_v21  ;;  %5441 = vrot.lane.b32.xlu0 %v7317_v52, %s7026_s16  ;;  %881 = vst.msk [vmem:[#allocation2 + $0x58] sm:$0xff] %vm644_vm1, %v7025_v37  ;;  %s7034_s18 = smov 12   ;;  %vm2267_vm6 = vcmask 97280   ;;  %vm2300_vm7 = vcmask 130048   ;;  %vm2333_vm8 = vcmask 162816   ;;  %s9744_s17 = scalar_lea.vmem [#allocation7], %s5251_s21 }
  0x42   : > { %882 = vst.msk [vmem:[#allocation2 + $0x60] sm:$0xff] %vm644_vm1, %v7025_v37  ;;  %v1003_v0 = vld [vmem:[#allocation2 + $0x28] sm:$0xff]  ;;  %vm2366_vm9 = vcmask 195584   ;;  %vm2399_vm10 = vcmask 228352   ;;  %vm2432_vm11 = vcmask 261120   ;;  %vm2505_vm12 = vcmask 293888  }
  0x43   : > { %v527_v30 = vadd.f32 %v526_v25, %v525_v27  ;;  %883 = vst.msk [vmem:[#allocation2 + $0x68] sm:$0xff] %vm644_vm1, %v7025_v37  ;;  %v1004_v7 = vld [vmem:[#allocation2 + $0x30] sm:$0xff]  ;;  %s5369_s21 = sshll.u32 %s7131_s12, 8 }
  0x44   : > { %5290 = vmatmul.msk.bf16.vlgmr.msra.gmra.mxu2 %vm512_vm0, %v499_v26  ;;  %884 = vst.msk [vmem:[#allocation2 + $0x70] sm:$0xff] %vm644_vm1, %v7025_v37  ;;  %v7359_v12 = vpack.i.bf16 %v1004_v7, %v1003_v0  ;;  %v552_v26 = vsel %vm512_vm0, %v7366_v17, 0.0  ;;  %v5359_v0 = vld [vmem:[%s10030_s1 + $0x10] sm:$0xff]  ;;  %s5167_s19 = scalar_lea.hbm %s10042_s13, %s5369_s21  ;;  %s6975_s21 = scalar_lea.hbm %s10042_s13, 512 }
  0x45   : > { %v529_v34 = vadd.f32 %v528_v29, %v527_v30  ;;  %885 = vst.msk [vmem:[#allocation2 + $0x78] sm:$0xff] %vm644_vm1, %v7025_v37  ;;  %v7390_v29 = vld [vmem:[%s7202_s24 + $0xb0] sm:$0xff]  ;;  %632 = vmatpush.bf16.msra.mxu0 %v5359_v0 }
  0x46   : > { %887 = vst.msk [vmem:[#allocation2 + $0x280] sm:$0xff] %vm644_vm1, %v7025_v37  ;;  %v1005_v11 = vld [vmem:[#allocation2 + $0x48] sm:$0xff] }
  0x47   : > { %v531_v38 = vadd.f32 %v530_v33, %v529_v34  ;;  %888 = vst.msk [vmem:[#allocation2 + $0x288] sm:$0xff] %vm644_vm1, %v7025_v37  ;;  %v1006_v16 = vld [vmem:[#allocation2 + $0x50] sm:$0xff]  ;;  %v7401_v34 = vld [vmem:[%s7202_s24 + $0xb8] sm:$0xff] }
  0x48   : > { %889 = vst.msk [vmem:[#allocation2 + $0x290] sm:$0xff] %vm644_vm1, %v7025_v37  ;;  %v7370_v19 = vpack.i.bf16 %v1006_v16, %v1005_v11  ;;  %v974_v24 = vld [vmem:[#allocation2 + $0x4c] sm:$0xff]  ;;  %v1035_v25 = vld [vmem:[#allocation2 + $0x54] sm:$0xff]  ;;  %v7461_v16 = vld [vmem:[%s7202_s24 + $0xe0] sm:$0xff] }
  0x49   : > { %v533_v41 = vadd.f32 %v532_v36, %v531_v38  ;;  %890 = vst.msk [vmem:[#allocation2 + $0x298] sm:$0xff] %vm644_vm1, %v7025_v37  ;;  %5446 = vrot.lane.b32.xlu0 %v7359_v12, %s7026_s16  ;;  %v7398_v33 = vpack.i.bf16 %v1035_v25, %v974_v24  ;;  %v972_v11 = vld [vmem:[#allocation2 + $0x2c] sm:$0xff] }
  0x4a   : > { %891 = vst.msk [vmem:[#allocation2 + $0x2a0] sm:$0xff] %vm644_vm1, %v7025_v37  ;;  %5451 = vrot.lane.b32.xlu1 %v7370_v19, %s7026_s16  ;;  %v1007_v27 = vld [vmem:[#allocation2 + $0x68] sm:$0xff] }
  0x4b   : > { %v535_v44 = vadd.f32 %v534_v40, %v533_v41  ;;  %892 = vst.msk [vmem:[#allocation2 + $0x2a8] sm:$0xff] %vm644_vm1, %v7025_v37  ;;  %v1008_v28 = vld [vmem:[#allocation2 + $0x70] sm:$0xff]  ;;  %v556_v40 = vsel %vm512_vm0, %v7390_v29, 0.0 }
  0x4c   : > { %893 = vst.msk [vmem:[#allocation2 + $0x2b0] sm:$0xff] %vm644_vm1, %v7025_v37  ;;  %v7405_v38 = vpack.i.bf16 %v1008_v28, %v1007_v27  ;;  %v976_v25 = vld [vmem:[#allocation2 + $0x6c] sm:$0xff]  ;;  %v1036_v28 = vld [vmem:[#allocation2 + $0x74] sm:$0xff] }
  0x4d   : > { %v537_v48 = vadd.f32 %v536_v43, %v535_v44  ;;  %894 = vst.msk [vmem:[#allocation2 + $0x2b8] sm:$0xff] %vm644_vm1, %v7025_v37  ;;  %v7412_v43 = vld [vmem:[%s7202_s24 + $0xc0] sm:$0xff]  ;;  %v558_v44 = vsel %vm512_vm0, %v7401_v34, 0.0 }
  0x4e   : > { %895 = vst.msk [vmem:[#allocation2 + $0x2c0] sm:$0xff] %vm644_vm1, %v7025_v37  ;;  %v560_v50 = vsel %vm512_vm0, %v7412_v43, 0.0 }
  0x4f   : > { %v539_v53 = vadd.f32 %v538_v46, %v537_v48  ;;  %896 = vst.msk [vmem:[#allocation2 + $0x2c8] sm:$0xff] %vm644_vm1, %v7025_v37  ;;  %v501_v46 = vpack.c.bf16 %v7275_v35, %v7270_v32  ;;  %v7425_v48 = vld [vmem:[%s7202_s24 + $0xc8] sm:$0xff]  ;;  %v7436_v35 = vld [vmem:[%s7202_s24 + $0xd0] sm:$0xff] }
  0x50   : > { %897 = vst.msk [vmem:[#allocation2 + $0x2d0] sm:$0xff] %vm644_vm1, %v7025_v37  ;;  %v564_v7 = vsel %vm512_vm0, %v7436_v35, 0.0 }
  0x51   : > { %v541_v58 = vadd.f32 %v540_v51, %v539_v53  ;;  %898 = vst.msk [vmem:[#allocation2 + $0x2d8] sm:$0xff] %vm644_vm1, %v7025_v37  ;;  %5471 = vrot.lane.b32.xlu0 %v7398_v33, %s7027_s22  ;;  %v7441_v51 = vld [vmem:[%s7202_s24 + $0xd8] sm:$0xff]  ;;  %v562_v53 = vsel %vm512_vm0, %v7425_v48, 0.0 }
  0x52   : > { %899 = vst.msk [vmem:[#allocation2 + $0x2e0] sm:$0xff] %vm644_vm1, %v7025_v37  ;;  %5456 = vrot.lane.b32.xlu1 %v7405_v38, %s7026_s16  ;;  %v566_v24 = vsel %vm512_vm0, %v7441_v51, 0.0 }
  0x53   : > { %v543_v61 = vadd.f32 %v542_v55, %v541_v58  ;;  %900 = vst.msk [vmem:[#allocation2 + $0x2e8] sm:$0xff] %vm644_vm1, %v7025_v37  ;;  %v970_v55 = vld [vmem:[#allocation2 + $0xc] sm:$0xff]  ;;  %v1156_v58 = vld [vmem:[#allocation2 + $0x2a4] sm:$0xff] }
  0x54   : > { %5291 = vmatmul.msk.bf16.gmra.mxu2 %vm512_vm0, %v500_v56  ;;  %901 = vst.msk [vmem:[#allocation2 + $0x2f0] sm:$0xff] %vm644_vm1, %v7025_v37  ;;  %v1033_v56 = vld [vmem:[#allocation2 + $0x14] sm:$0xff] }
  0x55   : > { %v545_v10 = vadd.f32 %v544_v59, %v543_v61  ;;  %902 = vst.msk [vmem:[#allocation2 + $0x2f8] sm:$0xff] %vm644_vm1, %v7025_v37  ;;  %v7448_v61 = vpack.i.bf16 %v1033_v56, %v970_v55  ;;  %v7492_v55 = vld [vmem:[%s7202_s24 + $0xf8] sm:$0xff] }
  0x56   : > { %924 = vst.msk [vmem:[#allocation2 + $0xf8] sm:$0xf] %vm904_vm3, %v7025_v37 }
  0x57   : > { %v547_v18 = vadd.f32 %v546_v63, %v545_v10  ;;  %v7450_v63 = vld [vmem:[#allocation2 + $0x2ac] sm:$0xff]  ;;  %905 = vst.msk [vmem:[#allocation2 + $0x84] sm:$0xf] %vm904_vm3, %v7025_v37 }
  0x58   : > { %v7458_v10 = vpack.i.bf16 %v7450_v63, %v1156_v58  ;;  %v7494_v58 = vpack.i.bf16 %v1036_v28, %v976_v25  ;;  %906 = vst.msk [vmem:[#allocation2 + $0xa4] sm:$0xf] %vm904_vm3, %v7025_v37 }
  0x59   : > { %v549_v23 = vadd.f32 %v548_v14, %v547_v18  ;;  %v1034_v14 = vld [vmem:[#allocation2 + $0x34] sm:$0xff]  ;;  %907 = vst.msk [vmem:[#allocation2 + $0xc4] sm:$0xf] %vm904_vm3, %v7025_v37 }
  0x5a   : > { %5486 = vrot.lane.b32.xlu0 %v7458_v10, %s7029_s20  ;;  %5461 = vrot.lane.b32.xlu1 %v7448_v61, %s7027_s22  ;;  %v1192_v25 = vld [vmem:[#allocation2 + $0x2e8] sm:$0xff]  ;;  %908 = vst.msk [vmem:[#allocation2 + $0xe4] sm:$0xf] %vm904_vm3, %v7025_v37 }
  0x5b   : > { %v551_v30 = vadd.f32 %v550_v20, %v549_v23  ;;  %v5358_v20 = vld [vmem:[%s10030_s1 + $0x8] sm:$0xff]  ;;  %v7466_v23 = vpack.i.bf16 %v1034_v14, %v972_v11  ;;  %v574_v11 = vsel %vm512_vm0, %v7492_v55, 0.0  ;;  %v502_v14 = vpack.c.bf16 %v7293_v42, %v7284_v39  ;;  %909 = vst.msk [vmem:[#allocation2 + $0x104] sm:$0xf] %vm904_vm3, %v7025_v37 }
  0x5c   : > { %633 = vmatpush.bf16.msra.mxu0 %v5358_v20  ;;  %v1161_v39 = vld [vmem:[#allocation2 + $0x2ec] sm:$0xff]  ;;  %910 = vst.msk [vmem:[#allocation2 + $0x124] sm:$0xf] %vm904_vm3, %v7025_v37 }
  0x5d   : > { %v553_v36 = vadd.f32 %v552_v26, %v551_v30  ;;  %v7473_v26 = vld [vmem:[%s7202_s24 + $0xe8] sm:$0xff]  ;;  %5466 = vrot.lane.b32.xlu2 %v7466_v23, %s7027_s22  ;;  %911 = vst.msk [vmem:[#allocation2 + $0x144] sm:$0xf] %vm904_vm3, %v7025_v37 }
  0x5e   : > { %v1186_v30 = vld [vmem:[#allocation2 + $0x288] sm:$0xff]  ;;  %912 = vst.msk [vmem:[#allocation2 + $0x164] sm:$0xf] %vm904_vm3, %v7025_v37 }
  0x5f   : > { %v555_v41 = vadd.f32 %v554_v31, %v553_v36  ;;  %v1187_v31 = vld [vmem:[#allocation2 + $0x290] sm:$0xff]  ;;  %v568_v36 = vsel %vm512_vm0, %v7461_v16, 0.0  ;;  %913 = vst.msk [vmem:[#allocation2 + $0x184] sm:$0xf] %vm904_vm3, %v7025_v37 }
  0x60   : > { %914 = vst.msk [vmem:[#allocation2 + $0x1a4] sm:$0xf] %vm904_vm3, %v7025_v37 }
  0x61   : > { %v557_v47 = vadd.f32 %v556_v40, %v555_v41  ;;  %v7482_v40 = vld [vmem:[%s7202_s24 + $0xf0] sm:$0xff]  ;;  %915 = vst.msk [vmem:[#allocation2 + $0x1c4] sm:$0xf] %vm904_vm3, %v7025_v37 }
  0x62   : > { %5476 = vrot.lane.b32.xlu1 %v7494_v58, %s7027_s22  ;;  %916 = vst.msk [vmem:[#allocation2 + $0x1e4] sm:$0xf] %vm904_vm3, %v7025_v37 }
  0x63   : > { %v559_v32 = vadd.f32 %v558_v44, %v557_v47  ;;  %v1154_v44 = vld [vmem:[#allocation2 + $0x284] sm:$0xff]  ;;  %v6719_v47 = vpop.eup %6718  ;;  %917 = vst.msk [vmem:[#allocation2 + $0x204] sm:$0xf] %vm904_vm3, %v7025_v37 }
  0x64   : > { %5292 = vmatmul.msk.bf16.gmra.mxu2 %vm512_vm0, %v501_v46  ;;  %v7484_v46 = vld [vmem:[#allocation2 + $0x28c] sm:$0xff]  ;;  %v583_v0 = vmul.f32 256.0, %v6719_v47  ;;  %vm587_vm2 = vweird.f32 %v6719_v47  ;;  %918 = vst.msk [vmem:[#allocation2 + $0x224] sm:$0xf] %vm904_vm3, %v7025_v37 }
  0x65   : > { %v561_v59 = vadd.f32 %v560_v50, %v559_v32  ;;  %v5357_v50 = vld [vmem:[%s10030_s1] sm:$0xff]  ;;  %v570_v32 = vsel %vm512_vm0, %v7473_v26, 0.0  ;;  %919 = vst.msk [vmem:[#allocation2 + $0x244] sm:$0xf] %vm904_vm3, %v7025_v37 }
  0x66   : > { %634 = vmatpush.bf16.msra.mxu0 %v5357_v50  ;;  %v584_v20 = vsub.f32 1.0, %v583_v0  ;;  %920 = vst.msk [vmem:[#allocation2 + $0x264] sm:$0xf] %vm904_vm3, %v7025_v37 }
  0x67   : > { %v563_v18 = vadd.f32 %v562_v53, %v561_v59  ;;  %v5500_v53 = vpack.i.bf16 %v1187_v31, %v1186_v30  ;;  %v572_v59 = vsel %vm512_vm0, %v7482_v40, 0.0  ;;  %v1159_v30 = vld [vmem:[#allocation2 + $0x2cc] sm:$0xff]  ;;  %v1160_v31 = vld [vmem:[#allocation2 + $0x2e4] sm:$0xff]  ;;  %921 = vst.msk [vmem:[#allocation2 + $0x98] sm:$0xf] %vm904_vm3, %v7025_v37 }
  0x68   : > { %922 = vst.msk [vmem:[#allocation2 + $0xb8] sm:$0xf] %vm904_vm3, %v7025_v37 }
  0x69   : > { %v565_v27 = vadd.f32 %v564_v7, %v563_v18  ;;  %v7499_v7 = vpack.i.bf16 %v7484_v46, %v1154_v44  ;;  %5501 = vrot.lane.b32.xlu0 %v5500_v53, %s7030_s26  ;;  %v7513_v44 = vpack.i.bf16 %v1161_v39, %v1160_v31  ;;  %923 = vst.msk [vmem:[#allocation2 + $0xd8] sm:$0xf] %vm904_vm3, %v7025_v37 }
  0x6a   : > { %753 = vmatpush.bf16.msrb.mxu0 %v7211_v1  ;;  %v585_v1 = vmul.f32 %v6719_v47, %v584_v20  ;;  %925 = vst.msk [vmem:[#allocation2 + $0x118] sm:$0xf] %vm904_vm3, %v7025_v37 }
  0x6b   : > { %v567_v41 = vadd.f32 %v566_v24, %v565_v27  ;;  %5481 = vrot.lane.b32.xlu2 %v7499_v7, %s7029_s20  ;;  %v1158_v24 = vld [vmem:[#allocation2 + $0x2c4] sm:$0xff]  ;;  %v1193_v27 = vld [vmem:[#allocation2 + $0x2f0] sm:$0xff]  ;;  %926 = vst.msk [vmem:[#allocation2 + $0x138] sm:$0xf] %vm904_vm3, %v7025_v37 }
  0x6c   : > { %v586_v53 = vadd.f32 %v6719_v47, %v585_v1  ;;  %v504_v1 = vpack.c.bf16 %v7333_v57, %v7322_v54  ;;  %927 = vst.msk [vmem:[#allocation2 + $0x158] sm:$0xf] %vm904_vm3, %v7025_v37  ;;  %v498_v54 = vpack.c.bf16 %v7243_v13, %v7236_v9 }
  0x6d   : > { %v569_v56 = vadd.f32 %v568_v36, %v567_v41  ;;  %v5515_v36 = vpack.i.bf16 %v1193_v27, %v1192_v25  ;;  %v5490_v41 = vpack.i.bf16 %v1159_v30, %v1158_v24  ;;  %v503_v27 = vpack.c.bf16 %v7311_v49, %v7302_v45  ;;  %v1209_v45 = vld [vmem:[#allocation2 + $0x2f4] sm:$0xff]  ;;  %928 = vst.msk [vmem:[#allocation2 + $0x178] sm:$0xf] %vm904_vm3, %v7025_v37 }
  0x6e   : > { %754 = vmatpush.bf16.msrb.mxu0 %v7223_v4  ;;  %v1189_v4 = vld [vmem:[#allocation2 + $0x2b0] sm:$0xff]  ;;  %v588_v20 = vsel %vm587_vm2, %v6719_v47, %v586_v53  ;;  %v5535_v49 = vpack.i.bf16 %v1209_v45, %v1161_v39  ;;  %929 = vst.msk [vmem:[#allocation2 + $0x198] sm:$0xf] %vm904_vm3, %v7025_v37 }
  0x6f   : > { %v571_v8 = vadd.f32 %v570_v32, %v569_v56  ;;  %5491 = vrot.lane.b32.xlu1 %v5490_v41, %s7029_s20  ;;  %v1188_v56 = vld [vmem:[#allocation2 + $0x2a8] sm:$0xff]  ;;  %930 = vst.msk [vmem:[#allocation2 + $0x1b8] sm:$0xf] %vm904_vm3, %v7025_v37 }
  0x70   : > { %v5505_v24 = vpack.i.bf16 %v1189_v4, %v1188_v56  ;;  %931 = vst.msk [vmem:[#allocation2 + $0x1d8] sm:$0xf] %vm904_vm3, %v7025_v37 }
  0x71   : > { %v573_v18 = vadd.f32 %v572_v59, %v571_v8  ;;  %5516 = vrot.lane.b32.xlu0 %v5515_v36, %s7030_s26  ;;  %v1208_v59 = vld [vmem:[#allocation2 + $0x2d4] sm:$0xff]  ;;  %v1190_v8 = vld [vmem:[#allocation2 + $0x2c8] sm:$0xff]  ;;  %v496_v36 = vpack.c.bf16 %v7217_v3, %v7214_v2  ;;  %v497_v2 = vpack.c.bf16 %v7229_v6, %v7226_v5  ;;  %v505_v3 = vpack.c.bf16 %v7347_v62, %v7342_v60  ;;  %v7619_v5 = vld [vmem:[%s10035_s6] ss:$0 sm:$0xff] }
  0x72   : > { %755 = vmatpush.bf16.msrb.mxu0 %v7249_v15  ;;  %932 = vst.msk [vmem:[#allocation2 + $0x1f8] sm:$0xf] %vm904_vm3, %v7025_v37 }
  0x73   : > { %v575_v28 = vadd.f32 %v574_v11, %v573_v18  ;;  %5496 = vrot.lane.b32.xlu2 %v7513_v44, %s7029_s20  ;;  %v1191_v11 = vld [vmem:[#allocation2 + $0x2d0] sm:$0xff]  ;;  %v5530_v18 = vpack.i.bf16 %v1208_v59, %v1159_v30  ;;  %933 = vst.msk [vmem:[#allocation2 + $0x218] sm:$0xf] %vm904_vm3, %v7025_v37 }
  0x74   : > { %5293 = vmatmul.msk.bf16.gmra.mxu2 %vm512_vm0, %v502_v14  ;;  %v5510_v15 = vpack.i.bf16 %v1191_v11, %v1190_v8  ;;  %v1207_v30 = vld [vmem:[#allocation2 + $0x2b4] sm:$0xff]  ;;  %934 = vst.msk [vmem:[#allocation2 + $0x238] sm:$0xf] %vm904_vm3, %v7025_v37 }
  0x75   : > { %v576_v42 = vrot.slane %v575_v28, 4  ;;  %v5525_v47 = vpack.i.bf16 %v1207_v30, %v7450_v63  ;;  %935 = vst.msk [vmem:[#allocation2 + $0x258] sm:$0xf] %vm904_vm3, %v7025_v37 }
  0x76   : > { %756 = vmatpush.bf16.msrb.mxu0 %v7260_v21  ;;  %936 = vst.msk [vmem:[#allocation2 + $0x278] sm:$0xf] %vm904_vm3, %v7025_v37 }
  0x77   : > { %v577_v50 = vadd.f32 %v576_v42, %v575_v28  ;;  %5506 = vrot.lane.b32.xlu1 %v5505_v24, %s7030_s26  ;;  %v1206_v42 = vld [vmem:[#allocation2 + $0x294] sm:$0xff] }
  0x78   : > { %v5520_v21 = vpack.i.bf16 %v1206_v42, %v7484_v46 }
  0x79   : > { %v578_v32 = vrot.slane %v577_v50, 2  ;;  %5531 = vrot.lane.b32.xlu0 %v5530_v18, %s7031_s23 }
  0x7b   : > { %v579_v0 = vadd.f32 %v578_v32, %v577_v50  ;;  %5511 = vrot.lane.b32.xlu2 %v5510_v15, %s7030_s26 }
  0x7d   : > { %v580_v14 = vrot.slane %v579_v0, 1 }
  0x7f   : > { %v581_v25 = vadd.f32 %v580_v14, %v579_v0  ;;  %5521 = vrot.lane.b32.xlu1 %v5520_v21, %s7031_s23  ;;  %v642_v21 = vld [vmem:[%s10032_s3] sm:$0x3] }
  0x81   : > { %v589_v28 = vmul.f32 %v588_v20, %v581_v25  ;;  %5546 = vrot.lane.b32.xlu0 %v7359_v12, %s7026_s16 }
  0x83   : > { %v590_v31 = vpack.c.bf16 %v589_v28, %v589_v28  ;;  %5526 = vrot.lane.b32.xlu2 %v5525_v47, %s7031_s23  ;;  %v508_v47 = vpack.c.bf16 %v7425_v48, %v7412_v43 }
  0x84   : > { %5294 = vmatmul.msk.bf16.gmra.mxu2 %vm512_vm0, %v503_v27 }
  0x85   : > { %5269 = vmatmul.msk.bf16.vlgmr.msra.gmra.mxu0 %vm512_vm0, %v590_v31 }
  0x87   : > { %5536 = vrot.lane.b32.xlu1 %v5535_v49, %s7031_s23  ;;  %v650_v49 = vsel %vm648_vm4, %v642_v21, 0 }
  0x88   : > { %659 = vmatpush.bf16.msra.mxu1 %v650_v49 }
  0x89   : > { %5561 = vrot.lane.b32.xlu0 %v7448_v61, %s7027_s22 }
  0x8b   : > { %5541 = vrot.lane.b32.xlu2 %v7317_v52, %s7026_s16 }
  0x8f   : > { %5551 = vrot.lane.b32.xlu1 %v7370_v19, %s7026_s16  ;;  %v506_v19 = vpack.c.bf16 %v7379_v22, %v7366_v17 }
  0x91   : > { %5576 = vrot.lane.b32.xlu0 %v7494_v58, %s7027_s22 }
  0x93   : > { %5556 = vrot.lane.b32.xlu2 %v7405_v38, %s7026_s16 }
  0x94   : > { %5295 = vmatmul.msk.bf16.gmra.mxu2 %vm512_vm0, %v504_v1 }
  0x95   : > { %5287 = vmatmul.msk.bf16.vlgmr.msrb.gmra.mxu0 %vm512_vm0, %v496_v36 }
  0x97   : > { %5566 = vrot.lane.b32.xlu1 %v7466_v23, %s7027_s22 }
  0x99   : > { %5591 = vrot.lane.b32.xlu0 %v5490_v41, %s7029_s20 }
  0x9b   : > { %5571 = vrot.lane.b32.xlu2 %v7398_v33, %s7027_s22 }
  0x9f   : > { %5581 = vrot.lane.b32.xlu1 %v7499_v7, %s7029_s20  ;;  %v507_v7 = vpack.c.bf16 %v7401_v34, %v7390_v29 }
  0xa3   : > { %5586 = vrot.lane.b32.xlu2 %v7458_v10, %s7029_s20 }
  0xa4   : > { %5296 = vmatmul.msk.bf16.gmra.mxu2 %vm512_vm0, %v505_v3 }
  0xa5   : > { %5288 = vmatmul.msk.bf16.gmra.mxu0 %vm512_vm0, %v497_v2 }
  0xa7   : > { %5596 = vrot.lane.b32.xlu1 %v7513_v44, %s7029_s20 }
  0xb3   : > { %v7668_v59 = vpop.permute.xlu0 %5441 }
  0xb4   : > { %5297 = vmatmul.msk.bf16.gmra.mxu2 %vm512_vm0, %v506_v19 }
  0xb5   : > { %5289 = vmatmul.msk.bf16.gmra.mxu0 %vm512_vm0, %v498_v54 }
  0xb7   : > { %v7653_v17 = vpop.permute.xlu2 %5466 }
  0xbb   : > { %v7680_v31 = vpop.permute.xlu0 %5446 }
  0xbc   : > { %v7648_v33 = vpop.permute.xlu1 %5451 }
  0xc3   : > { %v7700_v43 = vpop.permute.xlu0 %5471 }
  0xc4   : > { %v7659_v41 = vpop.permute.xlu1 %5456  ;;  %5298 = vmatmul.msk.bf16.gmra.mxu2 %vm512_vm0, %v507_v7 }
  0xc5   : > { %v7666_v56 = vpop.permute.xlu2 %5481 }
  0xc6   : > { %10109 = vst [vmem:[#allocation16_spill] sm:$0xff] %v7666_v56 }
  0xc7   : > { %v773_v6 = vpop.f32.mrf.mxu2 }
  0xc8   : > { %v774_v52 = vadd.f32 %v7619_v5, %v773_v6 }
  0xca   : > { %v844_v57 = vmax.f32 %v774_v52, 0.0  ;;  %v599_v52 = vld [vmem:[%s10031_s2] sm:$0x1] }
  0xcc   : > { %943 = vst.msk [vmem:[#allocation2 + $0xe8] sm:$0xff] %vm644_vm1, %v844_v57  ;;  %v7671_v18 = vpop.permute.xlu1 %5461 }
  0xcd   : > { %v7677_v25 = vpop.permute.xlu2 %5496 }
  0xce   : > { %10110 = vst [vmem:[#allocation17_spill] sm:$0xff] %v7677_v25 }
  0xcf   : > { %v775_v60 = vpop.f32.mrf.mxu2 }
  0xd0   : > { %v776_v62 = vadd.f32 %v7619_v5, %v775_v60 }
  0xd2   : > { %v845_v12 = vmax.f32 %v776_v62, 0.0 }
  0xd3   : > { %v1087_v38 = vld [vmem:[#allocation2 + $0xe8] sm:$0xff] }
  0xd4   : > { %944 = vst.msk [vmem:[#allocation2 + $0xf0] sm:$0xff] %vm644_vm1, %v845_v12  ;;  %v1055_v44 = vld [vmem:[#allocation2 + $0xe4] sm:$0xff]  ;;  %v7684_v42 = vpop.permute.xlu1 %5476  ;;  %5299 = vmatmul.msk.bf16.gmra.mxu2 %vm512_vm0, %v508_v47 }
  0xd5   : > { %v7696_v6 = vpop.permute.xlu2 %5511 }
  0xd6   : > { %10111 = vst [vmem:[#allocation18_spill] sm:$0xff] %v7696_v6 }
  0xd7   : > { %v778_v9 = vpop.f32.mrf.mxu2 }
  0xd8   : > { %v779_v13 = vadd.f32 %v7619_v5, %v778_v9 }
  0xda   : > { %v846_v37 = vmax.f32 %v779_v13, 0.0 }
  0xdb   : > { %v1088_v61 = vld [vmem:[#allocation2 + $0xf0] sm:$0xff] }
  0xdc   : > { %v984_v63 = vld [vmem:[#allocation2 + $0xec] sm:$0xff]  ;;  %v1040_v10 = vld [vmem:[#allocation2 + $0xf4] sm:$0xff]  ;;  %945 = vst.msk [vmem:[#allocation2 + $0x108] sm:$0xff] %vm644_vm1, %v846_v37  ;;  %v5615_v23 = vpack.i.bf16 %v1088_v61, %v1087_v38 }
  0xdd   : > { %v5605_v46 = vpack.i.bf16 %v1040_v10, %v984_v63  ;;  %v5610_v50 = vpack.i.bf16 %v984_v63, %v1055_v44  ;;  %v7712_v63 = vpop.permute.xlu2 %5526 }
  0xde   : > { %5616 = vrot.lane.b32.xlu0 %v5615_v23, %s7032_s29  ;;  %5601 = vrot.lane.b32.xlu1 %v5615_v23, %s7026_s16  ;;  %10113 = vst [vmem:[#allocation20_spill] sm:$0xff] %v7712_v63 }
  0xdf   : > { %5606 = vrot.lane.b32.xlu2 %v5605_v46, %s7027_s22  ;;  %v780_v22 = vpop.f32.mrf.mxu2 }
  0xe0   : > { %v781_v58 = vadd.f32 %v7619_v5, %v780_v22 }
  0xe1   : > { %v7707_v57 = vpop.permute.xlu1 %5491 }
  0xe2   : > { %v847_v39 = vmax.f32 %v781_v58, 0.0  ;;  %10112 = vst [vmem:[#allocation19_spill] sm:$0xff] %v7707_v57  ;;  %v7719_v58 = vpop.permute.xlu0 %5486 }
  0xe3   : > { %v1089_v34 = vld [vmem:[#allocation2 + $0x108] sm:$0xff]  ;;  %10114 = vst [vmem:[#allocation21_spill] sm:$0xff] %v7719_v58 }
  0xe4   : > { %946 = vst.msk [vmem:[#allocation2 + $0x110] sm:$0xff] %vm644_vm1, %v847_v39  ;;  %v1057_v27 = vld [vmem:[#allocation2 + $0x104] sm:$0xff] }
  0xe6   : > { %5621 = vrot.lane.b32.xlu1 %v5605_v46, %s7033_s15  ;;  %v509_v46 = vpack.c.bf16 %v7441_v51, %v7436_v35 }
  0xe7   : > { %5611 = vrot.lane.b32.xlu2 %v5610_v50, %s7034_s18  ;;  %v783_v32 = vpop.f32.mrf.mxu2 }
  0xe8   : > { %v784_v53 = vadd.f32 %v7619_v5, %v783_v32  ;;  %5300 = vmatmul.msk.bf16.gmra.mxu2 %vm512_vm0, %v509_v46 }
  0xe9   : > { %v7722_v44 = vpop.permute.xlu1 %5506 }
  0xea   : > { %v848_v29 = vmax.f32 %v784_v53, 0.0  ;;  %10115 = vst [vmem:[#allocation22_spill] sm:$0xff] %v7722_v44 }
  0xeb   : > { %v986_v0 = vld [vmem:[#allocation2 + $0x10c] sm:$0xff]  ;;  %v1041_v4 = vld [vmem:[#allocation2 + $0x114] sm:$0xff] }
  0xec   : > { %v1090_v8 = vld [vmem:[#allocation2 + $0x110] sm:$0xff]  ;;  %947 = vst.msk [vmem:[#allocation2 + $0x128] sm:$0xff] %vm644_vm1, %v848_v29  ;;  %v5630_v11 = vpack.i.bf16 %v1041_v4, %v986_v0  ;;  %v5635_v28 = vpack.i.bf16 %v986_v0, %v1057_v27 }
  0xed   : > { %v5640_v14 = vpack.i.bf16 %v1090_v8, %v1089_v34  ;;  %v7729_v34 = vpop.permute.xlu2 %5541 }
  0xee   : > { %5631 = vrot.lane.b32.xlu0 %v5630_v11, %s7027_s22  ;;  %10116 = vst [vmem:[#allocation23_spill] sm:$0xff] %v7729_v34 }
  0xef   : > { %5641 = vrot.lane.b32.xlu1 %v5640_v14, %s7032_s29  ;;  %5626 = vrot.lane.b32.xlu2 %v5640_v14, %s7026_s16  ;;  %v785_v20 = vpop.f32.mrf.mxu2 }
  0xf0   : > { %v786_v24 = vadd.f32 %v7619_v5, %v785_v20 }
  0xf2   : > { %v849_v15 = vmax.f32 %v786_v24, 0.0  ;;  %v7735_v24 = vpop.permute.xlu1 %5521 }
  0xf3   : > { %v1019_v60 = vld [vmem:[#allocation2 + $0x128] sm:$0xff]  ;;  %10118 = vst [vmem:[#allocation25_spill] sm:$0xff] %v7735_v24 }
  0xf4   : > { %948 = vst.msk [vmem:[#allocation2 + $0x130] sm:$0xff] %vm644_vm1, %v849_v15  ;;  %v1059_v12 = vld [vmem:[#allocation2 + $0x124] sm:$0xff] }
  0xf5   : > { %v7742_v47 = vpop.permute.xlu2 %5556 }
  0xf6   : > { %5636 = vrot.lane.b32.xlu0 %v5635_v28, %s7034_s18  ;;  %10119 = vst [vmem:[#allocation26_spill] sm:$0xff] %v7742_v47 }
  0xf7   : > { %5661 = vrot.lane.b32.xlu1 %v5630_v11, %s7031_s23  ;;  %5646 = vrot.lane.b32.xlu2 %v5630_v11, %s7033_s15  ;;  %v788_v30 = vpop.f32.mrf.mxu2 }
  0xf8   : > { %v789_v45 = vadd.f32 %v7619_v5, %v788_v30 }
  0xfa   : > { %v850_v36 = vmax.f32 %v789_v45, 0.0 }
  0xfb   : > { %v988_v1 = vld [vmem:[#allocation2 + $0x12c] sm:$0xff]  ;;  %v1042_v2 = vld [vmem:[#allocation2 + $0x134] sm:$0xff] }
  0xfc   : > { %v5670_v3 = vpack.i.bf16 %v1042_v2, %v988_v1  ;;  %949 = vst.msk [vmem:[#allocation2 + $0x148] sm:$0xff] %vm644_vm1, %v850_v36  ;;  %v1020_v62 = vld [vmem:[#allocation2 + $0x130] sm:$0xff]  ;;  %v5675_v38 = vpack.i.bf16 %v988_v1, %v1059_v12  ;;  %v510_v36 = vpack.c.bf16 %v7473_v26, %v7461_v16 }
  0xfd   : > { %v5665_v37 = vpack.i.bf16 %v1020_v62, %v1019_v60 }
  0xfe   : > { %5656 = vrot.lane.b32.xlu0 %v5640_v14, %s7030_s26  ;;  %v7732_v14 = vpop.permute.xlu0 %5501  ;;  %5301 = vmatmul.msk.bf16.gmra.mxu2 %vm512_vm0, %v510_v36 }
  0xff   : > { %5671 = vrot.lane.b32.xlu1 %v5670_v3, %s7027_s22  ;;  %5651 = vrot.lane.b32.xlu2 %v5635_v28, %s7029_s20  ;;  %v790_v48 = vpop.f32.mrf.mxu2  ;;  %10117 = vst [vmem:[#allocation24_spill] sm:$0xff] %v7732_v14  ;;  %v975_v14 = vld [vmem:[#allocation2 + $0x64] sm:$0xff] }
 0x100   : > { %v791_v54 = vadd.f32 %v7619_v5, %v790_v48  ;;  %v7753_v48 = vpop.permute.xlu1 %5536 }
 0x101   : > { %10121 = vst [vmem:[#allocation28_spill] sm:$0xff] %v7753_v48 }
 0x102   : > { %v636_v19 = vpop.f32.mrf.mxu0  ;;  %v851_v9 = vmax.f32 %v791_v54, 0.0  ;;  %v7758_v54 = vpop.permute.xlu2 %5571 }
 0x103   : > { %v637_v13 = vadd.f32 %v636_v19, %v599_v52  ;;  %v1021_v35 = vld [vmem:[#allocation2 + $0x148] sm:$0xff]  ;;  %10122 = vst [vmem:[#allocation29_spill] sm:$0xff] %v7758_v54 }
 0x104   : > { %950 = vst.msk [vmem:[#allocation2 + $0x150] sm:$0xff] %vm644_vm1, %v851_v9  ;;  %v1061_v21 = vld [vmem:[#allocation2 + $0x144] sm:$0xff] }
 0x105   : > { %v640_v61 = vmax.f32 %v637_v13, 0.0 }
 0x106   : > { %5666 = vrot.lane.b32.xlu0 %v5665_v37, %s7026_s16  ;;  %v7749_v2 = vpop.permute.xlu0 %5516 }
 0x107   : > { %5676 = vrot.lane.b32.xlu1 %v5675_v38, %s7034_s18  ;;  %v641_v10 = vpack.c.bf16 %v640_v61, %v640_v61  ;;  %5681 = vrot.lane.b32.xlu2 %v5665_v37, %s7032_s29  ;;  %v793_v23 = vpop.f32.mrf.mxu2  ;;  %10120 = vst [vmem:[#allocation27_spill] sm:$0xff] %v7749_v2 }
 0x108   : > { %v794_v22 = vadd.f32 %v7619_v5, %v793_v23  ;;  %v7766_v19 = vpop.permute.xlu1 %5551 }
 0x109   : > { %5270 = vmatmul.msk.bf16.vlgmr.msra.gmra.mxu1 %vm644_vm1, %v641_v10  ;;  %10124 = vst [vmem:[#allocation31_spill] sm:$0xff] %v7766_v19  ;;  %v511_v10 = vpack.c.bf16 %v7492_v55, %v7482_v40 }
 0x10a   : > { %v638_v7 = vpop.f32.mrf.mxu0  ;;  %v852_v39 = vmax.f32 %v794_v22, 0.0  ;;  %v7775_v22 = vpop.permute.xlu2 %5586 }
 0x10b   : > { %v1022_v51 = vld [vmem:[#allocation2 + $0x150] sm:$0xff]  ;;  %10125 = vst [vmem:[#allocation32_spill] sm:$0xff] %v7775_v22 }
 0x10c   : > { %951 = vst.msk [vmem:[#allocation2 + $0x168] sm:$0xff] %vm644_vm1, %v852_v39  ;;  %v990_v32 = vld [vmem:[#allocation2 + $0x14c] sm:$0xff]  ;;  %v1043_v53 = vld [vmem:[#allocation2 + $0x154] sm:$0xff]  ;;  %v5705_v4 = vpack.i.bf16 %v1022_v51, %v1021_v35 }
 0x10d   : > { %v5710_v20 = vpack.i.bf16 %v1043_v53, %v990_v32 }
 0x10e   : > { %5686 = vrot.lane.b32.xlu0 %v5670_v3, %s7033_s15  ;;  %v7763_v60 = vpop.permute.xlu0 %5531  ;;  %5302 = vmatmul.msk.bf16.gmra.mxu2 %vm512_vm0, %v511_v10 }
 0x10f   : > { %5696 = vrot.lane.b32.xlu1 %v5665_v37, %s7030_s26  ;;  %5701 = vrot.lane.b32.xlu2 %v5670_v3, %s7031_s23  ;;  %v795_v50 = vpop.f32.mrf.mxu2  ;;  %v5715_v3 = vpack.i.bf16 %v990_v32, %v1061_v21  ;;  %10123 = vst [vmem:[#allocation30_spill] sm:$0xff] %v7763_v60 }
 0x110   : > { %v796_v29 = vadd.f32 %v7619_v5, %v795_v50  ;;  %v7782_v50 = vpop.permute.xlu1 %5566 }
 0x111   : > { %10127 = vst [vmem:[#allocation34_spill] sm:$0xff] %v7782_v50 }
 0x112   : > { %v758_v0 = vpop.f32.mrf.mxu0  ;;  %v853_v8 = vmax.f32 %v796_v29, 0.0 }
 0x113   : > { %v759_v11 = vadd.f32 %v7619_v5, %v758_v0  ;;  %v1095_v12 = vld [vmem:[#allocation2 + $0x168] sm:$0xff] }
 0x114   : > { %952 = vst.msk [vmem:[#allocation2 + $0x170] sm:$0xff] %vm644_vm1, %v853_v8  ;;  %v1063_v51 = vld [vmem:[#allocation2 + $0x164] sm:$0xff] }
 0x115   : > { %v838_v15 = vmax.f32 %v759_v11, 0.0 }
 0x116   : > { %5691 = vrot.lane.b32.xlu0 %v5675_v38, %s7029_s20  ;;  %v7780_v55 = vpop.permute.xlu0 %5546 }
 0x117   : > { %5706 = vrot.lane.b32.xlu1 %v5705_v4, %s7026_s16  ;;  %937 = vst.msk [vmem:[#allocation2 + $0x88] sm:$0xff] %vm644_vm1, %v838_v15  ;;  %5711 = vrot.lane.b32.xlu2 %v5710_v20, %s7027_s22  ;;  %v798_v27 = vpop.f32.mrf.mxu2 }
 0x118   : > { %v799_v28 = vadd.f32 %v7619_v5, %v798_v27  ;;  %10126 = vst [vmem:[#allocation33_spill] sm:$0xff] %v7780_v55 }
 0x11a   : > { %v760_v30 = vpop.f32.mrf.mxu0  ;;  %v854_v49 = vmax.f32 %v799_v28, 0.0 }
 0x11b   : > { %v761_v45 = vadd.f32 %v7619_v5, %v760_v30  ;;  %v992_v13 = vld [vmem:[#allocation2 + $0x16c] sm:$0xff]  ;;  %v1044_v37 = vld [vmem:[#allocation2 + $0x174] sm:$0xff]  ;;  %v7797_v30 = vpop.permute.xlu1 %5581 }
 0x11c   : > { %953 = vst.msk [vmem:[#allocation2 + $0x188] sm:$0xff] %vm644_vm1, %v854_v49  ;;  %v1096_v38 = vld [vmem:[#allocation2 + $0x170] sm:$0xff]  ;;  %v5750_v23 = vpack.i.bf16 %v1044_v37, %v992_v13  ;;  %v5755_v29 = vpack.i.bf16 %v992_v13, %v1063_v51 }
 0x11d   : > { %v839_v1 = vmax.f32 %v761_v45, 0.0  ;;  %v5760_v46 = vpack.i.bf16 %v1096_v38, %v1095_v12  ;;  %10130 = vst [vmem:[#allocation37_spill] sm:$0xff] %v7797_v30 }
 0x11e   : > { %5721 = vrot.lane.b32.xlu0 %v5705_v4, %s7032_s29  ;;  %v7795_v28 = vpop.permute.xlu0 %5561  ;;  %v1081_v36 = vld [vmem:[#allocation2 + $0x88] sm:$0xff] }
 0x11f   : > { %5726 = vrot.lane.b32.xlu1 %v5710_v20, %s7033_s15  ;;  %938 = vst.msk [vmem:[#allocation2 + $0x90] sm:$0xff] %vm644_vm1, %v839_v1  ;;  %5716 = vrot.lane.b32.xlu2 %v5715_v3, %s7034_s18  ;;  %v800_v52 = vpop.f32.mrf.mxu2 }
 0x120   : > { %v801_v16 = vadd.f32 %v7619_v5, %v800_v52  ;;  %10129 = vst [vmem:[#allocation36_spill] sm:$0xff] %v7795_v28 }
 0x122   : > { %v855_v26 = vmax.f32 %v801_v16, 0.0  ;;  %v763_v62 = vpop.f32.mrf.mxu0 }
 0x123   : > { %v764_v9 = vadd.f32 %v7619_v5, %v763_v62  ;;  %v1065_v37 = vld [vmem:[#allocation2 + $0x184] sm:$0xff] }
 0x124   : > { %954 = vst.msk [vmem:[#allocation2 + $0x190] sm:$0xff] %vm644_vm1, %v855_v26  ;;  %v7809_v26 = vpop.permute.xlu1 %5596 }
 0x125   : > { %v840_v61 = vmax.f32 %v764_v9, 0.0  ;;  %10132 = vst [vmem:[#allocation39_spill] sm:$0xff] %v7809_v26  ;;  %v1025_v9 = vld [vmem:[#allocation2 + $0x188] sm:$0xff] }
 0x126   : > { %5741 = vrot.lane.b32.xlu0 %v5710_v20, %s7031_s23  ;;  %v7789_v0 = vld [vmem:[#allocation2 + $0x8c] sm:$0xff]  ;;  %v7805_v16 = vpop.permute.xlu0 %5576 }
 0x127   : > { %5731 = vrot.lane.b32.xlu1 %v5715_v3, %s7029_s20  ;;  %5736 = vrot.lane.b32.xlu2 %v5705_v4, %s7030_s26  ;;  %939 = vst.msk [vmem:[#allocation2 + $0xa8] sm:$0xff] %vm644_vm1, %v840_v61  ;;  %v803_v39 = vpop.f32.mrf.mxu2  ;;  %v1113_v4 = vld [vmem:[#allocation2 + $0x94] sm:$0xff] }
 0x128   : > { %v804_v40 = vadd.f32 %v7619_v5, %v803_v39  ;;  %v5805_v15 = vpack.i.bf16 %v1113_v4, %v7789_v0  ;;  %v1082_v1 = vld [vmem:[#allocation2 + $0x90] sm:$0xff]  ;;  %10131 = vst [vmem:[#allocation38_spill] sm:$0xff] %v7805_v16 }
 0x129   : > { %v5800_v52 = vpack.i.bf16 %v1082_v1, %v1081_v36 }
 0x12a   : > { %v765_v7 = vpop.f32.mrf.mxu0  ;;  %v856_v53 = vmax.f32 %v804_v40, 0.0  ;;  %v7825_v40 = vld [vmem:[#allocation2 + $0x84] sm:$0xff] }
 0x12b   : > { %v766_v35 = vadd.f32 %v7619_v5, %v765_v7  ;;  %v994_v21 = vld [vmem:[#allocation2 + $0x18c] sm:$0xff]  ;;  %v1045_v45 = vld [vmem:[#allocation2 + $0x194] sm:$0xff] }
 0x12c   : > { %955 = vst.msk [vmem:[#allocation2 + $0x1a8] sm:$0xff] %vm644_vm1, %v856_v53  ;;  %v5815_v3 = vpack.i.bf16 %v1045_v45, %v994_v21  ;;  %v1026_v13 = vld [vmem:[#allocation2 + $0x190] sm:$0xff]  ;;  %v5795_v53 = vpack.i.bf16 %v7789_v0, %v7825_v40 }
 0x12d   : > { %v841_v32 = vmax.f32 %v766_v35, 0.0  ;;  %v5810_v10 = vpack.i.bf16 %v1026_v13, %v1025_v9 }
 0x12e   : > { %5751 = vrot.lane.b32.xlu0 %v5750_v23, %s7027_s22  ;;  %v1083_v4 = vld [vmem:[#allocation2 + $0xa8] sm:$0xff] }
 0x12f   : > { %5761 = vrot.lane.b32.xlu1 %v5760_v46, %s7032_s29  ;;  %5746 = vrot.lane.b32.xlu2 %v5760_v46, %s7026_s16  ;;  %940 = vst.msk [vmem:[#allocation2 + $0xb0] sm:$0xff] %vm644_vm1, %v841_v32  ;;  %v805_v8 = vpop.f32.mrf.mxu2 }
 0x130   : > { %v806_v11 = vadd.f32 %v7619_v5, %v805_v8 }
 0x132   : > { %v857_v27 = vmax.f32 %v806_v11, 0.0  ;;  %v768_v62 = vpop.f32.mrf.mxu0 }
 0x133   : > { %v769_v38 = vadd.f32 %v7619_v5, %v768_v62  ;;  %v1027_v1 = vld [vmem:[#allocation2 + $0x1a8] sm:$0xff] }
 0x134   : > { %956 = vst.msk [vmem:[#allocation2 + $0x1b0] sm:$0xff] %vm644_vm1, %v857_v27 }
 0x135   : > { %v842_v61 = vmax.f32 %v769_v38, 0.0 }
 0x136   : > { %5756 = vrot.lane.b32.xlu0 %v5755_v29, %s7034_s18  ;;  %v1084_v8 = vld [vmem:[#allocation2 + $0xb0] sm:$0xff] }
 0x137   : > { %5781 = vrot.lane.b32.xlu1 %v5750_v23, %s7031_s23  ;;  %5766 = vrot.lane.b32.xlu2 %v5750_v23, %s7033_s15  ;;  %v5820_v23 = vpack.i.bf16 %v994_v21, %v1065_v37  ;;  %941 = vst.msk [vmem:[#allocation2 + $0xc8] sm:$0xff] %vm644_vm1, %v842_v61  ;;  %v5865_v45 = vpack.i.bf16 %v1084_v8, %v1083_v4  ;;  %v7851_v37 = vld [vmem:[#allocation2 + $0xac] sm:$0xff]  ;;  %v1038_v38 = vld [vmem:[#allocation2 + $0xb4] sm:$0xff] }
 0x139   : > { %v7792_v20 = vpop.permute.xlu2 %5606 }
 0x13a   : > { %10128 = vst [vmem:[#allocation35_spill] sm:$0xff] %v7792_v20  ;;  %v770_v35 = vpop.f32.mrf.mxu0 }
 0x13b   : > { %v771_v51 = vadd.f32 %v7619_v5, %v770_v35 }
 0x13d   : > { %v843_v32 = vmax.f32 %v771_v51, 0.0  ;;  %v5855_v51 = vpack.i.bf16 %v1038_v38, %v7851_v37 }
 0x13e   : > { %5776 = vrot.lane.b32.xlu0 %v5760_v46, %s7030_s26  ;;  %v7815_v46 = vpop.permute.xlu0 %5591  ;;  %v1013_v34 = vld [vmem:[#allocation2 + $0xc8] sm:$0xff] }
 0x13f   : > { %5806 = vrot.lane.b32.xlu1 %v5805_v15, %s7033_s15  ;;  %5771 = vrot.lane.b32.xlu2 %v5755_v29, %s7029_s20  ;;  %10134 = vst [vmem:[#allocation41_spill] sm:$0xff] %v7815_v46  ;;  %v7908_v16 = vld [vmem:[#allocation2 + $0xc4] sm:$0xff] }
 0x140   : > { %942 = vst.msk [vmem:[#allocation2 + $0xd0] sm:$0xff] %vm644_vm1, %v843_v32 }
 0x141   : > { %v7803_v49 = vpop.permute.xlu2 %5611 }
 0x146   : > { %5801 = vrot.lane.b32.xlu0 %v5800_v52, %s7032_s29 }
 0x147   : > { %5816 = vrot.lane.b32.xlu1 %v5815_v3, %s7027_s22  ;;  %5786 = vrot.lane.b32.xlu2 %v5800_v52, %s7026_s16  ;;  %v1028_v52 = vld [vmem:[#allocation2 + $0x1b0] sm:$0xff] }
 0x148   : > { %v7853_v35 = vpack.i.bf16 %v1028_v52, %v1027_v1  ;;  %v1014_v30 = vld [vmem:[#allocation2 + $0xd0] sm:$0xff] }
 0x149   : > { %v7812_v12 = vpop.permute.xlu2 %5626  ;;  %v5915_v47 = vpack.i.bf16 %v1014_v30, %v1013_v34 }
 0x14a   : > { %10133 = vst [vmem:[#allocation40_spill] sm:$0xff] %v7812_v12 }
 0x14e   : > { %5811 = vrot.lane.b32.xlu0 %v5810_v10, %s7026_s16 }
 0x14f   : > { %5821 = vrot.lane.b32.xlu1 %v5820_v23, %s7034_s18  ;;  %5791 = vrot.lane.b32.xlu2 %v5805_v15, %s7027_s22  ;;  %v808_v15 = vpop.f32.mrf.mxu2 }
 0x150   : > { %v7821_v7 = vpop.permute.xlu1 %5601  ;;  %v7833_v29 = vpop.permute.xlu0 %5616  ;;  %v809_v21 = vadd.f32 %v7619_v5, %v808_v15 }
 0x151   : > { %v7823_v39 = vpop.permute.xlu2 %5646 }
 0x152   : > { %v858_v36 = vmax.f32 %v809_v21, 0.0  ;;  %v7868_v21 = vld [vmem:[#allocation2 + $0xa4] sm:$0xff] }
 0x153   : > { %v5860_v38 = vpack.i.bf16 %v7851_v37, %v7868_v21 }
 0x154   : > { %957 = vst.msk [vmem:[#allocation2 + $0x1c8] sm:$0xff] %vm644_vm1, %v858_v36 }
 0x156   : > { %5831 = vrot.lane.b32.xlu0 %v5815_v3, %s7033_s15 }
 0x157   : > { %5841 = vrot.lane.b32.xlu1 %v5810_v10, %s7030_s26  ;;  %5796 = vrot.lane.b32.xlu2 %v5795_v53, %s7034_s18  ;;  %v810_v61 = vpop.f32.mrf.mxu2  ;;  %v1122_v53 = vld [vmem:[#allocation2 + $0x1b4] sm:$0xff] }
 0x158   : > { %v7836_v11 = vpop.permute.xlu1 %5621 }
 0x159   : > { %v7838_v27 = vpop.permute.xlu2 %5651 }
 0x15e   : > { %5836 = vrot.lane.b32.xlu0 %v5820_v23, %s7029_s20  ;;  %v811_v23 = vadd.f32 %v7619_v5, %v810_v61 }
 0x15f   : > { %5866 = vrot.lane.b32.xlu1 %v5865_v45, %s7032_s29  ;;  %5826 = vrot.lane.b32.xlu2 %v5810_v10, %s7032_s29  ;;  %v1068_v10 = vld [vmem:[#allocation2 + $0x1ac] sm:$0xff]  ;;  %v813_v36 = vpop.f32.mrf.mxu2 }
 0x160   : > { %v7845_v62 = vpop.permute.xlu0 %5631  ;;  %v859_v32 = vmax.f32 %v811_v23, 0.0  ;;  %v5895_v1 = vpack.i.bf16 %v1122_v53, %v1068_v10  ;;  %v814_v52 = vadd.f32 %v7619_v5, %v813_v36  ;;  %v1140_v53 = vld [vmem:[#allocation2 + $0x1a4] sm:$0xff] }
 0x161   : > { %10135 = vst [vmem:[#allocation42_spill] sm:$0xff] %v7845_v62  ;;  %v7847_v9 = vpop.permute.xlu1 %5641  ;;  %v7849_v13 = vpop.permute.xlu2 %5681  ;;  %v5900_v46 = vpack.i.bf16 %v1068_v10, %v1140_v53 }
 0x162   : > { %958 = vst.msk [vmem:[#allocation2 + $0x1d0] sm:$0xff] %vm644_vm1, %v859_v32  ;;  %v860_v61 = vmax.f32 %v814_v52, 0.0 }
 0x164   : > { %959 = vst.msk [vmem:[#allocation2 + $0x1e8] sm:$0xff] %vm644_vm1, %v860_v61 }
 0x166   : > { %5856 = vrot.lane.b32.xlu0 %v5855_v51, %s7027_s22 }
 0x167   : > { %5876 = vrot.lane.b32.xlu1 %v7853_v35, %s7026_s16  ;;  %5846 = vrot.lane.b32.xlu2 %v5815_v3, %s7031_s23  ;;  %v815_v36 = vpop.f32.mrf.mxu2 }
 0x168   : > { %v7862_v4 = vpop.permute.xlu0 %5636  ;;  %v816_v26 = vadd.f32 %v7619_v5, %v815_v36 }
 0x169   : > { %v7864_v8 = vpop.permute.xlu1 %5661  ;;  %v7866_v15 = vpop.permute.xlu2 %5701  ;;  %v1102_v34 = vld [vmem:[#allocation2 + $0x1d0] sm:$0xff] }
 0x16a   : > { %v861_v52 = vmax.f32 %v816_v26, 0.0 }
 0x16c   : > { %960 = vst.msk [vmem:[#allocation2 + $0x1f0] sm:$0xff] %vm644_vm1, %v861_v52 }
 0x16e   : > { %5861 = vrot.lane.b32.xlu0 %v5860_v38, %s7034_s18  ;;  %v1039_v38 = vld [vmem:[#allocation2 + $0xd4] sm:$0xff] }
 0x16f   : > { %5896 = vrot.lane.b32.xlu1 %v5895_v1, %s7033_s15  ;;  %5851 = vrot.lane.b32.xlu2 %v5865_v45, %s7026_s16  ;;  %v7889_v45 = vld [vmem:[#allocation2 + $0xcc] sm:$0xff]  ;;  %v818_v10 = vpop.f32.mrf.mxu2 }
 0x170   : > { %v7877_v3 = vpop.permute.xlu0 %5656  ;;  %v5920_v26 = vpack.i.bf16 %v1039_v38, %v7889_v45  ;;  %v819_v36 = vadd.f32 %v7619_v5, %v818_v10  ;;  %v5925_v54 = vpack.i.bf16 %v7889_v45, %v7908_v16 }
 0x171   : > { %v7879_v23 = vpop.permute.xlu1 %5671  ;;  %v7881_v32 = vpop.permute.xlu2 %5711 }
 0x172   : > { %10136 = vst [vmem:[#allocation43_spill] sm:$0xff] %v7879_v23  ;;  %v862_v38 = vmax.f32 %v819_v36, 0.0  ;;  %v1101_v36 = vld [vmem:[#allocation2 + $0x1c8] sm:$0xff]  ;;  %v5613_v23 = vunpack.i.l.bf16 %v7803_v49 }
 0x173   : > { %10137 = vst [vmem:[#allocation44_spill] sm:$0xff] %v7881_v32  ;;  %v1032_v32 = vld [vmem:[#allocation2 + $0x1f0] sm:$0xff] }
 0x174   : > { %961 = vst.msk [vmem:[#allocation2 + $0x208] sm:$0xff] %vm644_vm1, %v862_v38 }
 0x176   : > { %5891 = vrot.lane.b32.xlu0 %v7853_v35, %s7032_s29 }
 0x177   : > { %5901 = vrot.lane.b32.xlu1 %v5900_v46, %s7029_s20  ;;  %5871 = vrot.lane.b32.xlu2 %v5855_v51, %s7033_s15  ;;  %v820_v50 = vpop.f32.mrf.mxu2 }
 0x178   : > { %v7891_v61 = vpop.permute.xlu0 %5666  ;;  %v821_v48 = vadd.f32 %v7619_v5, %v820_v50  ;;  %v5366_v50 = vld [vmem:[%s10036_s7 + $0x8] sm:$0xff] }
 0x179   : > { %10138 = vst [vmem:[#allocation45_spill] sm:$0xff] %v7891_v61  ;;  %v7893_v22 = vpop.permute.xlu1 %5676  ;;  %v7895_v28 = vpop.permute.xlu2 %5716 }
 0x17a   : > { %v863_v25 = vmax.f32 %v821_v48, 0.0 }
 0x17c   : > { %962 = vst.msk [vmem:[#allocation2 + $0x210] sm:$0xff] %vm644_vm1, %v863_v25 }
 0x17e   : > { %5911 = vrot.lane.b32.xlu0 %v5895_v1, %s7031_s23 }
 0x17f   : > { %5921 = vrot.lane.b32.xlu1 %v5920_v26, %s7027_s22  ;;  %5881 = vrot.lane.b32.xlu2 %v5895_v1, %s7027_s22  ;;  %v2485_v1 = vld [vmem:[%s10036_s7 + $0x10] sm:$0x3] }
 0x180   : > { %v7901_v53 = vpop.permute.xlu0 %5686  ;;  %v2499_v10 = vunpack.c.l.b16 %v2485_v1 }
 0x181   : > { %v7903_v51 = vpop.permute.xlu1 %5696  ;;  %v7906_v52 = vpop.permute.xlu2 %5736 }
 0x182   : > { %v2502_v30 = vpack.c.b16 %v2499_v10, %v2499_v10 }
 0x184   : > { %v2555_v1 = vsel %vm648_vm4, %v2502_v30, 0 }
 0x185   : > { %2562 = vmatpush.bf16.msra.mxu0 %v2555_v1  ;;  %5374 = vmatpush.bf16.msra.mxu3 %v2555_v1 }
 0x186   : > { %v7916_v19 = vpop.f32.mrf.mxu1  ;;  %5916 = vrot.lane.b32.xlu0 %v5915_v47, %s7026_s16 }
 0x187   : > { %10139 = vst [vmem:[#allocation46_spill] sm:$0xff] %v7916_v19  ;;  %5926 = vrot.lane.b32.xlu1 %v5925_v54, %s7034_s18  ;;  %5886 = vrot.lane.b32.xlu2 %v5900_v46, %s7034_s18  ;;  %v5955_v19 = vpack.i.bf16 %v1102_v34, %v1101_v36  ;;  %v823_v46 = vpop.f32.mrf.mxu2  ;;  %v998_v34 = vld [vmem:[#allocation2 + $0x1cc] sm:$0xff] }
 0x188   : > { %v7921_v55 = vpop.permute.xlu0 %5691  ;;  %v824_v36 = vadd.f32 %v7619_v5, %v823_v46  ;;  %v1048_v46 = vld [vmem:[#allocation2 + $0x1f4] sm:$0xff] }
 0x189   : > { %v7923_v38 = vpop.permute.xlu1 %5706  ;;  %v7926_v2 = vpop.permute.xlu2 %5746  ;;  %5375 = vmatpush.bf16.msra.mxu3 %v5366_v50  ;;  %2563 = vmatpush.bf16.msra.mxu0 %v5366_v50 }
 0x18a   : > { %10140 = vst [vmem:[#allocation47_spill] sm:$0xff] %v7923_v38  ;;  %v864_v30 = vmax.f32 %v824_v36, 0.0  ;;  %v5614_v38 = vunpack.i.h.bf16 %v7803_v49 }
 0x18b   : > { %10141 = vst [vmem:[#allocation48_spill] sm:$0xff] %v7926_v2  ;;  %v1031_v2 = vld [vmem:[#allocation2 + $0x1e8] sm:$0xff] }
 0x18c   : > { %963 = vst.msk [vmem:[#allocation2 + $0x228] sm:$0xff] %vm644_vm1, %v864_v30  ;;  %v1069_v30 = vld [vmem:[#allocation2 + $0x1c4] sm:$0xff]  ;;  %v5980_v62 = vpack.i.bf16 %v1032_v32, %v1031_v2  ;;  %v1074_v2 = vld [vmem:[#allocation2 + $0x20c] sm:$0xff]  ;;  %v5444_v32 = vunpack.i.h.bf16 %v7668_v59 }
 0x18d   : > { %v5950_v63 = vpack.i.bf16 %v998_v34, %v1069_v30  ;;  %v5459_v30 = vunpack.i.h.bf16 %v7659_v41 }
 0x18e   : > { %v663_v54 = vpop.f32.mrf.mxu1  ;;  %5936 = vrot.lane.b32.xlu0 %v5920_v26, %s7033_s15  ;;  %v1047_v26 = vld [vmem:[#allocation2 + $0x1d4] sm:$0xff] }
 0x18f   : > { %5956 = vrot.lane.b32.xlu1 %v5955_v19, %s7032_s29  ;;  %5906 = vrot.lane.b32.xlu2 %v7853_v35, %s7030_s26  ;;  %v5365_v35 = vld [vmem:[%s10036_s7] sm:$0xff]  ;;  %v5945_v1 = vpack.i.bf16 %v1047_v26, %v998_v34  ;;  %v1000_v54 = vld [vmem:[#allocation2 + $0x1ec] sm:$0xff]  ;;  %v825_v60 = vpop.f32.mrf.mxu2 }
 0x190   : > { %v7937_v10 = vpop.permute.xlu0 %5721  ;;  %5376 = vmatpush.bf16.msra.mxu3 %v5365_v35  ;;  %2564 = vmatpush.bf16.msra.mxu0 %v5365_v35  ;;  %v826_v6 = vadd.f32 %v7619_v5, %v825_v60  ;;  %v7958_v57 = vpack.i.bf16 %v1048_v46, %v1000_v54 }
 0x191   : > { %v7939_v48 = vpop.permute.xlu1 %5726  ;;  %v7942_v25 = vpop.permute.xlu2 %5766 }
 0x192   : > { %10142 = vst [vmem:[#allocation49_spill] sm:$0xff] %v7942_v25  ;;  %v865_v35 = vmax.f32 %v826_v6, 0.0 }
 0x194   : > { %964 = vst.msk [vmem:[#allocation2 + $0x230] sm:$0xff] %vm644_vm1, %v865_v35  ;;  %v5458_v35 = vunpack.i.l.bf16 %v7659_v41  ;;  %v5479_v41 = vunpack.i.h.bf16 %v7684_v42 }
 0x196   : > { %5946 = vrot.lane.b32.xlu0 %v5945_v1, %s7027_s22 }
 0x197   : > { %5976 = vrot.lane.b32.xlu1 %v5945_v1, %s7031_s23  ;;  %5931 = vrot.lane.b32.xlu2 %v5915_v47, %s7032_s29  ;;  %v1071_v47 = vld [vmem:[#allocation2 + $0x1e4] sm:$0xff]  ;;  %v828_v44 = vpop.f32.mrf.mxu2 }
 0x198   : > { %v7951_v50 = vpop.permute.xlu0 %5741  ;;  %v829_v46 = vadd.f32 %v7619_v5, %v828_v44  ;;  %v7972_v6 = vpack.i.bf16 %v1000_v54, %v1071_v47 }
 0x199   : > { %v7953_v36 = vpop.permute.xlu1 %5731  ;;  %v7956_v26 = vpop.permute.xlu2 %5771 }
 0x19a   : > { %v866_v34 = vmax.f32 %v829_v46, 0.0  ;;  %v6848_v46 = vld [vmem:[#allocation2 + $0x6c] sm:$0xff]  ;;  %v5773_v49 = vunpack.i.l.bf16 %v7956_v26 }
 0x19c   : > { %965 = vst.msk [vmem:[#allocation2 + $0x248] sm:$0xff] %vm644_vm1, %v866_v34  ;;  %v2209_v34 = vsel %vm644_vm1, %v6848_v46, %v5459_v30  ;;  %v5618_v30 = vunpack.i.l.bf16 %v7833_v29  ;;  %v5623_v46 = vunpack.i.l.bf16 %v7836_v11 }
 0x19e   : > { %5951 = vrot.lane.b32.xlu0 %v5950_v63, %s7034_s18 }
 0x19f   : > { %5986 = vrot.lane.b32.xlu1 %v7958_v57, %s7027_s22  ;;  %5941 = vrot.lane.b32.xlu2 %v5955_v19, %s7026_s16  ;;  %v830_v44 = vpop.f32.mrf.mxu2 }
 0x1a0   : > { %v7965_v58 = vpop.permute.xlu0 %5751  ;;  %v831_v47 = vadd.f32 %v7619_v5, %v830_v44  ;;  %v5619_v44 = vunpack.i.h.bf16 %v7833_v29  ;;  %v5774_v29 = vunpack.i.h.bf16 %v7956_v26 }
 0x1a1   : > { %10143 = vst [vmem:[#allocation50_spill] sm:$0xff] %v7965_v58  ;;  %v7967_v60 = vpop.permute.xlu1 %5761  ;;  %v7970_v24 = vpop.permute.xlu2 %5786 }
 0x1a2   : > { %10144 = vst [vmem:[#allocation51_spill] sm:$0xff] %v7967_v60  ;;  %v867_v61 = vmax.f32 %v831_v47, 0.0 }
 0x1a4   : > { %966 = vst.msk [vmem:[#allocation2 + $0x250] sm:$0xff] %vm644_vm1, %v867_v61  ;;  %v5443_v61 = vunpack.i.l.bf16 %v7668_v59 }
 0x1a6   : > { %5971 = vrot.lane.b32.xlu0 %v5955_v19, %s7030_s26  ;;  %v5478_v19 = vunpack.i.l.bf16 %v7684_v42  ;;  %v5624_v42 = vunpack.i.h.bf16 %v7836_v11  ;;  %v1125_v11 = vld [vmem:[#allocation2 + $0x214] sm:$0xff] }
 0x1a7   : > { %5991 = vrot.lane.b32.xlu1 %v7972_v6, %s7034_s18  ;;  %5961 = vrot.lane.b32.xlu2 %v5945_v1, %s7033_s15  ;;  %v2208_v1 = vsel %vm644_vm1, %v975_v14, %v5458_v35  ;;  %v2242_v14 = vsel %vm2234_vm5, %v2209_v34, %v5479_v41  ;;  %v8015_v59 = vpack.i.bf16 %v1125_v11, %v1074_v2 }
 0x1a8   : > { %v7981_v56 = vpop.permute.xlu0 %5756  ;;  %v2241_v35 = vsel %vm2234_vm5, %v2208_v1, %v5478_v19  ;;  %v2275_v47 = vsel %vm2267_vm6, %v2242_v14, %v5614_v38 }
 0x1a9   : > { %v7983_v54 = vpop.permute.xlu1 %5781  ;;  %v7989_v58 = vpop.permute.xlu2 %5791  ;;  %v2274_v12 = vsel %vm2267_vm6, %v2241_v35, %v5613_v23  ;;  %v2308_v41 = vsel %vm2300_vm7, %v2275_v47, %v5619_v44  ;;  %v5464_v47 = vunpack.i.h.bf16 %v7671_v18 }
 0x1aa   : > { %v2307_v34 = vsel %vm2300_vm7, %v2274_v12, %v5618_v30  ;;  %v2341_v38 = vsel %vm2333_vm8, %v2308_v41, %v5624_v42  ;;  %v833_v12 = vpop.f32.mrf.mxu2  ;;  %v969_v30 = vld [vmem:[#allocation2 + $0x4] sm:$0xff]  ;;  %v5463_v41 = vunpack.i.l.bf16 %v7671_v18 }
 0x1ab   : > { %v2340_v23 = vsel %vm2333_vm8, %v2307_v34, %v5623_v46  ;;  %v2374_v44 = vsel %vm2366_vm9, %v2341_v38, %v5774_v29  ;;  %v5783_v46 = vunpack.i.l.bf16 %v7983_v54  ;;  %v834_v42 = vadd.f32 %v7619_v5, %v833_v12  ;;  %v6849_v38 = vld [vmem:[#allocation2 + $0xc] sm:$0xff]  ;;  %v1146_v18 = vld [vmem:[#allocation2 + $0x204] sm:$0xff] }
 0x1ac   : > { %v2373_v1 = vsel %vm2366_vm9, %v2340_v23, %v5773_v49  ;;  %v2202_v29 = vsel %vm644_vm1, %v969_v30, %v5443_v61 }
 0x1ad   : > { %v868_v12 = vmax.f32 %v834_v42, 0.0  ;;  %v2235_v61 = vsel %vm2234_vm5, %v2202_v29, %v5463_v41 }
 0x1ae   : > { %5981 = vrot.lane.b32.xlu0 %v5980_v62, %s7026_s16 }
 0x1af   : > { %6011 = vrot.lane.b32.xlu1 %v5980_v62, %s7030_s26  ;;  %5966 = vrot.lane.b32.xlu2 %v5950_v63, %s7029_s20  ;;  %v5784_v63 = vunpack.i.h.bf16 %v7983_v54  ;;  %v2203_v54 = vsel %vm644_vm1, %v6849_v38, %v5444_v32  ;;  %967 = vst.msk [vmem:[#allocation2 + $0x268] sm:$0xff] %vm644_vm1, %v868_v12  ;;  %v5658_v38 = vunpack.i.l.bf16 %v7877_v3 }
 0x1b0   : > { %v5777_v26 = vpop.permute.xlu0 %5776  ;;  %v2236_v32 = vsel %vm2234_vm5, %v2203_v54, %v5464_v47  ;;  %v5653_v47 = vunpack.i.l.bf16 %v7838_v27 }
 0x1b1   : > { %v5807_v19 = vpop.permute.xlu1 %5806  ;;  %v5779_v14 = vunpack.i.h.bf16 %v5777_v26  ;;  %v5778_v35 = vunpack.i.l.bf16 %v5777_v26  ;;  %v5797_v25 = vpop.permute.xlu2 %5796 }
 0x1b2   : > { %v5799_v60 = vunpack.i.h.bf16 %v5797_v25  ;;  %v5798_v20 = vunpack.i.l.bf16 %v5797_v25  ;;  %v5808_v42 = vunpack.i.l.bf16 %v5807_v19 }
 0x1b3   : > { %v2406_v34 = vsel %vm2399_vm10, %v2373_v1, %v5778_v35  ;;  %v2407_v49 = vsel %vm2399_vm10, %v2374_v44, %v5779_v14  ;;  %v5654_v1 = vunpack.i.h.bf16 %v7838_v27  ;;  %v5809_v35 = vunpack.i.h.bf16 %v5807_v19 }
 0x1b4   : > { %v2439_v11 = vsel %vm2432_vm11, %v2406_v34, %v5783_v46  ;;  %v2440_v23 = vsel %vm2432_vm11, %v2407_v49, %v5784_v63  ;;  %v6035_v46 = vpack.i.bf16 %v1074_v2, %v1146_v18  ;;  %v2269_v34 = vsel %vm2267_vm6, %v2236_v32, %v5799_v60  ;;  %v1107_v32 = vld [vmem:[#allocation2 + $0x228] sm:$0xff] }
 0x1b5   : > { %v2468_v26 = vpack.c.bf16 %v2440_v23, %v2439_v11  ;;  %v2268_v49 = vsel %vm2267_vm6, %v2235_v61, %v5798_v20  ;;  %v5659_v11 = vunpack.i.h.bf16 %v7877_v3  ;;  %v5664_v60 = vunpack.i.h.bf16 %v7864_v8  ;;  %v1105_v3 = vld [vmem:[#allocation2 + $0x208] sm:$0xff]  ;;  %v1106_v61 = vld [vmem:[#allocation2 + $0x210] sm:$0xff] }
 0x1b6   : > { %6001 = vrot.lane.b32.xlu0 %v7958_v57, %s7033_s15  ;;  %v5663_v20 = vunpack.i.l.bf16 %v7864_v8 }
 0x1b7   : > { %6031 = vrot.lane.b32.xlu1 %v8015_v59, %s7033_s15  ;;  %5996 = vrot.lane.b32.xlu2 %v5980_v62, %s7032_s29  ;;  %v835_v62 = vpop.f32.mrf.mxu2 }
 0x1b8   : > { %5314 = vmatmul.msk.bf16.vlgmr.msra.gmra.mxu3 %vm2505_vm12, %v2468_v26  ;;  %v5802_v25 = vpop.permute.xlu0 %5801  ;;  %v836_v41 = vadd.f32 %v7619_v5, %v835_v62 }
 0x1b9   : > { %v8039_v14 = vpop.permute.xlu1 %5816  ;;  %v5804_v30 = vunpack.i.h.bf16 %v5802_v25  ;;  %v5803_v44 = vunpack.i.l.bf16 %v5802_v25  ;;  %v8041_v63 = vpop.permute.xlu2 %5826 }
 0x1ba   : > { %v869_v54 = vmax.f32 %v836_v41, 0.0 }
 0x1bb   : > { %v2301_v23 = vsel %vm2300_vm7, %v2268_v49, %v5803_v44  ;;  %v2302_v29 = vsel %vm2300_vm7, %v2269_v34, %v5804_v30  ;;  %v6025_v44 = vpack.i.bf16 %v1106_v61, %v1105_v3  ;;  %v5794_v34 = vunpack.i.h.bf16 %v7989_v58  ;;  %v1077_v3 = vld [vmem:[#allocation2 + $0x244] sm:$0xff] }
 0x1bc   : > { %v2334_v2 = vsel %vm2333_vm8, %v2301_v23, %v5808_v42  ;;  %v2335_v19 = vsel %vm2333_vm8, %v2302_v29, %v5809_v35  ;;  %968 = vst.msk [vmem:[#allocation2 + $0x270] sm:$0xff] %vm644_vm1, %v869_v54  ;;  %v5788_v42 = vunpack.i.l.bf16 %v7970_v24  ;;  %v5793_v49 = vunpack.i.l.bf16 %v7989_v58  ;;  %v1203_v23 = vld [vmem:[#allocation2 + $0x234] sm:$0xff] }
 0x1bd   : > { %v2367_v5 = vsel %vm2366_vm9, %v2334_v2, %v5653_v47  ;;  %v2368_v27 = vsel %vm2366_vm9, %v2335_v19, %v5654_v1  ;;  %v1108_v1 = vld [vmem:[#allocation2 + $0x230] sm:$0xff]  ;;  %v5639_v2 = vunpack.i.h.bf16 %v7862_v4  ;;  %v5638_v19 = vunpack.i.l.bf16 %v7862_v4 }
 0x1be   : > { %v2400_v26 = vsel %vm2399_vm10, %v2367_v5, %v5658_v38  ;;  %v2401_v12 = vsel %vm2399_vm10, %v2368_v27, %v5659_v11  ;;  %6006 = vrot.lane.b32.xlu0 %v7972_v6, %s7029_s20  ;;  %v8072_v62 = vpack.i.bf16 %v1108_v1, %v1107_v32  ;;  %v2210_v41 = vsel %vm644_vm1, %v7825_v40, %v5788_v42  ;;  %v1149_v11 = vld [vmem:[#allocation2 + $0x22c] sm:$0xff] }
 0x1bf   : > { %6036 = vrot.lane.b32.xlu1 %v6035_v46, %s7029_s20  ;;  %6016 = vrot.lane.b32.xlu2 %v7958_v57, %s7031_s23  ;;  %v2433_v8 = vsel %vm2432_vm11, %v2400_v26, %v5663_v20  ;;  %v2434_v18 = vsel %vm2432_vm11, %v2401_v12, %v5664_v60  ;;  %v5789_v57 = vunpack.i.h.bf16 %v7970_v24  ;;  %v2243_v24 = vsel %vm2234_vm5, %v2210_v41, %v5793_v49  ;;  %v1075_v12 = vld [vmem:[#allocation2 + $0x224] sm:$0xff] }
 0x1c0   : > { %v8067_v25 = vpop.permute.xlu0 %5811  ;;  %v2465_v6 = vpack.c.bf16 %v2434_v18, %v2433_v8  ;;  %v6075_v40 = vpack.i.bf16 %v1203_v23, %v1149_v11  ;;  %v5644_v60 = vunpack.i.h.bf16 %v7847_v9  ;;  %v5643_v20 = vunpack.i.l.bf16 %v7847_v9  ;;  %v8106_v8 = vld [vmem:[#allocation2 + $0x24c] sm:$0xff] }
 0x1c1   : > { %v8069_v35 = vpop.permute.xlu1 %5821  ;;  %v5847_v30 = vpop.permute.xlu2 %5846  ;;  %v2211_v47 = vsel %vm644_vm1, %v7789_v0, %v5789_v57  ;;  %v2276_v0 = vsel %vm2267_vm6, %v2243_v24, %v5638_v19  ;;  %v5649_v27 = vunpack.i.h.bf16 %v7823_v39  ;;  %v5648_v26 = vunpack.i.l.bf16 %v7823_v39  ;;  %v1182_v19 = vld [vmem:[#allocation2 + $0x248] sm:$0xff] }
 0x1c2   : > { %5311 = vmatmul.msk.bf16.vlgmr.msra.gmra.mxu0 %vm2505_vm12, %v2465_v6  ;;  %v2244_v29 = vsel %vm2234_vm5, %v2211_v47, %v5794_v34  ;;  %v2309_v5 = vsel %vm2300_vm7, %v2276_v0, %v5643_v20  ;;  %v6050_v39 = vpack.i.bf16 %v1149_v11, %v1075_v12  ;;  %v5849_v34 = vunpack.i.h.bf16 %v5847_v30  ;;  %v1183_v0 = vld [vmem:[#allocation2 + $0x250] sm:$0xff] }
 0x1c3   : > { %v2342_v32 = vsel %vm2333_vm8, %v2309_v5, %v5648_v26  ;;  %v5848_v49 = vunpack.i.l.bf16 %v5847_v30  ;;  %v5449_v30 = vunpack.i.h.bf16 %v7680_v31  ;;  %v6100_v26 = vpack.i.bf16 %v1183_v0, %v1182_v19  ;;  %v6850_v12 = vld [vmem:[#allocation2 + $0x2c] sm:$0xff] }
 0x1c6   : > { %6026 = vrot.lane.b32.xlu0 %v6025_v44, %s7032_s29 }
 0x1c7   : > { %6056 = vrot.lane.b32.xlu1 %v8072_v62, %s7032_s29  ;;  %6021 = vrot.lane.b32.xlu2 %v6035_v46, %s7034_s18  ;;  %v2277_v46 = vsel %vm2267_vm6, %v2244_v29, %v5639_v2 }
 0x1c8   : > { %v8088_v58 = vpop.permute.xlu0 %5831  ;;  %v2310_v4 = vsel %vm2300_vm7, %v2277_v46, %v5644_v60  ;;  %v971_v46 = vld [vmem:[#allocation2 + $0x24] sm:$0xff] }
 0x1c9   : > { %v5842_v38 = vpop.permute.xlu1 %5841  ;;  %v8092_v54 = vpop.permute.xlu2 %5851  ;;  %v2343_v1 = vsel %vm2333_vm8, %v2310_v4, %v5649_v27  ;;  %v5469_v4 = vunpack.i.h.bf16 %v7653_v17  ;;  %v5468_v27 = vunpack.i.l.bf16 %v7653_v17  ;;  %v5699_v17 = vunpack.i.h.bf16 %v7903_v51 }
 0x1ca   : > { %v5844_v57 = vunpack.i.h.bf16 %v5842_v38  ;;  %v5843_v42 = vunpack.i.l.bf16 %v5842_v38  ;;  %v5448_v38 = vunpack.i.l.bf16 %v7680_v31  ;;  %v2205_v31 = vsel %vm644_vm1, %v6850_v12, %v5449_v30 }
 0x1ce   : > { %6046 = vrot.lane.b32.xlu0 %v8015_v59, %s7031_s23 }
 0x1cf   : > { %6076 = vrot.lane.b32.xlu1 %v6075_v40, %s7031_s23  ;;  %6041 = vrot.lane.b32.xlu2 %v6025_v44, %s7030_s26  ;;  %v8115_v44 = vpack.i.bf16 %v8106_v8, %v1077_v3 }
 0x1d0   : > { %v5837_v9 = vpop.permute.xlu0 %5836 }
 0x1d1   : > { %v8108_v18 = vpop.permute.xlu1 %5866  ;;  %v5839_v59 = vunpack.i.h.bf16 %v5837_v9  ;;  %v5838_v61 = vunpack.i.l.bf16 %v5837_v9  ;;  %v8112_v6 = vpop.permute.xlu2 %5871  ;;  %v2238_v9 = vsel %vm2234_vm5, %v2205_v31, %v5469_v4  ;;  %v5679_v31 = vunpack.i.h.bf16 %v7893_v22 }
 0x1d3   : > { %v2375_v41 = vsel %vm2366_vm9, %v2342_v32, %v5838_v61  ;;  %v2376_v47 = vsel %vm2366_vm9, %v2343_v1, %v5839_v59  ;;  %v5704_v59 = vunpack.i.h.bf16 %v7866_v15  ;;  %v5703_v61 = vunpack.i.l.bf16 %v7866_v15  ;;  %v1127_v1 = vld [vmem:[#allocation2 + $0x254] sm:$0xff] }
 0x1d4   : > { %v2408_v23 = vsel %vm2399_vm10, %v2375_v41, %v5843_v42  ;;  %v2409_v24 = vsel %vm2399_vm10, %v2376_v47, %v5844_v57  ;;  %v5698_v32 = vunpack.i.l.bf16 %v7903_v51  ;;  %v1080_v57 = vld [vmem:[#allocation2 + $0x26c] sm:$0xff]  ;;  %v1128_v42 = vld [vmem:[#allocation2 + $0x274] sm:$0xff]  ;;  %v5853_v41 = vunpack.i.l.bf16 %v8092_v54 }
 0x1d5   : > { %v2441_v29 = vsel %vm2432_vm11, %v2408_v23, %v5848_v49  ;;  %v2442_v2 = vsel %vm2432_vm11, %v2409_v24, %v5849_v34  ;;  %v5693_v34 = vunpack.i.l.bf16 %v7921_v55  ;;  %v5854_v49 = vunpack.i.h.bf16 %v8092_v54 }
 0x1d6   : > { %6051 = vrot.lane.b32.xlu0 %v6050_v39, %s7034_s18  ;;  %v2469_v11 = vpack.c.bf16 %v2442_v2, %v2441_v29  ;;  %v6090_v30 = vpack.i.bf16 %v1127_v1, %v8106_v8  ;;  %v5873_v54 = vunpack.i.l.bf16 %v8112_v6  ;;  %v1152_v1 = vld [vmem:[#allocation2 + $0x264] sm:$0xff] }
 0x1d7   : > { %6081 = vrot.lane.b32.xlu1 %v8115_v44, %s7034_s18  ;;  %6061 = vrot.lane.b32.xlu2 %v6075_v40, %s7033_s15  ;;  %v2204_v40 = vsel %vm644_vm1, %v971_v46, %v5448_v38  ;;  %v5874_v38 = vunpack.i.h.bf16 %v8112_v6  ;;  %v2213_v46 = vsel %vm644_vm1, %v7851_v37, %v5854_v49 }
 0x1d8   : > { %v5857_v60 = vpop.permute.xlu0 %5856  ;;  %5315 = vmatmul.msk.bf16.gmra.mxu3 %vm2505_vm12, %v2469_v11  ;;  %v2237_v3 = vsel %vm2234_vm5, %v2204_v40, %v5468_v27  ;;  %v5868_v11 = vunpack.i.l.bf16 %v8108_v18  ;;  %v5678_v40 = vunpack.i.l.bf16 %v7893_v22 }
 0x1d9   : > { %v8129_v20 = vpop.permute.xlu1 %5876  ;;  %v8132_v5 = vpop.permute.xlu2 %5881  ;;  %v5859_v15 = vunpack.i.h.bf16 %v5857_v60  ;;  %v5858_v24 = vunpack.i.l.bf16 %v5857_v60  ;;  %v2212_v60 = vsel %vm644_vm1, %v7868_v21, %v5853_v41 }
 0x1db   : > { %v2245_v4 = vsel %vm2234_vm5, %v2212_v60, %v5858_v24  ;;  %v2246_v27 = vsel %vm2234_vm5, %v2213_v46, %v5859_v15  ;;  %v6125_v24 = vpack.i.bf16 %v1080_v57, %v1152_v1 }
 0x1dc   : > { %v2279_v22 = vsel %vm2267_vm6, %v2246_v27, %v5679_v31 }
 0x1de   : > { %6071 = vrot.lane.b32.xlu0 %v8072_v62, %s7030_s26  ;;  %v5694_v62 = vunpack.i.h.bf16 %v7921_v55  ;;  %v8159_v55 = vpack.i.bf16 %v1128_v42, %v1080_v57  ;;  %v2278_v42 = vsel %vm2267_vm6, %v2245_v4, %v5678_v40 }
 0x1df   : > { %6101 = vrot.lane.b32.xlu1 %v6100_v26, %s7030_s26  ;;  %6066 = vrot.lane.b32.xlu2 %v6050_v39, %s7029_s20  ;;  %v5869_v39 = vunpack.i.h.bf16 %v8108_v18 }
 0x1e0   : > { %v5862_v47 = vpop.permute.xlu0 %5861 }
 0x1e1   : > { %v8152_v23 = vpop.permute.xlu1 %5896  ;;  %v5864_v29 = vunpack.i.h.bf16 %v5862_v47  ;;  %v5863_v51 = vunpack.i.l.bf16 %v5862_v47  ;;  %v8154_v2 = vpop.permute.xlu2 %5886 }
 0x1e3   : > { %v2271_v19 = vsel %vm2267_vm6, %v2238_v9, %v5864_v29  ;;  %v2270_v0 = vsel %vm2267_vm6, %v2237_v3, %v5863_v51 }
 0x1e4   : > { %v2303_v18 = vsel %vm2300_vm7, %v2270_v0, %v5868_v11  ;;  %v2304_v8 = vsel %vm2300_vm7, %v2271_v19, %v5869_v39  ;;  %v5689_v11 = vunpack.i.h.bf16 %v7901_v53  ;;  %v1112_v0 = vld [vmem:[#allocation2 + $0x270] sm:$0xff] }
 0x1e5   : > { %v2336_v6 = vsel %vm2333_vm8, %v2303_v18, %v5873_v54  ;;  %v2337_v12 = vsel %vm2333_vm8, %v2304_v8, %v5874_v38  ;;  %v5688_v38 = vunpack.i.l.bf16 %v7901_v53  ;;  %v1111_v53 = vld [vmem:[#allocation2 + $0x268] sm:$0xff] }
 0x1e6   : > { %6091 = vrot.lane.b32.xlu0 %v6090_v30, %s7033_s15  ;;  %v2369_v37 = vsel %vm2366_vm9, %v2336_v6, %v5693_v34  ;;  %v2370_v21 = vsel %vm2366_vm9, %v2337_v12, %v5694_v62  ;;  %v5684_v62 = vunpack.i.h.bf16 %v7849_v13  ;;  %v6115_v27 = vpack.i.bf16 %v1112_v0, %v1111_v53 }
 0x1e7   : > { %6121 = vrot.lane.b32.xlu1 %v8159_v55, %s7033_s15  ;;  %6086 = vrot.lane.b32.xlu2 %v6100_v26, %s7032_s29  ;;  %v2402_v3 = vsel %vm2399_vm10, %v2369_v37, %v5698_v32  ;;  %v2403_v9 = vsel %vm2399_vm10, %v2370_v21, %v5699_v17  ;;  %v5683_v26 = vunpack.i.l.bf16 %v7849_v13  ;;  %v5453_v37 = vunpack.i.l.bf16 %v7648_v33  ;;  %v973_v21 = vld [vmem:[#allocation2 + $0x44] sm:$0xff] }
 0x1e8   : > { %v8187_v49 = vpop.permute.xlu0 %5891  ;;  %v2435_v47 = vsel %vm2432_vm11, %v2402_v3, %v5703_v61  ;;  %v2436_v34 = vsel %vm2432_vm11, %v2403_v9, %v5704_v59  ;;  %v2312_v39 = vsel %vm2300_vm7, %v2279_v22, %v5684_v62  ;;  %v5473_v22 = vunpack.i.l.bf16 %v7700_v43 }
 0x1e9   : > { %v5902_v41 = vpop.permute.xlu1 %5901  ;;  %v5907_v15 = vpop.permute.xlu2 %5906  ;;  %v2466_v32 = vpack.c.bf16 %v2436_v34, %v2435_v47  ;;  %v2311_v51 = vsel %vm2300_vm7, %v2278_v42, %v5683_v26  ;;  %v2345_v61 = vsel %vm2333_vm8, %v2312_v39, %v5689_v11  ;;  %v5474_v42 = vunpack.i.h.bf16 %v7700_v43  ;;  %v6851_v47 = vld [vmem:[#allocation2 + $0x4c] sm:$0xff] }
 0x1ea   : > { %v5904_v17 = vunpack.i.h.bf16 %v5902_v41  ;;  %v5903_v29 = vunpack.i.l.bf16 %v5902_v41  ;;  %v2344_v59 = vsel %vm2333_vm8, %v2311_v51, %v5688_v38  ;;  %v5909_v13 = vunpack.i.h.bf16 %v5907_v15 }
 0x1eb   : > { %5312 = vmatmul.msk.bf16.gmra.mxu0 %vm2505_vm12, %v2466_v32  ;;  %v5908_v54 = vunpack.i.l.bf16 %v5907_v15  ;;  %v2206_v41 = vsel %vm644_vm1, %v973_v21, %v5453_v37  ;;  %v5744_v0 = vunpack.i.h.bf16 %v7951_v50 }
 0x1ec   : > { %v2377_v57 = vsel %vm2366_vm9, %v2344_v59, %v5903_v29  ;;  %v2378_v19 = vsel %vm2366_vm9, %v2345_v61, %v5904_v17  ;;  %v2239_v15 = vsel %vm2234_vm5, %v2206_v41, %v5473_v22  ;;  %v5734_v59 = vunpack.i.h.bf16 %v7953_v36 }
 0x1ed   : > { %v2410_v6 = vsel %vm2399_vm10, %v2377_v57, %v5908_v54  ;;  %v5733_v61 = vunpack.i.l.bf16 %v7953_v36  ;;  %v5739_v54 = vunpack.i.h.bf16 %v7906_v52  ;;  %v5738_v57 = vunpack.i.l.bf16 %v7906_v52 }
 0x1ee   : > { %6096 = vrot.lane.b32.xlu0 %v8115_v44, %s7029_s20  ;;  %v2411_v44 = vsel %vm2399_vm10, %v2378_v19, %v5909_v13 }
 0x1ef   : > { %6126 = vrot.lane.b32.xlu1 %v6125_v24, %s7029_s20  ;;  %6106 = vrot.lane.b32.xlu2 %v6090_v30, %s7031_s23  ;;  %v5454_v30 = vunpack.i.h.bf16 %v7648_v33 }
 0x1f0   : > { %v5912_v46 = vpop.permute.xlu0 %5911 }
 0x1f1   : > { %v8206_v60 = vpop.permute.xlu1 %5921  ;;  %v5914_v18 = vunpack.i.h.bf16 %v5912_v46  ;;  %v5913_v8 = vunpack.i.l.bf16 %v5912_v46  ;;  %v5932_v4 = vpop.permute.xlu2 %5931  ;;  %v2207_v34 = vsel %vm644_vm1, %v6851_v47, %v5454_v30  ;;  %v5743_v46 = vunpack.i.l.bf16 %v7951_v50 }
 0x1f2   : > { %v2240_v33 = vsel %vm2234_vm5, %v2207_v34, %v5474_v42  ;;  %v5934_v43 = vunpack.i.h.bf16 %v5932_v4  ;;  %v5933_v17 = vunpack.i.l.bf16 %v5932_v4  ;;  %v5924_v21 = vunpack.i.h.bf16 %v8206_v60 }
 0x1f3   : > { %v2443_v12 = vsel %vm2432_vm11, %v2410_v6, %v5913_v8  ;;  %v2444_v31 = vsel %vm2432_vm11, %v2411_v44, %v5914_v18  ;;  %v5719_v47 = vunpack.i.h.bf16 %v7895_v28  ;;  %v5718_v34 = vunpack.i.l.bf16 %v7895_v28 }
 0x1f4   : > { %v2470_v40 = vpack.c.bf16 %v2444_v31, %v2443_v12  ;;  %v5728_v28 = vunpack.i.l.bf16 %v7939_v48 }
 0x1f6   : > { %6116 = vrot.lane.b32.xlu0 %v6115_v27, %s7032_s29  ;;  %5316 = vmatmul.msk.bf16.gmra.mxu3 %vm2505_vm12, %v2470_v40 }
 0x1f7   : > { %6111 = vrot.lane.b32.xlu2 %v6125_v24, %s7034_s18 }
 0x1f8   : > { %v5917_v3 = vpop.permute.xlu0 %5916 }
 0x1f9   : > { %v5927_v9 = vpop.permute.xlu1 %5926  ;;  %v8217_v1 = vpop.permute.xlu2 %5941  ;;  %v5919_v31 = vunpack.i.h.bf16 %v5917_v3  ;;  %v5918_v40 = vunpack.i.l.bf16 %v5917_v3 }
 0x1fa   : > { %v5929_v62 = vunpack.i.h.bf16 %v5927_v9  ;;  %v5928_v26 = vunpack.i.l.bf16 %v5927_v9  ;;  %v5923_v9 = vunpack.i.l.bf16 %v8206_v60  ;;  %v5724_v60 = vunpack.i.h.bf16 %v7937_v10 }
 0x1fb   : > { %v2215_v50 = vsel %vm644_vm1, %v7889_v45, %v5919_v31  ;;  %v2214_v37 = vsel %vm644_vm1, %v7908_v16, %v5918_v40 }
 0x1fc   : > { %v2273_v32 = vsel %vm2267_vm6, %v2240_v33, %v5929_v62  ;;  %v2272_v24 = vsel %vm2267_vm6, %v2239_v15, %v5928_v26  ;;  %v2247_v42 = vsel %vm2234_vm5, %v2214_v37, %v5923_v9  ;;  %v2248_v22 = vsel %vm2234_vm5, %v2215_v50, %v5924_v21  ;;  %v2947_v50 = vld [vmem:[#allocation2 + $0x2b4] sm:$0xff] }
 0x1fd   : > { %v2306_v13 = vsel %vm2300_vm7, %v2273_v32, %v5934_v43  ;;  %v2280_v45 = vsel %vm2267_vm6, %v2247_v42, %v5718_v34  ;;  %v2281_v16 = vsel %vm2267_vm6, %v2248_v22, %v5719_v47  ;;  %v5723_v26 = vunpack.i.l.bf16 %v7937_v10  ;;  %v6852_v42 = vld [vmem:[#allocation2 + $0xe4] sm:$0xff]  ;;  %v6853_v47 = vld [vmem:[#allocation2 + $0xec] sm:$0xff] }
 0x1fe   : > { %6141 = vrot.lane.b32.xlu0 %v8159_v55, %s7031_s23  ;;  %v2305_v55 = vsel %vm2300_vm7, %v2272_v24, %v5933_v17  ;;  %v2314_v15 = vsel %vm2300_vm7, %v2281_v16, %v5724_v60  ;;  %v5729_v43 = vunpack.i.h.bf16 %v7939_v48  ;;  %v2926_v17 = vld [vmem:[#allocation2 + $0x288] sm:$0xff]  ;;  %v5604_v21 = vunpack.i.h.bf16 %v7821_v7  ;;  %v2933_v60 = vld [vmem:[#allocation2 + $0x2f0] sm:$0xff] }
 0x1ff   : > { %6136 = vrot.lane.b32.xlu2 %v6115_v27, %s7030_s26  ;;  %v2313_v33 = vsel %vm2300_vm7, %v2280_v45, %v5723_v26  ;;  %v5603_v9 = vunpack.i.l.bf16 %v7821_v7  ;;  %v2932_v16 = vld [vmem:[#allocation2 + $0x2e8] sm:$0xff]  ;;  %v2949_v26 = vld [vmem:[#allocation2 + $0x2f4] sm:$0xff] }
 0x200   : > { %v5937_v29 = vpop.permute.xlu0 %5936  ;;  %v2347_v10 = vsel %vm2333_vm8, %v2314_v15, %v5729_v43  ;;  %v2217_v34 = vsel %vm644_vm1, %v6853_v47, %v5604_v21  ;;  %v5758_v15 = vunpack.i.l.bf16 %v7981_v56  ;;  %v6854_v43 = vld [vmem:[#allocation2 + $0x2ec] sm:$0xff] }
 0x201   : > { %v8230_v51 = vpop.permute.xlu1 %5956  ;;  %v5939_v39 = vunpack.i.h.bf16 %v5937_v29  ;;  %v5938_v11 = vunpack.i.l.bf16 %v5937_v29  ;;  %v8232_v38 = vpop.permute.xlu2 %5961  ;;  %v2927_v29 = vld [vmem:[#allocation2 + $0x290] sm:$0xff]  ;;  %v2216_v22 = vsel %vm644_vm1, %v6852_v42, %v5603_v9 }
 0x203   : > { %v2338_v19 = vsel %vm2333_vm8, %v2305_v55, %v5938_v11  ;;  %v2339_v53 = vsel %vm2333_vm8, %v2306_v13, %v5939_v39 }
 0x204   : > { %v2371_v18 = vsel %vm2366_vm9, %v2338_v19, %v5733_v61  ;;  %v2372_v36 = vsel %vm2366_vm9, %v2339_v53, %v5734_v59  ;;  %v6130_v59 = vpack.i.bf16 %v2927_v29, %v2926_v17  ;;  %v2346_v61 = vsel %vm2333_vm8, %v2313_v33, %v5728_v28  ;;  %v10145_v17 = vld [vmem:[#allocation35_spill] sm:$0xff] }
 0x205   : > { %v2404_v8 = vsel %vm2399_vm10, %v2371_v18, %v5738_v57  ;;  %v2405_v4 = vsel %vm2399_vm10, %v2372_v36, %v5739_v54  ;;  %v2946_v54 = vld [vmem:[#allocation2 + $0x294] sm:$0xff]  ;;  %v5759_v33 = vunpack.i.h.bf16 %v7981_v56  ;;  %v6160_v28 = vpack.i.bf16 %v2949_v26, %v6854_v43 }
 0x206   : > { %v2437_v27 = vsel %vm2432_vm11, %v2404_v8, %v5743_v46  ;;  %v2438_v52 = vsel %vm2432_vm11, %v2405_v4, %v5744_v0  ;;  %6131 = vrot.lane.b32.xlu1 %v6130_v59, %s7030_s26  ;;  %v5609_v29 = vunpack.i.h.bf16 %v10145_v17  ;;  %v2948_v59 = vld [vmem:[#allocation2 + $0x2d4] sm:$0xff]  ;;  %v5823_v43 = vunpack.i.l.bf16 %v8069_v35 }
 0x207   : > { %v2467_v6 = vpack.c.bf16 %v2438_v52, %v2437_v27  ;;  %3896 = vrot.lane.b32.xlu2 %v2946_v54, %s7031_s23  ;;  %v2928_v27 = vld [vmem:[#allocation2 + $0x2a8] sm:$0xff]  ;;  %v2929_v52 = vld [vmem:[#allocation2 + $0x2b0] sm:$0xff] }
 0x208   : > { %v8250_v44 = vpop.permute.xlu0 %5946  ;;  %v6145_v40 = vpack.i.bf16 %v2929_v52, %v2928_v27  ;;  %v2250_v56 = vsel %vm2234_vm5, %v2217_v34, %v5609_v29  ;;  %v6855_v29 = vld [vmem:[#allocation2 + $0x10c] sm:$0xff] }
 0x209   : > { %v5977_v12 = vpop.permute.xlu1 %5976  ;;  %v5967_v30 = vpop.permute.xlu2 %5966  ;;  %5313 = vmatmul.msk.bf16.gmra.mxu0 %vm2505_vm12, %v2467_v6  ;;  %v2930_v6 = vld [vmem:[#allocation2 + $0x2c8] sm:$0xff] }
 0x20a   : > { %v5969_v32 = vunpack.i.h.bf16 %v5967_v30  ;;  %v5968_v24 = vunpack.i.l.bf16 %v5967_v30  ;;  %v5979_v57 = vunpack.i.h.bf16 %v5977_v12  ;;  %v5978_v19 = vunpack.i.l.bf16 %v5977_v12  ;;  %v2931_v30 = vld [vmem:[#allocation2 + $0x2d0] sm:$0xff]  ;;  %6146 = vrot.lane.b32.xlu0 %v6145_v40, %s7030_s26 }
 0x20b   : > { %v6150_v37 = vpack.i.bf16 %v2931_v30, %v2930_v6 }
 0x20c   : > { %v2380_v53 = vsel %vm2366_vm9, %v2347_v10, %v5969_v32  ;;  %v2379_v0 = vsel %vm2366_vm9, %v2346_v61, %v5968_v24  ;;  %v6155_v24 = vpack.i.bf16 %v2933_v60, %v2932_v16  ;;  %v10149_v60 = vld [vmem:[#allocation42_spill] sm:$0xff] }
 0x20d   : > { %v5634_v26 = vunpack.i.h.bf16 %v10149_v60 }
 0x20e   : > { %6151 = vrot.lane.b32.xlu1 %v6150_v37, %s7030_s26 }
 0x20f   : > { %3900 = vrot.lane.b32.xlu2 %v2947_v50, %s7031_s23 }
 0x210   : > { %v8261_v41 = vpop.permute.xlu0 %5951 }
 0x211   : > { %v8263_v3 = vpop.permute.xlu1 %5986  ;;  %v8269_v62 = vpop.permute.xlu2 %5996 }
 0x212   : > { %6156 = vrot.lane.b32.xlu0 %v6155_v24, %s7030_s26  ;;  %v5824_v24 = vunpack.i.h.bf16 %v8069_v35 }
 0x216   : > { %3904 = vrot.lane.b32.xlu1 %v2948_v59, %s7031_s23  ;;  %v6856_v59 = vld [vmem:[#allocation2 + $0x104] sm:$0xff] }
 0x217   : > { %6161 = vrot.lane.b32.xlu2 %v6160_v28, %s7031_s23 }
 0x218   : > { %v5972_v39 = vpop.permute.xlu0 %5971 }
 0x219   : > { %v8277_v11 = vpop.permute.xlu1 %5991  ;;  %v5974_v55 = vunpack.i.h.bf16 %v5972_v39  ;;  %v5973_v13 = vunpack.i.l.bf16 %v5972_v39  ;;  %v8289_v8 = vpop.permute.xlu2 %6016  ;;  %v5608_v39 = vunpack.i.l.bf16 %v10145_v17  ;;  %v8345_v17 = vld [vmem:[%s10037_s8] ss:$0 sm:$0xff] }
 0x21a   : > { %v6019_v37 = vunpack.i.h.bf16 %v8289_v8  ;;  %v6018_v21 = vunpack.i.l.bf16 %v8289_v8 }
 0x21b   : > { %v2412_v48 = vsel %vm2399_vm10, %v2379_v0, %v5973_v13  ;;  %v2413_v46 = vsel %vm2399_vm10, %v2380_v53, %v5974_v55  ;;  %v2249_v61 = vsel %vm2234_vm5, %v2216_v22, %v5608_v39  ;;  %v2283_v55 = vsel %vm2267_vm6, %v2250_v56, %v5759_v33  ;;  %v10146_v13 = vld [vmem:[#allocation51_spill] sm:$0xff]  ;;  %v10147_v0 = vld [vmem:[#allocation49_spill] sm:$0xff]  ;;  %v10148_v22 = vld [vmem:[#allocation40_spill] sm:$0xff] }
 0x21c   : > { %v2445_v18 = vsel %vm2432_vm11, %v2412_v48, %v5978_v19  ;;  %v2446_v36 = vsel %vm2432_vm11, %v2413_v46, %v5979_v57  ;;  %v2282_v10 = vsel %vm2267_vm6, %v2249_v61, %v5758_v15  ;;  %v5764_v54 = vunpack.i.h.bf16 %v10146_v13 }
 0x21d   : > { %v2471_v4 = vpack.c.bf16 %v2446_v36, %v2445_v18  ;;  %v5763_v57 = vunpack.i.l.bf16 %v10146_v13  ;;  %v5769_v48 = vunpack.i.h.bf16 %v10147_v0  ;;  %v5768_v46 = vunpack.i.l.bf16 %v10147_v0 }
 0x21e   : > { %v2316_v53 = vsel %vm2300_vm7, %v2283_v55, %v5764_v54  ;;  %v5629_v47 = vunpack.i.h.bf16 %v10148_v22  ;;  %v5628_v34 = vunpack.i.l.bf16 %v10148_v22  ;;  %v5633_v33 = vunpack.i.l.bf16 %v10149_v60 }
 0x21f   : > { %5317 = vmatmul.msk.bf16.gmra.mxu3 %vm2505_vm12, %v2471_v4  ;;  %v2315_v19 = vsel %vm2300_vm7, %v2282_v10, %v5763_v57  ;;  %v2349_v50 = vsel %vm2333_vm8, %v2316_v53, %v5769_v48  ;;  %v5829_v13 = vunpack.i.h.bf16 %v8041_v63  ;;  %v5833_v53 = vunpack.i.l.bf16 %v8088_v58 }
 0x220   : > { %v8292_v12 = vpop.permute.xlu0 %5981  ;;  %v2348_v30 = vsel %vm2333_vm8, %v2315_v19, %v5768_v46  ;;  %v2219_v39 = vsel %vm644_vm1, %v6855_v29, %v5629_v47  ;;  %v2218_v61 = vsel %vm644_vm1, %v6856_v59, %v5628_v34  ;;  %v5834_v19 = vunpack.i.h.bf16 %v8088_v58 }
 0x221   : > { %v6012_v31 = vpop.permute.xlu1 %6011  ;;  %v8301_v45 = vpop.permute.xlu2 %6021  ;;  %v2251_v35 = vsel %vm2234_vm5, %v2218_v61, %v5633_v33  ;;  %v2252_v55 = vsel %vm2234_vm5, %v2219_v39, %v5634_v26  ;;  %v5828_v48 = vunpack.i.l.bf16 %v8041_v63 }
 0x222   : > { %v6014_v6 = vunpack.i.h.bf16 %v6012_v31  ;;  %v6013_v40 = vunpack.i.l.bf16 %v6012_v31  ;;  %v2285_v54 = vsel %vm2267_vm6, %v2252_v55, %v5824_v24  ;;  %v2284_v57 = vsel %vm2267_vm6, %v2251_v35, %v5823_v43  ;;  %v10151_v35 = vld [vmem:[#allocation43_spill] sm:$0xff] }
 0x223   : > { %v5674_v55 = vunpack.i.h.bf16 %v10151_v35 }
 0x228   : > { %v8305_v32 = vpop.permute.xlu0 %6001 }
 0x229   : > { %v8307_v7 = vpop.permute.xlu1 %6031  ;;  %v8324_v4 = vpop.permute.xlu2 %6041 }
 0x230   : > { %v6007_v18 = vpop.permute.xlu0 %6006 }
 0x231   : > { %v6037_v36 = vpop.permute.xlu1 %6036  ;;  %v6009_v27 = vunpack.i.h.bf16 %v6007_v18  ;;  %v6008_v52 = vunpack.i.l.bf16 %v6007_v18 }
 0x232   : > { %v6039_v46 = vunpack.i.h.bf16 %v6037_v36  ;;  %v6038_v18 = vunpack.i.l.bf16 %v6037_v36  ;;  %v6044_v36 = vunpack.i.h.bf16 %v8324_v4 }
 0x233   : > { %v2382_v9 = vsel %vm2366_vm9, %v2349_v50, %v6009_v27  ;;  %v2381_v42 = vsel %vm2366_vm9, %v2348_v30, %v6008_v52  ;;  %v8362_v27 = vpop.permute.xlu2 %6061 }
 0x234   : > { %v2414_v16 = vsel %vm2399_vm10, %v2381_v42, %v6013_v40  ;;  %v2415_v31 = vsel %vm2399_vm10, %v2382_v9, %v6014_v6  ;;  %v2317_v6 = vsel %vm2300_vm7, %v2284_v57, %v5828_v48  ;;  %v2318_v40 = vsel %vm2300_vm7, %v2285_v54, %v5829_v13  ;;  %v6857_v57 = vld [vmem:[#allocation2 + $0x12c] sm:$0xff] }
 0x235   : > { %v2447_v15 = vsel %vm2432_vm11, %v2414_v16, %v6018_v21  ;;  %v2448_v8 = vsel %vm2432_vm11, %v2415_v31, %v6019_v37  ;;  %v2350_v50 = vsel %vm2333_vm8, %v2317_v6, %v5833_v53  ;;  %v2351_v37 = vsel %vm2333_vm8, %v2318_v40, %v5834_v19  ;;  %v6858_v53 = vld [vmem:[#allocation2 + $0x124] sm:$0xff] }
 0x236   : > { %v2472_v28 = vpack.c.bf16 %v2448_v8, %v2447_v15  ;;  %v2383_v58 = vsel %vm2366_vm9, %v2350_v50, %v6038_v18  ;;  %v2384_v21 = vsel %vm2366_vm9, %v2351_v37, %v6039_v46  ;;  %v6043_v9 = vunpack.i.l.bf16 %v8324_v4  ;;  %v10150_v4 = vld [vmem:[#allocation45_spill] sm:$0xff] }
 0x237   : > { %v2417_v33 = vsel %vm2399_vm10, %v2384_v21, %v6044_v36  ;;  %v5669_v43 = vunpack.i.h.bf16 %v10150_v4  ;;  %v5889_v48 = vunpack.i.h.bf16 %v8154_v2  ;;  %v5888_v46 = vunpack.i.l.bf16 %v8154_v2 }
 0x238   : > { %v8349_v56 = vpop.permute.xlu0 %6026  ;;  %5318 = vmatmul.msk.bf16.gmra.mxu3 %vm2505_vm12, %v2472_v28  ;;  %v2416_v26 = vsel %vm2399_vm10, %v2383_v58, %v6043_v9  ;;  %v5668_v28 = vunpack.i.l.bf16 %v10150_v4  ;;  %v5673_v18 = vunpack.i.l.bf16 %v10151_v35  ;;  %v5893_v6 = vunpack.i.l.bf16 %v8187_v49 }
 0x239   : > { %v8351_v10 = vpop.permute.xlu1 %6056  ;;  %v2221_v19 = vsel %vm644_vm1, %v6857_v57, %v5669_v43 }
 0x23a   : > { %v2254_v37 = vsel %vm2234_vm5, %v2221_v19, %v5674_v55 }
 0x23b   : > { %v2581_v0 = vpop.f32.mrf.mxu3  ;;  %v6067_v29 = vpop.permute.xlu2 %6066  ;;  %v2287_v58 = vsel %vm2267_vm6, %v2254_v37, %v5889_v48  ;;  %v5954_v37 = vunpack.i.h.bf16 %v8261_v41 }
 0x23c   : > { %v2582_v52 = vadd.f32 %v8345_v17, %v2581_v0  ;;  %v2220_v0 = vsel %vm644_vm1, %v6858_v53, %v5668_v28  ;;  %v6069_v9 = vunpack.i.h.bf16 %v6067_v29 }
 0x23d   : > { %v2253_v50 = vsel %vm2234_vm5, %v2220_v0, %v5673_v18 }
 0x23e   : > { %v2652_v30 = vmax.f32 %v2582_v52, 0.0  ;;  %v5894_v52 = vunpack.i.h.bf16 %v8187_v49  ;;  %v2286_v21 = vsel %vm2267_vm6, %v2253_v50, %v5888_v46  ;;  %v6068_v49 = vunpack.i.l.bf16 %v6067_v29  ;;  %v6859_v46 = vld [vmem:[#allocation2 + $0x14c] sm:$0xff] }
 0x23f   : > { %v2566_v63 = vpop.f32.mrf.mxu0 }
 0x240   : > { %2684 = vst.msk [vmem:[#allocation2 + $0xe8] sm:$0xff] %vm644_vm1, %v2652_v30  ;;  %v2567_v42 = vadd.f32 %v8345_v17, %v2566_v63  ;;  %v6047_v22 = vpop.permute.xlu0 %6046  ;;  %v2319_v63 = vsel %vm2300_vm7, %v2286_v21, %v5893_v6  ;;  %v2320_v36 = vsel %vm2300_vm7, %v2287_v58, %v5894_v52  ;;  %v5953_v58 = vunpack.i.l.bf16 %v8261_v41 }
 0x241   : > { %v8375_v47 = vpop.permute.xlu1 %6076  ;;  %v6049_v34 = vunpack.i.h.bf16 %v6047_v22  ;;  %v6048_v16 = vunpack.i.l.bf16 %v6047_v22 }
 0x242   : > { %v2646_v31 = vmax.f32 %v2567_v42, 0.0 }
 0x243   : > { %v2583_v60 = vpop.f32.mrf.mxu3  ;;  %v2449_v8 = vsel %vm2432_vm11, %v2416_v26, %v6048_v16  ;;  %v2450_v24 = vsel %vm2432_vm11, %v2417_v33, %v6049_v34  ;;  %v5899_v16 = vunpack.i.h.bf16 %v8152_v23 }
 0x244   : > { %v2584_v15 = vadd.f32 %v8345_v17, %v2583_v60  ;;  %2678 = vst.msk [vmem:[#allocation2 + $0x88] sm:$0xff] %vm644_vm1, %v2646_v31  ;;  %v2473_v59 = vpack.c.bf16 %v2450_v24, %v2449_v8  ;;  %v5898_v31 = vunpack.i.l.bf16 %v8152_v23  ;;  %v8409_v60 = vpop.permute.xlu2 %6086  ;;  %v6078_v8 = vunpack.i.l.bf16 %v8375_v47 }
 0x245   : > { %v2353_v43 = vsel %vm2333_vm8, %v2320_v36, %v5899_v16 }
 0x246   : > { %v2653_v39 = vmax.f32 %v2584_v15, 0.0  ;;  %v6079_v15 = vunpack.i.h.bf16 %v8375_v47  ;;  %v2352_v4 = vsel %vm2333_vm8, %v2319_v63, %v5898_v31  ;;  %v10153_v63 = vld [vmem:[#allocation44_spill] sm:$0xff] }
 0x247   : > { %v2568_v61 = vpop.f32.mrf.mxu0  ;;  %v2756_v2 = vld [vmem:[#allocation2 + $0xe8] sm:$0xff]  ;;  %v2385_v23 = vsel %vm2366_vm9, %v2352_v4, %v6068_v49  ;;  %v5714_v36 = vunpack.i.h.bf16 %v10153_v63 }
 0x248   : > { %2685 = vst.msk [vmem:[#allocation2 + $0xf0] sm:$0xff] %vm644_vm1, %v2653_v39  ;;  %v2569_v13 = vadd.f32 %v8345_v17, %v2568_v61  ;;  %v8388_v54 = vpop.permute.xlu0 %6051  ;;  %5319 = vmatmul.msk.bf16.gmra.mxu3 %vm2505_vm12, %v2473_v59  ;;  %v2386_v39 = vsel %vm2366_vm9, %v2353_v43, %v6069_v9  ;;  %v10152_v59 = vld [vmem:[#allocation47_spill] sm:$0xff]  ;;  %v2796_v48 = vld [vmem:[#allocation2 + $0xe4] sm:$0xff]  ;;  %v5713_v9 = vunpack.i.l.bf16 %v10153_v63  ;;  %v5994_v63 = vunpack.i.h.bf16 %v8277_v11 }
 0x249   : > { %v8398_v30 = vpop.permute.xlu1 %6081  ;;  %v5709_v61 = vunpack.i.h.bf16 %v10152_v59  ;;  %v5708_v55 = vunpack.i.l.bf16 %v10152_v59 }
 0x24a   : > { %v2647_v40 = vmax.f32 %v2569_v13, 0.0 }
 0x24b   : > { %v2223_v18 = vsel %vm644_vm1, %v6859_v46, %v5709_v61  ;;  %v2822_v6 = vld [vmem:[#allocation2 + $0x88] sm:$0xff] }
 0x24c   : > { %2679 = vst.msk [vmem:[#allocation2 + $0x90] sm:$0xff] %vm644_vm1, %v2647_v40  ;;  %v6860_v40 = vld [vmem:[#allocation2 + $0x144] sm:$0xff]  ;;  %v6107_v49 = vpop.permute.xlu2 %6106  ;;  %v2256_v41 = vsel %vm2234_vm5, %v2223_v18, %v5714_v36 }
 0x24d   : > { %v2222_v50 = vsel %vm644_vm1, %v6860_v40, %v5708_v55  ;;  %v10154_v55 = vld [vmem:[#allocation48_spill] sm:$0xff] }
 0x24f   : > { %v2757_v42 = vld [vmem:[#allocation2 + $0xf0] sm:$0xff] }
 0x250   : > { %v2725_v22 = vld [vmem:[#allocation2 + $0xec] sm:$0xff]  ;;  %v2781_v34 = vld [vmem:[#allocation2 + $0xf4] sm:$0xff]  ;;  %v6165_v26 = vpack.i.bf16 %v2757_v42, %v2756_v2  ;;  %v6072_v24 = vpop.permute.xlu0 %6071  ;;  %v2255_v42 = vsel %vm2234_vm5, %v2222_v50, %v5713_v9 }
 0x251   : > { %v6170_v33 = vpack.i.bf16 %v2781_v34, %v2725_v22  ;;  %v6074_v28 = vunpack.i.h.bf16 %v6072_v24  ;;  %v6073_v29 = vunpack.i.l.bf16 %v6072_v24  ;;  %v8424_v13 = vpop.permute.xlu1 %6101  ;;  %v6175_v52 = vpack.i.bf16 %v2725_v22, %v2796_v48 }
 0x252   : > { %6166 = vrot.lane.b32.xlu0 %v6165_v26, %s7026_s16  ;;  %6181 = vrot.lane.b32.xlu2 %v6165_v26, %s7032_s29  ;;  %v2289_v34 = vsel %vm2267_vm6, %v2256_v41, %v5954_v37  ;;  %v2288_v16 = vsel %vm2267_vm6, %v2255_v42, %v5953_v58  ;;  %v6104_v59 = vunpack.i.h.bf16 %v8424_v13  ;;  %v6103_v61 = vunpack.i.l.bf16 %v8424_v13 }
 0x253   : > { %6171 = vrot.lane.b32.xlu1 %v6170_v33, %s7027_s22  ;;  %v2418_v47 = vsel %vm2399_vm10, %v2385_v23, %v6073_v29  ;;  %v2419_v35 = vsel %vm2399_vm10, %v2386_v39, %v6074_v28  ;;  %v2823_v0 = vld [vmem:[#allocation2 + $0x90] sm:$0xff]  ;;  %v5964_v23 = vunpack.i.h.bf16 %v8232_v38  ;;  %v5963_v39 = vunpack.i.l.bf16 %v8232_v38 }
 0x254   : > { %v2451_v57 = vsel %vm2432_vm11, %v2418_v47, %v6078_v8  ;;  %v2452_v19 = vsel %vm2432_vm11, %v2419_v35, %v6079_v15  ;;  %v6205_v2 = vpack.i.bf16 %v2823_v0, %v2822_v6  ;;  %v2719_v26 = vld [vmem:[#allocation2 + $0x8c] sm:$0xff]  ;;  %v2778_v15 = vld [vmem:[#allocation2 + $0x94] sm:$0xff]  ;;  %v5959_v8 = vunpack.i.h.bf16 %v8230_v51  ;;  %v8462_v13 = vpop.permute.xlu2 %6111 }
 0x255   : > { %v2474_v53 = vpack.c.bf16 %v2452_v19, %v2451_v57  ;;  %v6195_v29 = vpack.i.bf16 %v2778_v15, %v2719_v26  ;;  %v5749_v57 = vunpack.i.h.bf16 %v10154_v55  ;;  %v5748_v19 = vunpack.i.l.bf16 %v10154_v55  ;;  %v10155_v6 = vld [vmem:[#allocation50_spill] sm:$0xff]  ;;  %v6862_v15 = vld [vmem:[#allocation2 + $0x164] sm:$0xff] }
 0x256   : > { %v2322_v28 = vsel %vm2300_vm7, %v2289_v34, %v5959_v8  ;;  %v6109_v0 = vunpack.i.h.bf16 %v6107_v49  ;;  %v6108_v48 = vunpack.i.l.bf16 %v6107_v49  ;;  %v5754_v40 = vunpack.i.h.bf16 %v10155_v6  ;;  %v6861_v34 = vld [vmem:[#allocation2 + $0x16c] sm:$0xff] }
 0x257   : > { %v2355_v38 = vsel %vm2333_vm8, %v2322_v28, %v5964_v23  ;;  %v5993_v49 = vunpack.i.l.bf16 %v8277_v11  ;;  %v2224_v8 = vsel %vm644_vm1, %v6862_v15, %v5748_v19  ;;  %v5814_v19 = vunpack.i.h.bf16 %v8067_v25 }
 0x258   : > { %v8432_v21 = vpop.permute.xlu0 %6091  ;;  %5320 = vmatmul.msk.bf16.gmra.mxu3 %vm2505_vm12, %v2474_v53  ;;  %v6023_v15 = vunpack.i.l.bf16 %v8301_v45 }
 0x259   : > { %v8447_v24 = vpop.permute.xlu1 %6121 }
 0x25a   : > { %6186 = vrot.lane.b32.xlu0 %v6170_v33, %s7033_s15  ;;  %6206 = vrot.lane.b32.xlu2 %v6205_v2, %s7032_s29  ;;  %v5958_v33 = vunpack.i.l.bf16 %v8230_v51 }
 0x25b   : > { %6176 = vrot.lane.b32.xlu1 %v6175_v52, %s7034_s18  ;;  %v2586_v22 = vpop.f32.mrf.mxu3 }
 0x25c   : > { %v2587_v31 = vadd.f32 %v8345_v17, %v2586_v22  ;;  %v2321_v43 = vsel %vm2300_vm7, %v2288_v16, %v5958_v33  ;;  %v2790_v22 = vld [vmem:[#allocation2 + $0x84] sm:$0xff]  ;;  %v2225_v16 = vsel %vm644_vm1, %v6861_v34, %v5749_v57  ;;  %v6137_v57 = vpop.permute.xlu2 %6136 }
 0x25d   : > { %v2354_v53 = vsel %vm2333_vm8, %v2321_v43, %v5963_v39  ;;  %v2258_v33 = vsel %vm2234_vm5, %v2225_v16, %v5754_v40  ;;  %v6004_v39 = vunpack.i.h.bf16 %v8305_v32 }
 0x25e   : > { %v2654_v4 = vmax.f32 %v2587_v31, 0.0  ;;  %v6200_v31 = vpack.i.bf16 %v2719_v26, %v2790_v22  ;;  %v2291_v28 = vsel %vm2267_vm6, %v2258_v33, %v5994_v63  ;;  %v6024_v22 = vunpack.i.h.bf16 %v8301_v45 }
 0x260   : > { %2686 = vst.msk [vmem:[#allocation2 + $0x108] sm:$0xff] %vm644_vm1, %v2654_v4  ;;  %v6097_v47 = vpop.permute.xlu0 %6096 }
 0x261   : > { %v6099_v51 = vunpack.i.h.bf16 %v6097_v47  ;;  %v6098_v35 = vunpack.i.l.bf16 %v6097_v47  ;;  %v6127_v4 = vpop.permute.xlu1 %6126  ;;  %v5999_v47 = vunpack.i.h.bf16 %v8269_v62 }
 0x262   : > { %6191 = vrot.lane.b32.xlu0 %v6205_v2, %s7026_s16  ;;  %v5753_v2 = vunpack.i.l.bf16 %v10155_v6  ;;  %v6128_v55 = vunpack.i.l.bf16 %v6127_v4 }
 0x263   : > { %6196 = vrot.lane.b32.xlu1 %v6195_v29, %s7027_s22  ;;  %v2387_v46 = vsel %vm2366_vm9, %v2354_v53, %v6098_v35  ;;  %v2388_v18 = vsel %vm2366_vm9, %v2355_v38, %v6099_v51  ;;  %v2588_v52 = vpop.f32.mrf.mxu3  ;;  %v5998_v51 = vunpack.i.l.bf16 %v8269_v62  ;;  %v6129_v35 = vunpack.i.h.bf16 %v6127_v4 }
 0x264   : > { %v2589_v50 = vadd.f32 %v8345_v17, %v2588_v52  ;;  %v2420_v37 = vsel %vm2399_vm10, %v2387_v46, %v6103_v61  ;;  %v2421_v58 = vsel %vm2399_vm10, %v2388_v18, %v6104_v59  ;;  %v2257_v11 = vsel %vm2234_vm5, %v2224_v8, %v5753_v2  ;;  %v6863_v2 = vld [vmem:[#allocation2 + $0x18c] sm:$0xff] }
 0x265   : > { %v2453_v36 = vsel %vm2432_vm11, %v2420_v37, %v6108_v48  ;;  %v2454_v9 = vsel %vm2432_vm11, %v2421_v58, %v6109_v0  ;;  %v2290_v26 = vsel %vm2267_vm6, %v2257_v11, %v5993_v49  ;;  %v6003_v59 = vunpack.i.l.bf16 %v8305_v32 }
 0x266   : > { %v2655_v42 = vmax.f32 %v2589_v50, 0.0  ;;  %v2475_v41 = vpack.c.bf16 %v2454_v9, %v2453_v36  ;;  %v5813_v53 = vunpack.i.l.bf16 %v8067_v25  ;;  %v2323_v38 = vsel %vm2300_vm7, %v2290_v26, %v5998_v51 }
 0x267   : > { %v2324_v0 = vsel %vm2300_vm7, %v2291_v28, %v5999_v47  ;;  %v2356_v32 = vsel %vm2333_vm8, %v2323_v38, %v6003_v59  ;;  %v6139_v46 = vunpack.i.h.bf16 %v6137_v57  ;;  %v6138_v18 = vunpack.i.l.bf16 %v6137_v57  ;;  %v2830_v62 = vld [vmem:[#allocation2 + $0x108] sm:$0xff] }
 0x268   : > { %2687 = vst.msk [vmem:[#allocation2 + $0x110] sm:$0xff] %vm644_vm1, %v2655_v42  ;;  %v8479_v43 = vpop.permute.xlu0 %6116  ;;  %5321 = vmatmul.msk.bf16.gmra.mxu3 %vm2505_vm12, %v2475_v41  ;;  %v2571_v23 = vpop.f32.mrf.mxu0  ;;  %v2357_v48 = vsel %vm2333_vm8, %v2324_v0, %v6004_v39  ;;  %v5819_v52 = vunpack.i.h.bf16 %v8039_v14  ;;  %v2389_v6 = vsel %vm2366_vm9, %v2356_v32, %v6128_v55  ;;  %v5818_v58 = vunpack.i.l.bf16 %v8039_v14  ;;  %v6864_v42 = vld [vmem:[#allocation2 + $0x184] sm:$0xff] }
 0x269   : > { %v2572_v61 = vadd.f32 %v8345_v17, %v2571_v23  ;;  %v2390_v40 = vsel %vm2366_vm9, %v2357_v48, %v6129_v35  ;;  %v2227_v63 = vsel %vm644_vm1, %v6863_v2, %v5814_v19  ;;  %v2226_v41 = vsel %vm644_vm1, %v6864_v42, %v5813_v53  ;;  %v2798_v57 = vld [vmem:[#allocation2 + $0x104] sm:$0xff] }
 0x26a   : > { %6211 = vrot.lane.b32.xlu0 %v6195_v29, %s7033_s15  ;;  %v2422_v8 = vsel %vm2399_vm10, %v2389_v6, %v6138_v18  ;;  %v2423_v33 = vsel %vm2399_vm10, %v2390_v40, %v6139_v46  ;;  %v6029_v4 = vunpack.i.h.bf16 %v8349_v56  ;;  %v6028_v11 = vunpack.i.l.bf16 %v8349_v56 }
 0x26b   : > { %6201 = vrot.lane.b32.xlu1 %v6200_v31, %s7034_s18  ;;  %v2648_v29 = vmax.f32 %v2572_v61, 0.0  ;;  %v2260_v23 = vsel %vm2234_vm5, %v2227_v63, %v5819_v52  ;;  %v2259_v39 = vsel %vm2234_vm5, %v2226_v41, %v5818_v58  ;;  %v6034_v47 = vunpack.i.h.bf16 %v8307_v7  ;;  %v10157_v52 = vld [vmem:[#allocation24_spill] sm:$0xff] }
 0x26c   : > { %v2293_v59 = vsel %vm2267_vm6, %v2260_v23, %v6024_v22  ;;  %v2292_v61 = vsel %vm2267_vm6, %v2259_v39, %v6023_v15  ;;  %v6033_v51 = vunpack.i.l.bf16 %v8307_v7  ;;  %v10156_v7 = vld [vmem:[#allocation16_spill] sm:$0xff]  ;;  %v5879_v46 = vunpack.i.h.bf16 %v8129_v20 }
 0x26d   : > { %2680 = vst.msk [vmem:[#allocation2 + $0xa8] sm:$0xff] %vm644_vm1, %v2648_v29  ;;  %v2325_v35 = vsel %vm2300_vm7, %v2292_v61, %v6028_v11  ;;  %v2326_v55 = vsel %vm2300_vm7, %v2293_v59, %v6029_v4  ;;  %v5484_v32 = vunpack.i.h.bf16 %v10156_v7  ;;  %v5483_v48 = vunpack.i.l.bf16 %v10156_v7  ;;  %v6866_v41 = vld [vmem:[#allocation2 + $0x1a4] sm:$0xff] }
 0x26e   : > { %v2358_v53 = vsel %vm2333_vm8, %v2325_v35, %v6033_v51  ;;  %v2359_v38 = vsel %vm2333_vm8, %v2326_v55, %v6034_v47  ;;  %v5878_v18 = vunpack.i.l.bf16 %v8129_v20  ;;  %v5504_v6 = vunpack.i.h.bf16 %v10157_v52  ;;  %v10159_v7 = vld [vmem:[#allocation21_spill] sm:$0xff] }
 0x26f   : > { %v2831_v25 = vld [vmem:[#allocation2 + $0x110] sm:$0xff]  ;;  %v2392_v58 = vsel %vm2366_vm9, %v2359_v38, %v5484_v32  ;;  %v5503_v2 = vunpack.i.l.bf16 %v10157_v52  ;;  %v5884_v63 = vunpack.i.h.bf16 %v8132_v5  ;;  %v5489_v32 = vunpack.i.h.bf16 %v10159_v7 }
 0x270   : > { %v2727_v50 = vld [vmem:[#allocation2 + $0x10c] sm:$0xff]  ;;  %v8502_v37 = vld [vmem:[#allocation2 + $0x114] sm:$0xff]  ;;  %v6142_v36 = vpop.permute.xlu0 %6141  ;;  %v8506_v9 = vpack.i.bf16 %v2831_v25, %v2830_v62  ;;  %v2573_v31 = vpop.f32.mrf.mxu0  ;;  %v2228_v22 = vsel %vm644_vm1, %v6866_v41, %v5878_v18  ;;  %v2425_v15 = vsel %vm2399_vm10, %v2392_v58, %v5504_v6  ;;  %v10161_v58 = vld [vmem:[#allocation20_spill] sm:$0xff] }
 0x271   : > { %v6220_v49 = vpack.i.bf16 %v8502_v37, %v2727_v50  ;;  %v6144_v34 = vunpack.i.h.bf16 %v6142_v36  ;;  %v6143_v16 = vunpack.i.l.bf16 %v6142_v36  ;;  %v2574_v14 = vadd.f32 %v8345_v17, %v2573_v31  ;;  %v10160_v52 = vld [vmem:[#allocation22_spill] sm:$0xff] }
 0x272   : > { %6231 = vrot.lane.b32.xlu0 %v8506_v9, %s7032_s29  ;;  %v6225_v29 = vpack.i.bf16 %v2727_v50, %v2798_v57  ;;  %v2391_v50 = vsel %vm2366_vm9, %v2358_v53, %v5483_v48  ;;  %v5883_v36 = vunpack.i.l.bf16 %v8132_v5  ;;  %v10158_v5 = vld [vmem:[#allocation25_spill] sm:$0xff]  ;;  %v6064_v57 = vunpack.i.h.bf16 %v8362_v27 }
 0x273   : > { %6216 = vrot.lane.b32.xlu1 %v8506_v9, %s7026_s16  ;;  %6221 = vrot.lane.b32.xlu2 %v6220_v49, %s7027_s22  ;;  %v2455_v45 = vsel %vm2432_vm11, %v2422_v8, %v6143_v16  ;;  %v2456_v28 = vsel %vm2432_vm11, %v2423_v33, %v6144_v34  ;;  %v2649_v26 = vmax.f32 %v2574_v14, 0.0  ;;  %v6054_v34 = vunpack.i.h.bf16 %v8388_v54 }
 0x274   : > { %v2476_v56 = vpack.c.bf16 %v2456_v28, %v2455_v45  ;;  %v2824_v40 = vld [vmem:[#allocation2 + $0xa8] sm:$0xff]  ;;  %v6053_v16 = vunpack.i.l.bf16 %v8388_v54  ;;  %v2424_v31 = vsel %vm2399_vm10, %v2391_v50, %v5503_v2  ;;  %v5524_v14 = vunpack.i.h.bf16 %v10158_v5 }
 0x275   : > { %2681 = vst.msk [vmem:[#allocation2 + $0xb0] sm:$0xff] %vm644_vm1, %v2649_v26  ;;  %v5523_v8 = vunpack.i.l.bf16 %v10158_v5  ;;  %v2261_v11 = vsel %vm2234_vm5, %v2228_v22, %v5883_v36  ;;  %v6059_v54 = vunpack.i.h.bf16 %v8351_v10  ;;  %v6058_v28 = vunpack.i.l.bf16 %v8351_v10  ;;  %v2792_v41 = vld [vmem:[#allocation2 + $0xa4] sm:$0xff] }
 0x276   : > { %v2458_v26 = vsel %vm2432_vm11, %v2425_v15, %v5524_v14  ;;  %v2294_v39 = vsel %vm2267_vm6, %v2261_v11, %v6053_v16  ;;  %v5488_v48 = vunpack.i.l.bf16 %v10159_v7  ;;  %v5509_v6 = vunpack.i.h.bf16 %v10160_v52 }
 0x277   : > { %v2457_v23 = vsel %vm2432_vm11, %v2424_v31, %v5523_v8  ;;  %v2327_v10 = vsel %vm2300_vm7, %v2294_v39, %v6058_v28  ;;  %v5529_v2 = vunpack.i.h.bf16 %v10161_v58  ;;  %v5943_v36 = vunpack.i.l.bf16 %v8217_v1 }
 0x278   : > { %5322 = vmatmul.msk.bf16.gmra.mxu3 %vm2505_vm12, %v2476_v56  ;;  %v2477_v51 = vpack.c.bf16 %v2458_v26, %v2457_v23  ;;  %v5949_v16 = vunpack.i.h.bf16 %v8250_v44  ;;  %v6083_v31 = vunpack.i.l.bf16 %v8398_v30  ;;  %v6084_v14 = vunpack.i.h.bf16 %v8398_v30 }
 0x279   : > { %v2591_v19 = vpop.f32.mrf.mxu3  ;;  %v6088_v30 = vunpack.i.l.bf16 %v8409_v60  ;;  %v6089_v28 = vunpack.i.h.bf16 %v8409_v60  ;;  %v6093_v26 = vunpack.i.l.bf16 %v8432_v21  ;;  %v5984_v7 = vunpack.i.h.bf16 %v8292_v12 }
 0x27a   : > { %v2592_v0 = vadd.f32 %v8345_v17, %v2591_v19  ;;  %v6063_v19 = vunpack.i.l.bf16 %v8362_v27 }
 0x27b   : > { %6236 = vrot.lane.b32.xlu1 %v6220_v49, %s7033_s15  ;;  %6226 = vrot.lane.b32.xlu2 %v6225_v29, %s7034_s18  ;;  %v6865_v49 = vld [vmem:[#allocation2 + $0x1ac] sm:$0xff] }
 0x27c   : > { %v2656_v62 = vmax.f32 %v2592_v0, 0.0  ;;  %v2825_v25 = vld [vmem:[#allocation2 + $0xb0] sm:$0xff]  ;;  %v2229_v42 = vsel %vm644_vm1, %v6865_v49, %v5879_v46  ;;  %v2360_v38 = vsel %vm2333_vm8, %v2327_v10, %v6063_v19  ;;  %v5944_v49 = vunpack.i.h.bf16 %v8217_v1  ;;  %v6867_v1 = vld [vmem:[#allocation2 + $0x1c4] sm:$0xff] }
 0x27d   : > { %v6265_v20 = vpack.i.bf16 %v2825_v25, %v2824_v40  ;;  %v2262_v4 = vsel %vm2234_vm5, %v2229_v42, %v5884_v63  ;;  %v2721_v56 = vld [vmem:[#allocation2 + $0xac] sm:$0xff]  ;;  %v2779_v35 = vld [vmem:[#allocation2 + $0xb4] sm:$0xff]  ;;  %v2393_v18 = vsel %vm2366_vm9, %v2360_v38, %v5488_v48  ;;  %v5508_v40 = vunpack.i.l.bf16 %v10160_v52  ;;  %v8643_v48 = vpop.permute.xlu2 %3896 }
 0x27e   : > { %2688 = vst.msk [vmem:[#allocation2 + $0x128] sm:$0xff] %vm644_vm1, %v2656_v62  ;;  %v2295_v59 = vsel %vm2267_vm6, %v2262_v4, %v6054_v34  ;;  %v6255_v53 = vpack.i.bf16 %v2779_v35, %v2721_v56  ;;  %v5528_v63 = vunpack.i.l.bf16 %v10161_v58  ;;  %v5948_v42 = vunpack.i.l.bf16 %v8250_v44  ;;  %v6868_v44 = vld [vmem:[#allocation2 + $0x1cc] sm:$0xff] }
 0x27f   : > { %6266 = vrot.lane.b32.xlu0 %v6265_v20, %s7032_s29  ;;  %v2328_v55 = vsel %vm2300_vm7, %v2295_v59, %v6059_v54  ;;  %v2426_v22 = vsel %vm2399_vm10, %v2393_v18, %v5508_v40  ;;  %v6260_v5 = vpack.i.bf16 %v2721_v56, %v2792_v41  ;;  %v2230_v8 = vsel %vm644_vm1, %v6867_v1, %v5943_v36  ;;  %v10163_v38 = vld [vmem:[#allocation18_spill] sm:$0xff] }
 0x280   : > { %v2361_v0 = vsel %vm2333_vm8, %v2328_v55, %v6064_v57  ;;  %v2231_v11 = vsel %vm644_vm1, %v6868_v44, %v5944_v49  ;;  %v10162_v57 = vld [vmem:[#allocation19_spill] sm:$0xff]  ;;  %10164 = vst [vmem:[#allocation35_spill] sm:$0xff] %v8643_v48  ;;  %v6869_v58 = vld [vmem:[#allocation2 + $0x28c] sm:$0xff]  ;;  %v6113_v41 = vunpack.i.l.bf16 %v8462_v13  ;;  %v8671_v44 = vpop.permute.xlu1 %6131 }
 0x281   : > { %v2593_v33 = vpop.f32.mrf.mxu3  ;;  %v2394_v62 = vsel %vm2366_vm9, %v2361_v0, %v5489_v32  ;;  %v2264_v54 = vsel %vm2234_vm5, %v2231_v11, %v5949_v16  ;;  %v5493_v19 = vunpack.i.l.bf16 %v10162_v57  ;;  %v5513_v0 = vunpack.i.l.bf16 %v10163_v38 }
 0x282   : > { %v2594_v45 = vadd.f32 %v8345_v17, %v2593_v33  ;;  %v2427_v34 = vsel %vm2399_vm10, %v2394_v62, %v5509_v6  ;;  %v2459_v33 = vsel %vm2432_vm11, %v2426_v22, %v5528_v63  ;;  %v5983_v32 = vunpack.i.l.bf16 %v8292_v12  ;;  %v10165_v6 = vld [vmem:[#allocation30_spill] sm:$0xff] }
 0x283   : > { %6241 = vrot.lane.b32.xlu1 %v6225_v29, %s7029_s20  ;;  %6246 = vrot.lane.b32.xlu2 %v8506_v9, %s7030_s26  ;;  %v2460_v4 = vsel %vm2432_vm11, %v2427_v34, %v5529_v2  ;;  %v5514_v62 = vunpack.i.h.bf16 %v10163_v38  ;;  %v5534_v40 = vunpack.i.h.bf16 %v10165_v6  ;;  %v6870_v12 = vld [vmem:[#allocation2 + $0x1ec] sm:$0xff]  ;;  %v5989_v22 = vunpack.i.h.bf16 %v8263_v3  ;;  %v10170_v38 = vld [vmem:[#allocation28_spill] sm:$0xff] }
 0x284   : > { %v2657_v61 = vmax.f32 %v2594_v45, 0.0  ;;  %v2263_v45 = vsel %vm2234_vm5, %v2230_v8, %v5948_v42  ;;  %v2233_v36 = vsel %vm644_vm1, %v6870_v12, %v5984_v7  ;;  %v6114_v42 = vunpack.i.h.bf16 %v8462_v13 }
 0x285   : > { %v2296_v23 = vsel %vm2267_vm6, %v2263_v45, %v6083_v31  ;;  %v2800_v39 = vld [vmem:[#allocation2 + $0x124] sm:$0xff]  ;;  %v5988_v34 = vunpack.i.l.bf16 %v8263_v3  ;;  %v6119_v31 = vunpack.i.h.bf16 %v8479_v43  ;;  %v2266_v3 = vsel %vm2234_vm5, %v2233_v36, %v5989_v22 }
 0x286   : > { %2689 = vst.msk [vmem:[#allocation2 + $0x130] sm:$0xff] %vm644_vm1, %v2657_v61  ;;  %v2576_v47 = vpop.f32.mrf.mxu0  ;;  %v2297_v61 = vsel %vm2267_vm6, %v2264_v54, %v6084_v14  ;;  %v2832_v35 = vld [vmem:[#allocation2 + $0x128] sm:$0xff]  ;;  %v2329_v10 = vsel %vm2300_vm7, %v2296_v23, %v6088_v30  ;;  %v2299_v1 = vsel %vm2267_vm6, %v2266_v3, %v6114_v42  ;;  %v6123_v11 = vunpack.i.l.bf16 %v8447_v24 }
 0x287   : > { %v2577_v9 = vadd.f32 %v8345_v17, %v2576_v47  ;;  %v6094_v47 = vunpack.i.h.bf16 %v8432_v21  ;;  %v2330_v55 = vsel %vm2300_vm7, %v2297_v61, %v6089_v28  ;;  %v2332_v54 = vsel %vm2300_vm7, %v2299_v1, %v6119_v31  ;;  %v8679_v28 = vpop.permute.xlu2 %3900 }
 0x288   : > { %5323 = vmatmul.msk.bf16.gmra.mxu3 %vm2505_vm12, %v2477_v51  ;;  %v2478_v51 = vpack.c.bf16 %v2460_v4, %v2459_v33  ;;  %10166 = vst [vmem:[#allocation51_spill] sm:$0xff] %v8679_v28  ;;  %v5538_v7 = vunpack.i.l.bf16 %v10170_v38  ;;  %v10187_v28 = vld [vmem:[#allocation29_spill] sm:$0xff] }
 0x289   : > { %v2650_v29 = vmax.f32 %v2577_v9, 0.0  ;;  %v2362_v9 = vsel %vm2333_vm8, %v2329_v10, %v6093_v26  ;;  %v2363_v21 = vsel %vm2333_vm8, %v2330_v55, %v6094_v47 }
 0x28b   : > { %6251 = vrot.lane.b32.xlu1 %v6265_v20, %s7026_s16  ;;  %2682 = vst.msk [vmem:[#allocation2 + $0xc8] sm:$0xff] %vm644_vm1, %v2650_v29  ;;  %6256 = vrot.lane.b32.xlu2 %v6255_v53, %s7027_s22  ;;  %v5494_v29 = vunpack.i.h.bf16 %v10162_v57 }
 0x28d   : > { %v8585_v46 = vld [vmem:[#allocation2 + $0x12c] sm:$0xff]  ;;  %v8587_v27 = vld [vmem:[#allocation2 + $0x134] sm:$0xff]  ;;  %v2396_v18 = vsel %vm2366_vm9, %v2363_v21, %v5494_v29  ;;  %v8700_v29 = vpop.permute.xlu1 %6151 }
 0x28e   : > { %v2578_v25 = vpop.f32.mrf.mxu0  ;;  %v8595_v50 = vpack.i.bf16 %v8587_v27, %v8585_v46  ;;  %v2833_v59 = vld [vmem:[#allocation2 + $0x130] sm:$0xff]  ;;  %v8626_v56 = vpack.i.bf16 %v8585_v46, %v2800_v39  ;;  %v6315_v2 = vpack.i.bf16 %v6869_v58, %v8587_v27  ;;  %v2429_v63 = vsel %vm2399_vm10, %v2396_v18, %v5514_v62  ;;  %10169 = vst [vmem:[#allocation49_spill] sm:$0xff] %v8700_v29 }
 0x28f   : > { %v2579_v20 = vadd.f32 %v8345_v17, %v2578_v25  ;;  %v6290_v60 = vpack.i.bf16 %v2833_v59, %v2832_v35  ;;  %v5533_v25 = vunpack.i.l.bf16 %v10165_v6  ;;  %v2462_v13 = vsel %vm2432_vm11, %v2429_v63, %v5534_v40  ;;  %v8714_v6 = vpop.permute.xlu0 %6146 }
 0x290   : > { %6281 = vrot.lane.b32.xlu0 %v8595_v50, %s7027_s22  ;;  %10172 = vst [vmem:[#allocation42_spill] sm:$0xff] %v8714_v6 }
 0x291   : > { %v2651_v15 = vmax.f32 %v2579_v20, 0.0  ;;  %v6871_v20 = vld [vmem:[#allocation2 + $0x1e4] sm:$0xff] }
 0x292   : > { %v2232_v49 = vsel %vm644_vm1, %v6871_v20, %v5983_v32  ;;  %v2826_v23 = vld [vmem:[#allocation2 + $0xc8] sm:$0xff]  ;;  %v8707_v32 = vpop.permute.xlu2 %6161 }
 0x293   : > { %6271 = vrot.lane.b32.xlu1 %v6255_v53, %s7033_s15  ;;  %2683 = vst.msk [vmem:[#allocation2 + $0xd0] sm:$0xff] %vm644_vm1, %v2651_v15  ;;  %6261 = vrot.lane.b32.xlu2 %v6260_v5, %s7034_s18  ;;  %v2395_v53 = vsel %vm2366_vm9, %v2362_v9, %v5493_v19  ;;  %v6118_v15 = vunpack.i.l.bf16 %v8479_v43  ;;  %v2265_v14 = vsel %vm2234_vm5, %v2232_v49, %v5988_v34  ;;  %v6124_v43 = vunpack.i.h.bf16 %v8447_v24  ;;  %v10168_v9 = vld [vmem:[#allocation27_spill] sm:$0xff] }
 0x294   : > { %v2428_v52 = vsel %vm2399_vm10, %v2395_v53, %v5513_v0  ;;  %v2298_v8 = vsel %vm2267_vm6, %v2265_v14, %v6113_v41  ;;  %v5519_v57 = vunpack.i.h.bf16 %v10168_v9  ;;  %v5518_v19 = vunpack.i.l.bf16 %v10168_v9  ;;  %10171 = vst [vmem:[#allocation40_spill] sm:$0xff] %v8707_v32 }
 0x295   : > { %v2461_v27 = vsel %vm2432_vm11, %v2428_v52, %v5533_v25  ;;  %v2331_v30 = vsel %vm2300_vm7, %v2298_v8, %v6118_v15  ;;  %v2365_v39 = vsel %vm2333_vm8, %v2332_v54, %v6124_v43  ;;  %v5539_v0 = vunpack.i.h.bf16 %v10170_v38  ;;  %v8712_v52 = vld [vmem:[#allocation2 + $0xc4] sm:$0xff]  ;;  %v8724_v12 = vpop.permute.xlu1 %3904 }
 0x296   : > { %v2479_v45 = vpack.c.bf16 %v2462_v13, %v2461_v27  ;;  %v2364_v24 = vsel %vm2333_vm8, %v2331_v30, %v6123_v11  ;;  %10173 = vst [vmem:[#allocation45_spill] sm:$0xff] %v8724_v12 }
 0x297   : > { %v8734_v31 = vpop.permute.xlu0 %6156 }
 0x298   : > { %5324 = vmatmul.msk.bf16.gmra.mxu3 %vm2505_vm12, %v2478_v51  ;;  %6286 = vrot.lane.b32.xlu0 %v8626_v56, %s7034_s18  ;;  %10174 = vst [vmem:[#allocation43_spill] sm:$0xff] %v8734_v31 }
 0x29a   : > { %v2827_v4 = vld [vmem:[#allocation2 + $0xd0] sm:$0xff] }
 0x29b   : > { %6291 = vrot.lane.b32.xlu1 %v6290_v60, %s7032_s29  ;;  %6276 = vrot.lane.b32.xlu2 %v6290_v60, %s7026_s16  ;;  %v6335_v26 = vpack.i.bf16 %v2827_v4, %v2826_v23  ;;  %v8692_v51 = vld [vmem:[#allocation2 + $0xcc] sm:$0xff]  ;;  %v2780_v35 = vld [vmem:[#allocation2 + $0xd4] sm:$0xff] }
 0x29c   : > { %v6325_v21 = vpack.i.bf16 %v2780_v35, %v8692_v51  ;;  %v6330_v25 = vpack.i.bf16 %v8692_v51, %v8712_v52 }
 0x2a0   : > { %6306 = vrot.lane.b32.xlu0 %v6290_v60, %s7030_s26 }
 0x2a2   : > { %v2596_v16 = vpop.f32.mrf.mxu3 }
 0x2a3   : > { %6316 = vrot.lane.b32.xlu1 %v6315_v2, %s7031_s23  ;;  %v2597_v5 = vadd.f32 %v8345_v17, %v2596_v16  ;;  %6296 = vrot.lane.b32.xlu2 %v8595_v50, %s7033_s15  ;;  %v6310_v50 = vpack.i.bf16 %v8585_v46, %v8502_v37  ;;  %v10167_v37 = vld [vmem:[#allocation17_spill] sm:$0xff] }
 0x2a4   : > { %v5499_v46 = vunpack.i.h.bf16 %v10167_v37  ;;  %v5498_v61 = vunpack.i.l.bf16 %v10167_v37 }
 0x2a5   : > { %v2658_v33 = vmax.f32 %v2597_v5, 0.0 }
 0x2a6   : > { %v2397_v10 = vsel %vm2366_vm9, %v2364_v24, %v5498_v61  ;;  %v2398_v60 = vsel %vm2366_vm9, %v2365_v39, %v5499_v46 }
 0x2a7   : > { %2690 = vst.msk [vmem:[#allocation2 + $0x148] sm:$0xff] %vm644_vm1, %v2658_v33  ;;  %v2431_v53 = vsel %vm2399_vm10, %v2398_v60, %v5519_v57 }
 0x2a8   : > { %5325 = vmatmul.msk.bf16.gmra.mxu3 %vm2505_vm12, %v2479_v45  ;;  %6311 = vrot.lane.b32.xlu0 %v6310_v50, %s7031_s23  ;;  %v2464_v62 = vsel %vm2432_vm11, %v2431_v53, %v5539_v0  ;;  %v6872_v0 = vld [vmem:[#allocation2 + $0x2cc] sm:$0xff] }
 0x2aa   : > { %v2598_v59 = vpop.f32.mrf.mxu3 }
 0x2ab   : > { %6336 = vrot.lane.b32.xlu1 %v6335_v26, %s7032_s29  ;;  %v2599_v47 = vadd.f32 %v8345_v17, %v2598_v59  ;;  %6301 = vrot.lane.b32.xlu2 %v8626_v56, %s7029_s20  ;;  %v2430_v56 = vsel %vm2399_vm10, %v2397_v10, %v5518_v19 }
 0x2ac   : > { %v2463_v18 = vsel %vm2432_vm11, %v2430_v56, %v5538_v7  ;;  %v8726_v36 = vpop.permute.xlu2 %6181 }
 0x2ad   : > { %v2659_v55 = vmax.f32 %v2599_v47, 0.0  ;;  %v2480_v40 = vpack.c.bf16 %v2464_v62, %v2463_v18 }
 0x2ae   : > { %v2762_v41 = vld [vmem:[#allocation2 + $0x148] sm:$0xff] }
 0x2af   : > { %2691 = vst.msk [vmem:[#allocation2 + $0x150] sm:$0xff] %vm644_vm1, %v2659_v55  ;;  %v8730_v16 = vld [vmem:[#allocation2 + $0x144] sm:$0xff] }
 0x2b0   : > { %6326 = vrot.lane.b32.xlu0 %v6325_v21, %s7027_s22 }
 0x2b3   : > { %6321 = vrot.lane.b32.xlu2 %v6335_v26, %s7026_s16 }
 0x2b4   : > { %v8742_v13 = vpop.permute.xlu2 %6206 }
 0x2b5   : > { %10175 = vst [vmem:[#allocation47_spill] sm:$0xff] %v8742_v13 }
 0x2b6   : > { %v8718_v58 = vld [vmem:[#allocation2 + $0x14c] sm:$0xff]  ;;  %v2784_v2 = vld [vmem:[#allocation2 + $0x154] sm:$0xff] }
 0x2b7   : > { %v6350_v63 = vpack.i.bf16 %v2784_v2, %v8718_v58  ;;  %v2763_v49 = vld [vmem:[#allocation2 + $0x150] sm:$0xff]  ;;  %v6355_v27 = vpack.i.bf16 %v8718_v58, %v8730_v16 }
 0x2b8   : > { %5326 = vmatmul.msk.bf16.gmra.mxu3 %vm2505_vm12, %v2480_v40  ;;  %6331 = vrot.lane.b32.xlu0 %v6330_v25, %s7034_s18  ;;  %v6345_v34 = vpack.i.bf16 %v2763_v49, %v2762_v41  ;;  %v6873_v2 = vld [vmem:[#allocation2 + $0x2ac] sm:$0xff]  ;;  %v8805_v41 = vld [vmem:[%s10037_s8] ss:$0 sm:$0xff] }
 0x2b9   : > { %6351 = vrot.lane.b32.xlu1 %v6350_v63, %s7027_s22 }
 0x2bb   : > { %6341 = vrot.lane.b32.xlu2 %v6325_v21, %s7033_s15  ;;  %v2601_v20 = vpop.f32.mrf.mxu3 }
 0x2bc   : > { %v2602_v42 = vadd.f32 %v8345_v17, %v2601_v20 }
 0x2be   : > { %v2660_v22 = vmax.f32 %v2602_v42, 0.0 }
 0x2c0   : > { %2692 = vst.msk [vmem:[#allocation2 + $0x168] sm:$0xff] %vm644_vm1, %v2660_v22  ;;  %6346 = vrot.lane.b32.xlu0 %v6345_v34, %s7026_s16 }
 0x2c1   : > { %6356 = vrot.lane.b32.xlu1 %v6355_v27, %s7034_s18 }
 0x2c3   : > { %6361 = vrot.lane.b32.xlu2 %v6345_v34, %s7032_s29  ;;  %v2603_v5 = vpop.f32.mrf.mxu3 }
 0x2c4   : > { %v2604_v14 = vadd.f32 %v8345_v17, %v2603_v5  ;;  %v8748_v1 = vpop.permute.xlu0 %6166 }
 0x2c5   : > { %v8740_v15 = vpop.permute.xlu1 %6171 }
 0x2c6   : > { %v2661_v3 = vmax.f32 %v2604_v14, 0.0 }
 0x2c7   : > { %v2764_v45 = vld [vmem:[#allocation2 + $0x168] sm:$0xff] }
 0x2c8   : > { %6366 = vrot.lane.b32.xlu0 %v6350_v63, %s7033_s15  ;;  %2693 = vst.msk [vmem:[#allocation2 + $0x170] sm:$0xff] %vm644_vm1, %v2661_v3  ;;  %v8770_v47 = vld [vmem:[#allocation2 + $0x164] sm:$0xff] }
 0x2c9   : > { %6376 = vrot.lane.b32.xlu1 %v6345_v34, %s7030_s26 }
 0x2cb   : > { %v2606_v33 = vpop.f32.mrf.mxu3 }
 0x2cc   : > { %v2607_v4 = vadd.f32 %v8345_v17, %v2606_v33  ;;  %v8764_v39 = vpop.permute.xlu0 %6186 }
 0x2cd   : > { %v8750_v8 = vpop.permute.xlu1 %6176  ;;  %v8753_v43 = vpop.permute.xlu2 %6221 }
 0x2ce   : > { %v2662_v11 = vmax.f32 %v2607_v4, 0.0 }
 0x2cf   : > { %v2765_v50 = vld [vmem:[#allocation2 + $0x170] sm:$0xff] }
 0x2d0   : > { %6371 = vrot.lane.b32.xlu0 %v6355_v27, %s7029_s20  ;;  %v8756_v30 = vld [vmem:[#allocation2 + $0x16c] sm:$0xff]  ;;  %v2785_v54 = vld [vmem:[#allocation2 + $0x174] sm:$0xff]  ;;  %2694 = vst.msk [vmem:[#allocation2 + $0x188] sm:$0xff] %vm644_vm1, %v2662_v11  ;;  %v6385_v23 = vpack.i.bf16 %v2765_v50, %v2764_v45 }
 0x2d1   : > { %v6390_v26 = vpack.i.bf16 %v2785_v54, %v8756_v30  ;;  %v6395_v35 = vpack.i.bf16 %v8756_v30, %v8770_v47  ;;  %v6425_v7 = vpack.i.bf16 %v6872_v0, %v2785_v54 }
 0x2d2   : > { %6386 = vrot.lane.b32.xlu1 %v6385_v23, %s7026_s16 }
 0x2d3   : > { %6391 = vrot.lane.b32.xlu2 %v6390_v26, %s7027_s22  ;;  %v2608_v59 = vpop.f32.mrf.mxu3 }
 0x2d4   : > { %v2609_v37 = vadd.f32 %v8345_v17, %v2608_v59  ;;  %v8782_v57 = vpop.permute.xlu0 %6191 }
 0x2d5   : > { %v8762_v24 = vpop.permute.xlu1 %6196  ;;  %v8767_v46 = vpop.permute.xlu2 %6226 }
 0x2d6   : > { %v2663_v61 = vmax.f32 %v2609_v37, 0.0 }
 0x2d7   : > { %v2766_v25 = vld [vmem:[#allocation2 + $0x188] sm:$0xff] }
 0x2d8   : > { %6381 = vrot.lane.b32.xlu0 %v6350_v63, %s7031_s23  ;;  %2695 = vst.msk [vmem:[#allocation2 + $0x190] sm:$0xff] %vm644_vm1, %v2663_v61  ;;  %v6420_v63 = vpack.i.bf16 %v6873_v2, %v8756_v30  ;;  %v8824_v50 = vld [vmem:[#allocation2 + $0x184] sm:$0xff] }
 0x2da   : > { %6406 = vrot.lane.b32.xlu1 %v6390_v26, %s7033_s15 }
 0x2db   : > { %6396 = vrot.lane.b32.xlu2 %v6395_v35, %s7034_s18  ;;  %v2611_v60 = vpop.f32.mrf.mxu3 }
 0x2dc   : > { %v2612_v55 = vadd.f32 %v8345_v17, %v2611_v60  ;;  %v8793_v40 = vpop.permute.xlu0 %6211 }
 0x2dd   : > { %v8777_v10 = vpop.permute.xlu1 %6201  ;;  %v8780_v9 = vpop.permute.xlu2 %6246  ;;  %10178 = vst [vmem:[#allocation50_spill] sm:$0xff] %v8793_v40 }
 0x2de   : > { %10176 = vst [vmem:[#allocation44_spill] sm:$0xff] %v8777_v10  ;;  %v2664_v19 = vmax.f32 %v2612_v55, 0.0 }
 0x2df   : > { %10177 = vst [vmem:[#allocation48_spill] sm:$0xff] %v8780_v9  ;;  %v2767_v18 = vld [vmem:[#allocation2 + $0x190] sm:$0xff] }
 0x2e0   : > { %6401 = vrot.lane.b32.xlu0 %v6385_v23, %s7032_s29  ;;  %2696 = vst.msk [vmem:[#allocation2 + $0x1a8] sm:$0xff] %vm644_vm1, %v2664_v19  ;;  %v6430_v20 = vpack.i.bf16 %v2767_v18, %v2766_v25  ;;  %v2786_v49 = vld [vmem:[#allocation2 + $0x194] sm:$0xff] }
 0x2e2   : > { %6411 = vrot.lane.b32.xlu1 %v6395_v35, %s7029_s20 }
 0x2e3   : > { %6416 = vrot.lane.b32.xlu2 %v6385_v23, %s7030_s26  ;;  %v2613_v21 = vpop.f32.mrf.mxu3 }
 0x2e4   : > { %v2614_v56 = vadd.f32 %v8345_v17, %v2613_v21  ;;  %v8800_v17 = vld [vmem:[#allocation2 + $0x18c] sm:$0xff]  ;;  %v8815_v3 = vpop.permute.xlu0 %6231 }
 0x2e5   : > { %v8789_v53 = vpop.permute.xlu1 %6216  ;;  %v8791_v38 = vpop.permute.xlu2 %6256  ;;  %v6435_v5 = vpack.i.bf16 %v2786_v49, %v8800_v17  ;;  %v6440_v54 = vpack.i.bf16 %v8800_v17, %v8824_v50 }
 0x2e6   : > { %v2665_v62 = vmax.f32 %v2614_v56, 0.0 }
 0x2e7   : > { %v2840_v56 = vld [vmem:[#allocation2 + $0x1a8] sm:$0xff] }
 0x2e8   : > { %6426 = vrot.lane.b32.xlu0 %v6425_v7, %s7031_s23  ;;  %2697 = vst.msk [vmem:[#allocation2 + $0x1b0] sm:$0xff] %vm644_vm1, %v2665_v62 }
 0x2ea   : > { %6421 = vrot.lane.b32.xlu1 %v6420_v63, %s7031_s23  ;;  %v10180_v63 = vld [vmem:[#allocation33_spill] sm:$0xff] }
 0x2eb   : > { %6431 = vrot.lane.b32.xlu2 %v6430_v20, %s7026_s16  ;;  %v2616_v42 = vpop.f32.mrf.mxu3  ;;  %v5549_v49 = vunpack.i.h.bf16 %v10180_v63 }
 0x2ec   : > { %v2617_v22 = vadd.f32 %v8805_v41, %v2616_v42 }
 0x2ed   : > { %v8808_v34 = vpop.permute.xlu1 %6236  ;;  %v8810_v27 = vpop.permute.xlu2 %6261 }
 0x2ee   : > { %v2666_v14 = vmax.f32 %v2617_v22, 0.0 }
 0x2ef   : > { %v8837_v60 = vld [vmem:[#allocation2 + $0x1ac] sm:$0xff]  ;;  %v2787_v55 = vld [vmem:[#allocation2 + $0x1b4] sm:$0xff] }
 0x2f0   : > { %6436 = vrot.lane.b32.xlu0 %v6435_v5, %s7027_s22  ;;  %2698 = vst.msk [vmem:[#allocation2 + $0x1c8] sm:$0xff] %vm644_vm1, %v2666_v14  ;;  %v2841_v19 = vld [vmem:[#allocation2 + $0x1b0] sm:$0xff]  ;;  %v6475_v0 = vpack.i.bf16 %v2787_v55, %v8837_v60  ;;  %v6876_v55 = vld [vmem:[#allocation2 + $0x24] sm:$0xff] }
 0x2f1   : > { %v6267_v26 = vpop.permute.xlu0 %6266  ;;  %v6485_v7 = vpack.i.bf16 %v2841_v19, %v2840_v56  ;;  %v6263_v56 = vunpack.i.l.bf16 %v8810_v27 }
 0x2f2   : > { %6446 = vrot.lane.b32.xlu1 %v6430_v20, %s7032_s29 }
 0x2f3   : > { %6451 = vrot.lane.b32.xlu2 %v6435_v5, %s7033_s15  ;;  %v2618_v33 = vpop.f32.mrf.mxu3 }
 0x2f4   : > { %v2619_v4 = vadd.f32 %v8805_v41, %v2618_v33  ;;  %v10181_v33 = vld [vmem:[#allocation34_spill] sm:$0xff] }
 0x2f5   : > { %v8820_v11 = vpop.permute.xlu1 %6241  ;;  %v8822_v45 = vpop.permute.xlu2 %6276 }
 0x2f6   : > { %10179 = vst [vmem:[#allocation16_spill] sm:$0xff] %v8820_v11  ;;  %v2667_v23 = vmax.f32 %v2619_v4, 0.0  ;;  %v5569_v4 = vunpack.i.h.bf16 %v10181_v33  ;;  %v5573_v11 = vunpack.i.l.bf16 %v10187_v28 }
 0x2f8   : > { %6441 = vrot.lane.b32.xlu0 %v6440_v54, %s7034_s18  ;;  %2699 = vst.msk [vmem:[#allocation2 + $0x1d0] sm:$0xff] %vm644_vm1, %v2667_v23 }
 0x2fa   : > { %6466 = vrot.lane.b32.xlu1 %v6435_v5, %s7031_s23  ;;  %v8850_v5 = vld [vmem:[#allocation2 + $0x1a4] sm:$0xff] }
 0x2fb   : > { %6456 = vrot.lane.b32.xlu2 %v6440_v54, %s7029_s20  ;;  %v2621_v59 = vpop.f32.mrf.mxu3  ;;  %v6480_v14 = vpack.i.bf16 %v8837_v60, %v8850_v5  ;;  %v5568_v54 = vunpack.i.l.bf16 %v10181_v33 }
 0x2fc   : > { %v2622_v37 = vadd.f32 %v8805_v41, %v2621_v59  ;;  %v6875_v59 = vld [vmem:[#allocation2 + $0x2c] sm:$0xff] }
 0x2fd   : > { %v8833_v61 = vpop.permute.xlu1 %6251  ;;  %v8835_v35 = vpop.permute.xlu2 %6296 }
 0x2fe   : > { %v2668_v21 = vmax.f32 %v2622_v37, 0.0  ;;  %v3945_v37 = vsel %vm644_vm1, %v6875_v59, %v5549_v49 }
 0x2ff   : > { %v3977_v49 = vsel %vm2234_vm5, %v3945_v37, %v5569_v4  ;;  %v8870_v59 = vld [vmem:[#allocation2 + $0x1cc] sm:$0xff] }
 0x300   : > { %6461 = vrot.lane.b32.xlu0 %v6430_v20, %s7030_s26  ;;  %2700 = vst.msk [vmem:[#allocation2 + $0x1e8] sm:$0xff] %vm644_vm1, %v2668_v21  ;;  %v5548_v20 = vunpack.i.l.bf16 %v10180_v63  ;;  %v6264_v21 = vunpack.i.h.bf16 %v8810_v27  ;;  %v2788_v27 = vld [vmem:[#allocation2 + $0x1d4] sm:$0xff] }
 0x302   : > { %v8842_v18 = vpop.permute.xlu0 %6281  ;;  %6476 = vrot.lane.b32.xlu1 %v6475_v0, %s7027_s22  ;;  %v3944_v19 = vsel %vm644_vm1, %v6876_v55, %v5548_v20  ;;  %v4009_v55 = vsel %vm2267_vm6, %v3977_v49, %v6264_v21 }
 0x303   : > { %6486 = vrot.lane.b32.xlu2 %v6485_v7, %s7032_s29  ;;  %v2623_v62 = vpop.f32.mrf.mxu3  ;;  %v3976_v20 = vsel %vm2234_vm5, %v3944_v19, %v5568_v54  ;;  %v8881_v19 = vpack.i.bf16 %v2788_v27, %v8870_v59  ;;  %v2771_v27 = vld [vmem:[#allocation2 + $0x1d0] sm:$0xff] }
 0x304   : > { %v2624_v25 = vadd.f32 %v8805_v41, %v2623_v62  ;;  %v6269_v62 = vunpack.i.h.bf16 %v6267_v26 }
 0x305   : > { %v6272_v2 = vpop.permute.xlu1 %6271  ;;  %v6302_v22 = vpop.permute.xlu2 %6301 }
 0x306   : > { %v2669_v42 = vmax.f32 %v2624_v25, 0.0  ;;  %v6268_v25 = vunpack.i.l.bf16 %v6267_v26  ;;  %v6273_v33 = vunpack.i.l.bf16 %v6272_v2  ;;  %v6304_v9 = vunpack.i.h.bf16 %v6302_v22 }
 0x308   : > { %6471 = vrot.lane.b32.xlu0 %v6485_v7, %s7026_s16  ;;  %2701 = vst.msk [vmem:[#allocation2 + $0x1f0] sm:$0xff] %vm644_vm1, %v2669_v42  ;;  %v6274_v42 = vunpack.i.h.bf16 %v6272_v2  ;;  %v4041_v2 = vsel %vm2300_vm7, %v4009_v55, %v6269_v62  ;;  %v2770_v55 = vld [vmem:[#allocation2 + $0x1c8] sm:$0xff] }
 0x30a   : > { %v8857_v23 = vpop.permute.xlu0 %6286  ;;  %6481 = vrot.lane.b32.xlu1 %v6480_v14, %s7034_s18  ;;  %v4073_v54 = vsel %vm2333_vm8, %v4041_v2, %v6274_v42 }
 0x30b   : > { %6501 = vrot.lane.b32.xlu2 %v6485_v7, %s7030_s26  ;;  %v2626_v63 = vpop.f32.mrf.mxu3  ;;  %v4008_v7 = vsel %vm2267_vm6, %v3976_v20, %v6263_v56  ;;  %v4105_v62 = vsel %vm2366_vm9, %v4073_v54, %v6304_v9 }
 0x30c   : > { %v2627_v32 = vadd.f32 %v8805_v41, %v2626_v63  ;;  %v4040_v26 = vsel %vm2300_vm7, %v4008_v7, %v6268_v25  ;;  %v6303_v63 = vunpack.i.l.bf16 %v6302_v22  ;;  %v8895_v7 = vld [vmem:[#allocation2 + $0x1c4] sm:$0xff] }
 0x30d   : > { %v8866_v31 = vpop.permute.xlu1 %6291  ;;  %v4072_v4 = vsel %vm2333_vm8, %v4040_v26, %v6273_v33  ;;  %v6322_v37 = vpop.permute.xlu2 %6321  ;;  %v6510_v26 = vpack.i.bf16 %v2771_v27, %v2770_v55  ;;  %v6520_v2 = vpack.i.bf16 %v8870_v59, %v8895_v7 }
 0x30e   : > { %v2670_v12 = vmax.f32 %v2627_v32, 0.0  ;;  %v4104_v22 = vsel %vm2366_vm9, %v4072_v4, %v6303_v63 }
 0x310   : > { %6491 = vrot.lane.b32.xlu0 %v6475_v0, %s7033_s15  ;;  %2702 = vst.msk [vmem:[#allocation2 + $0x208] sm:$0xff] %vm644_vm1, %v2670_v12 }
 0x312   : > { %v6307_v21 = vpop.permute.xlu0 %6306  ;;  %6506 = vrot.lane.b32.xlu1 %v6475_v0, %s7031_s23 }
 0x313   : > { %v6309_v32 = vunpack.i.h.bf16 %v6307_v21  ;;  %v6308_v56 = vunpack.i.l.bf16 %v6307_v21  ;;  %6516 = vrot.lane.b32.xlu2 %v8881_v19, %s7027_s22  ;;  %v2628_v25 = vpop.f32.mrf.mxu3 }
 0x314   : > { %v2629_v33 = vadd.f32 %v8805_v41, %v2628_v25  ;;  %v6324_v25 = vunpack.i.h.bf16 %v6322_v37 }
 0x315   : > { %v4136_v42 = vsel %vm2399_vm10, %v4104_v22, %v6308_v56  ;;  %v4137_v12 = vsel %vm2399_vm10, %v4105_v62, %v6309_v32  ;;  %v8891_v49 = vpop.permute.xlu1 %6316  ;;  %v8905_v4 = vpop.permute.xlu2 %6341  ;;  %v2773_v56 = vld [vmem:[#allocation2 + $0x1f0] sm:$0xff] }
 0x316   : > { %10182 = vst [vmem:[#allocation24_spill] sm:$0xff] %v8891_v49  ;;  %v6318_v20 = vunpack.i.l.bf16 %v8891_v49  ;;  %v2671_v0 = vmax.f32 %v2629_v33, 0.0  ;;  %v2772_v33 = vld [vmem:[#allocation2 + $0x1e8] sm:$0xff] }
 0x318   : > { %6496 = vrot.lane.b32.xlu0 %v6480_v14, %s7029_s20  ;;  %v8898_v9 = vsel %vm2432_vm11, %v4137_v12, %v6318_v20  ;;  %2703 = vst.msk [vmem:[#allocation2 + $0x210] sm:$0xff] %vm644_vm1, %v2671_v0  ;;  %v6323_v12 = vunpack.i.l.bf16 %v6322_v37  ;;  %v8918_v20 = vpack.i.bf16 %v2773_v56, %v2772_v33  ;;  %v3955_v37 = vsel %vm644_vm1, %v8692_v51, %v6324_v25 }
 0x319   : > { %10183 = vst [vmem:[#allocation25_spill] sm:$0xff] %v8898_v9  ;;  %v8935_v9 = vld [vmem:[#allocation2 + $0x1ec] sm:$0xff]  ;;  %v5574_v25 = vunpack.i.h.bf16 %v10187_v28 }
 0x31a   : > { %v8903_v63 = vpop.permute.xlu0 %6311  ;;  %6511 = vrot.lane.b32.xlu1 %v6510_v26, %s7026_s16 }
 0x31b   : > { %10184 = vst [vmem:[#allocation21_spill] sm:$0xff] %v8903_v63  ;;  %v6314_v54 = vunpack.i.h.bf16 %v8903_v63  ;;  %6521 = vrot.lane.b32.xlu2 %v6520_v2, %s7034_s18  ;;  %v2631_v14 = vpop.f32.mrf.mxu3  ;;  %v2865_v63 = vld [vmem:[#allocation2 + $0x1f4] sm:$0xff] }
 0x31c   : > { %v2632_v21 = vadd.f32 %v8805_v41, %v2631_v14 }
 0x31d   : > { %v8912_v32 = vsel %vm2432_vm11, %v4136_v42, %v6314_v54  ;;  %v6337_v0 = vpop.permute.xlu1 %6336  ;;  %v10186_v42 = vld [vmem:[#allocation31_spill] sm:$0xff]  ;;  %v8930_v33 = vpop.permute.xlu2 %6361 }
 0x31e   : > { %10185 = vst [vmem:[#allocation22_spill] sm:$0xff] %v8912_v32  ;;  %v2672_v22 = vmax.f32 %v2632_v21, 0.0  ;;  %v5553_v54 = vunpack.i.l.bf16 %v10186_v42  ;;  %v3954_v21 = vsel %vm644_vm1, %v8712_v52, %v6323_v12  ;;  %v6877_v52 = vld [vmem:[#allocation2 + $0x44] sm:$0xff] }
 0x320   : > { %6526 = vrot.lane.b32.xlu0 %v6510_v26, %s7032_s29  ;;  %2704 = vst.msk [vmem:[#allocation2 + $0x228] sm:$0xff] %vm644_vm1, %v2672_v22  ;;  %v5554_v22 = vunpack.i.h.bf16 %v10186_v42  ;;  %v3946_v12 = vsel %vm644_vm1, %v6877_v52, %v5553_v54  ;;  %v6878_v42 = vld [vmem:[#allocation2 + $0x4c] sm:$0xff]  ;;  %v6339_v54 = vunpack.i.h.bf16 %v6337_v0 }
 0x322   : > { %v6327_v27 = vpop.permute.xlu0 %6326  ;;  %6531 = vrot.lane.b32.xlu1 %v8881_v19, %s7033_s15 }
 0x323   : > { %v6329_v55 = vunpack.i.h.bf16 %v6327_v27  ;;  %v6328_v14 = vunpack.i.l.bf16 %v6327_v27  ;;  %6551 = vrot.lane.b32.xlu2 %v8918_v20, %s7026_s16  ;;  %v2633_v56 = vpop.f32.mrf.mxu3 }
 0x324   : > { %v2634_v32 = vadd.f32 %v8805_v41, %v2633_v56 }
 0x325   : > { %v3986_v27 = vsel %vm2234_vm5, %v3954_v21, %v6328_v14  ;;  %v3987_v62 = vsel %vm2234_vm5, %v3955_v37, %v6329_v55  ;;  %v3947_v14 = vsel %vm644_vm1, %v6878_v42, %v5554_v22  ;;  %v8944_v55 = vpack.i.bf16 %v2865_v63, %v8935_v9 }
 0x326   : > { %v2673_v51 = vmax.f32 %v2634_v32, 0.0  ;;  %v3978_v21 = vsel %vm2234_vm5, %v3946_v12, %v5573_v11  ;;  %v6338_v22 = vunpack.i.l.bf16 %v6337_v0  ;;  %v6343_v63 = vunpack.i.l.bf16 %v8905_v4 }
 0x328   : > { %6541 = vrot.lane.b32.xlu0 %v6510_v26, %s7030_s26  ;;  %2705 = vst.msk [vmem:[#allocation2 + $0x230] sm:$0xff] %vm644_vm1, %v2673_v51  ;;  %v6344_v26 = vunpack.i.h.bf16 %v8905_v4  ;;  %v3979_v51 = vsel %vm2234_vm5, %v3947_v14, %v5574_v25  ;;  %v8964_v4 = vld [vmem:[#allocation2 + $0x1e4] sm:$0xff] }
 0x329   : > { %v6575_v14 = vpack.i.bf16 %v8935_v9, %v8964_v4 }
 0x32a   : > { %v6332_v37 = vpop.permute.xlu0 %6331  ;;  %6536 = vrot.lane.b32.xlu1 %v6520_v2, %s7029_s20 }
 0x32b   : > { %v6334_v56 = vunpack.i.h.bf16 %v6332_v37  ;;  %v6333_v32 = vunpack.i.l.bf16 %v6332_v37  ;;  %6571 = vrot.lane.b32.xlu2 %v8944_v55, %s7033_s15  ;;  %v6352_v28 = vpop.permute.xlu1 %6351  ;;  %v2636_v52 = vpop.f32.mrf.mxu3 }
 0x32c   : > { %v2637_v12 = vadd.f32 %v8805_v41, %v2636_v52 }
 0x32d   : > { %v4011_v42 = vsel %vm2267_vm6, %v3979_v51, %v6334_v56  ;;  %v4010_v11 = vsel %vm2267_vm6, %v3978_v21, %v6333_v32  ;;  %v8956_v2 = vpop.permute.xlu2 %6391 }
 0x32e   : > { %v4042_v37 = vsel %vm2300_vm7, %v4010_v11, %v6338_v22  ;;  %v4043_v40 = vsel %vm2300_vm7, %v4011_v42, %v6339_v54  ;;  %v2674_v13 = vmax.f32 %v2637_v12, 0.0  ;;  %v6354_v12 = vunpack.i.h.bf16 %v6352_v28 }
 0x32f   : > { %v4074_v0 = vsel %vm2333_vm8, %v4042_v37, %v6343_v63  ;;  %v4075_v25 = vsel %vm2333_vm8, %v4043_v40, %v6344_v26  ;;  %v6364_v40 = vunpack.i.h.bf16 %v8930_v33  ;;  %v2867_v10 = vld [vmem:[#allocation2 + $0x234] sm:$0xff]  ;;  %v6393_v48 = vunpack.i.l.bf16 %v8956_v2 }
 0x330   : > { %6546 = vrot.lane.b32.xlu0 %v8881_v19, %s7031_s23  ;;  %2706 = vst.msk [vmem:[#allocation2 + $0x248] sm:$0xff] %vm644_vm1, %v2674_v13  ;;  %v6363_v19 = vunpack.i.l.bf16 %v8930_v33  ;;  %v6353_v13 = vunpack.i.l.bf16 %v6352_v28  ;;  %v8983_v33 = vld [vmem:[#allocation2 + $0x20c] sm:$0xff] }
 0x332   : > { %v6347_v21 = vpop.permute.xlu0 %6346  ;;  %6566 = vrot.lane.b32.xlu1 %v8918_v20, %s7032_s29 }
 0x333   : > { %v6349_v56 = vunpack.i.h.bf16 %v6347_v21  ;;  %v6348_v32 = vunpack.i.l.bf16 %v6347_v21  ;;  %6576 = vrot.lane.b32.xlu2 %v6575_v14, %s7029_s20  ;;  %v6357_v54 = vpop.permute.xlu1 %6356  ;;  %v2638_v26 = vpop.f32.mrf.mxu3 }
 0x334   : > { %v6359_v22 = vunpack.i.h.bf16 %v6357_v54  ;;  %v6358_v51 = vunpack.i.l.bf16 %v6357_v54  ;;  %v2639_v42 = vadd.f32 %v8805_v41, %v2638_v26 }
 0x335   : > { %v3963_v52 = vsel %vm644_vm1, %v8718_v58, %v6349_v56  ;;  %v3962_v63 = vsel %vm644_vm1, %v8730_v16, %v6348_v32  ;;  %v8979_v11 = vpop.permute.xlu2 %6396  ;;  %v2814_v16 = vld [vmem:[#allocation2 + $0x204] sm:$0xff] }
 0x336   : > { %v4018_v37 = vsel %vm2267_vm6, %v3986_v27, %v6358_v51  ;;  %v4019_v21 = vsel %vm2267_vm6, %v3987_v62, %v6359_v22  ;;  %v2675_v29 = vmax.f32 %v2639_v42, 0.0  ;;  %v8988_v58 = vsel %vm2234_vm5, %v3962_v63, %v6353_v13  ;;  %v2919_v13 = vld [vmem:[#allocation2 + $0x210] sm:$0xff]  ;;  %v2918_v63 = vld [vmem:[#allocation2 + $0x208] sm:$0xff] }
 0x337   : > { %v4050_v54 = vsel %vm2300_vm7, %v4018_v37, %v6363_v19  ;;  %v4051_v6 = vsel %vm2300_vm7, %v4019_v21, %v6364_v40  ;;  %v8993_v28 = vsel %vm2234_vm5, %v3963_v52, %v6354_v12  ;;  %v8997_v62 = vpack.i.bf16 %v8983_v33, %v2814_v16 }
 0x338   : > { %6556 = vrot.lane.b32.xlu0 %v8944_v55, %s7027_s22  ;;  %2707 = vst.msk [vmem:[#allocation2 + $0x250] sm:$0xff] %vm644_vm1, %v2675_v29 }
 0x33a   : > { %v6367_v27 = vpop.permute.xlu0 %6366  ;;  %6591 = vrot.lane.b32.xlu1 %v8997_v62, %s7034_s18 }
 0x33b   : > { %v6369_v56 = vunpack.i.h.bf16 %v6367_v27  ;;  %v6368_v32 = vunpack.i.l.bf16 %v6367_v27  ;;  %6581 = vrot.lane.b32.xlu2 %v8918_v20, %s7030_s26  ;;  %v6377_v40 = vpop.permute.xlu1 %6376  ;;  %v2641_v19 = vpop.f32.mrf.mxu3  ;;  %v6610_v20 = vpack.i.bf16 %v2919_v13, %v2918_v63 }
 0x33c   : > { %v2642_v29 = vadd.f32 %v8805_v41, %v2641_v19  ;;  %v6378_v27 = vunpack.i.l.bf16 %v6377_v40 }
 0x33d   : > { %v9004_v26 = vsel %vm2333_vm8, %v4050_v54, %v6368_v32  ;;  %v9007_v22 = vsel %vm2333_vm8, %v4051_v6, %v6369_v56  ;;  %v9010_v51 = vpop.permute.xlu2 %6416  ;;  %v10188_v6 = vld [vmem:[#allocation26_spill] sm:$0xff]  ;;  %v6379_v54 = vunpack.i.h.bf16 %v6377_v40 }
 0x33e   : > { %v2676_v52 = vmax.f32 %v2642_v29, 0.0  ;;  %v5559_v21 = vunpack.i.h.bf16 %v10188_v6  ;;  %v5558_v13 = vunpack.i.l.bf16 %v10188_v6 }
 0x340   : > { %6561 = vrot.lane.b32.xlu0 %v6575_v14, %s7034_s18  ;;  %2708 = vst.msk [vmem:[#allocation2 + $0x268] sm:$0xff] %vm644_vm1, %v2676_v52  ;;  %v6394_v52 = vunpack.i.h.bf16 %v8956_v2 }
 0x342   : > { %v6372_v42 = vpop.permute.xlu0 %6371  ;;  %6611 = vrot.lane.b32.xlu1 %v6610_v20, %s7030_s26 }
 0x343   : > { %v6374_v12 = vunpack.i.h.bf16 %v6372_v42  ;;  %v6373_v37 = vunpack.i.l.bf16 %v6372_v42  ;;  %6596 = vrot.lane.b32.xlu2 %v6610_v20, %s7032_s29  ;;  %v2643_v16 = vpop.f32.mrf.mxu3  ;;  %v2817_v42 = vld [vmem:[#allocation2 + $0x22c] sm:$0xff] }
 0x344   : > { %v2644_v32 = vadd.f32 %v8805_v41, %v2643_v16  ;;  %v6387_v19 = vpop.permute.xlu1 %6386  ;;  %v2816_v16 = vld [vmem:[#allocation2 + $0x224] sm:$0xff]  ;;  %v9035_v2 = vpack.i.bf16 %v2867_v10, %v2817_v42  ;;  %v4218_v10 = vld [vmem:[%s10038_s9 + $0x10] sm:$0x3] }
 0x345   : > { %v4106_v56 = vsel %vm2366_vm9, %v4074_v0, %v6373_v37  ;;  %v4107_v14 = vsel %vm2366_vm9, %v4075_v25, %v6374_v12  ;;  %v9020_v29 = vpop.permute.xlu2 %6431  ;;  %v6389_v63 = vunpack.i.h.bf16 %v6387_v19  ;;  %v6388_v20 = vunpack.i.l.bf16 %v6387_v19  ;;  %v10189_v12 = vld [vmem:[#allocation38_spill] sm:$0xff] }
 0x346   : > { %v2677_v40 = vmax.f32 %v2644_v32, 0.0  ;;  %v4138_v0 = vsel %vm2399_vm10, %v4106_v56, %v6378_v27  ;;  %v4139_v25 = vsel %vm2399_vm10, %v4107_v14, %v6379_v54  ;;  %v5579_v41 = vunpack.i.h.bf16 %v10189_v12  ;;  %v6879_v56 = vld [vmem:[#allocation2 + $0x6c] sm:$0xff]  ;;  %v6880_v14 = vld [vmem:[#allocation2 + $0x64] sm:$0xff] }
 0x347   : > { %v3965_v37 = vsel %vm644_vm1, %v8756_v30, %v6389_v63  ;;  %v3964_v6 = vsel %vm644_vm1, %v8770_v47, %v6388_v20  ;;  %v6620_v32 = vpack.i.bf16 %v2817_v42, %v2816_v16  ;;  %v3949_v30 = vsel %vm644_vm1, %v6879_v56, %v5559_v21  ;;  %v2866_v21 = vld [vmem:[#allocation2 + $0x214] sm:$0xff] }
 0x348   : > { %6586 = vrot.lane.b32.xlu0 %v8944_v55, %s7031_s23  ;;  %2709 = vst.msk [vmem:[#allocation2 + $0x270] sm:$0xff] %vm644_vm1, %v2677_v40  ;;  %v9038_v27 = vsel %vm2234_vm5, %v3964_v6, %v6393_v48  ;;  %v9041_v54 = vsel %vm2234_vm5, %v3965_v37, %v6394_v52  ;;  %v3948_v47 = vsel %vm644_vm1, %v6880_v14, %v5558_v13  ;;  %v5578_v55 = vunpack.i.l.bf16 %v10189_v12 }
 0x349   : > { %v6169_v19 = vunpack.i.h.bf16 %v8748_v1  ;;  %v6168_v48 = vunpack.i.l.bf16 %v8748_v1  ;;  %v4232_v13 = vunpack.c.l.b16 %v4218_v10  ;;  %v6179_v42 = vunpack.i.h.bf16 %v8750_v8 }
 0x34a   : > { %v6382_v63 = vpop.permute.xlu0 %6381  ;;  %6631 = vrot.lane.b32.xlu1 %v9035_v2, %s7033_s15  ;;  %v6178_v40 = vunpack.i.l.bf16 %v8750_v8  ;;  %v3981_v12 = vsel %vm2234_vm5, %v3949_v30, %v5579_v41  ;;  %v3980_v14 = vsel %vm2234_vm5, %v3948_v47, %v5578_v55  ;;  %v6173_v10 = vunpack.i.l.bf16 %v8740_v15  ;;  %v2921_v41 = vld [vmem:[#allocation2 + $0x230] sm:$0xff] }
 0x34b   : > { %v6384_v20 = vunpack.i.h.bf16 %v6382_v63  ;;  %v6383_v52 = vunpack.i.l.bf16 %v6382_v63  ;;  %6621 = vrot.lane.b32.xlu2 %v6620_v32, %s7034_s18  ;;  %v4235_v16 = vpack.c.b16 %v4232_v13, %v4232_v13  ;;  %v6174_v63 = vunpack.i.h.bf16 %v8740_v15  ;;  %v6881_v30 = vld [vmem:[#allocation2 + $0xec] sm:$0xff]  ;;  %v6882_v13 = vld [vmem:[#allocation2 + $0xe4] sm:$0xff] }
 0x34c   : > { %v6407_v37 = vpop.permute.xlu1 %6406  ;;  %v9069_v8 = vpack.i.bf16 %v2866_v21, %v8983_v33  ;;  %v3957_v49 = vsel %vm644_vm1, %v6881_v30, %v6169_v19  ;;  %v4013_v47 = vsel %vm2267_vm6, %v3981_v12, %v6179_v42  ;;  %v4012_v55 = vsel %vm2267_vm6, %v3980_v14, %v6178_v40  ;;  %v2920_v19 = vld [vmem:[#allocation2 + $0x228] sm:$0xff] }
 0x34d   : > { %v9057_v6 = vpop.permute.xlu2 %6451  ;;  %v9060_v1 = vsel %vm2432_vm11, %v4138_v0, %v6383_v52  ;;  %v9063_v56 = vsel %vm2432_vm11, %v4139_v25, %v6384_v20  ;;  %v3956_v0 = vsel %vm644_vm1, %v6882_v13, %v6168_v48  ;;  %v4287_v52 = vsel %vm648_vm4, %v4235_v16, 0  ;;  %v5368_v48 = vld [vmem:[%s10038_s9 + $0x8] sm:$0xff] }
 0x34e   : > { %v6399_v15 = vunpack.i.h.bf16 %v8979_v11  ;;  %v6398_v33 = vunpack.i.l.bf16 %v8979_v11  ;;  %5377 = vmatpush.bf16.msrb.mxu1 %v4287_v52  ;;  %v6184_v20 = vunpack.i.h.bf16 %v8726_v36  ;;  %v6183_v21 = vunpack.i.l.bf16 %v8726_v36  ;;  %4294 = vmatpush.bf16.msrb.mxu0 %v4287_v52 }
 0x34f   : > { %v9087_v42 = vpack.i.bf16 %v2921_v41, %v2920_v19  ;;  %v3989_v40 = vsel %vm2234_vm5, %v3957_v49, %v6174_v63  ;;  %v3988_v11 = vsel %vm2234_vm5, %v3956_v0, %v6173_v10  ;;  %v6189_v36 = vunpack.i.h.bf16 %v8764_v39 }
 0x350   : > { %6601 = vrot.lane.b32.xlu0 %v9069_v8, %s7033_s15  ;;  %v4044_v16 = vsel %vm2300_vm7, %v4012_v55, %v6183_v21  ;;  %v4045_v14 = vsel %vm2300_vm7, %v4013_v47, %v6184_v20  ;;  %v6188_v41 = vunpack.i.l.bf16 %v8764_v39  ;;  %v4021_v49 = vsel %vm2267_vm6, %v3989_v40, %v6399_v15  ;;  %v2851_v15 = vld [vmem:[#allocation2 + $0x250] sm:$0xff] }
 0x351   : > { %v4020_v63 = vsel %vm2267_vm6, %v3988_v11, %v6398_v33  ;;  %v6409_v10 = vunpack.i.h.bf16 %v6407_v37  ;;  %v6408_v0 = vunpack.i.l.bf16 %v6407_v37  ;;  %v4077_v20 = vsel %vm2333_vm8, %v4045_v14, %v6189_v36  ;;  %v5367_v33 = vld [vmem:[%s10038_s9] sm:$0xff]  ;;  %v2850_v14 = vld [vmem:[#allocation2 + $0x248] sm:$0xff] }
 0x352   : > { %v6402_v12 = vpop.permute.xlu0 %6401  ;;  %6636 = vrot.lane.b32.xlu1 %v6620_v32, %s7029_s20  ;;  %5378 = vmatpush.bf16.msrb.mxu1 %v5368_v48  ;;  %v4076_v19 = vsel %vm2333_vm8, %v4044_v16, %v6188_v41  ;;  %v6419_v37 = vunpack.i.h.bf16 %v9010_v51  ;;  %v6418_v40 = vunpack.i.l.bf16 %v9010_v51  ;;  %v6233_v25 = vunpack.i.l.bf16 %v8815_v3 }
 0x353   : > { %v6404_v30 = vunpack.i.h.bf16 %v6402_v12  ;;  %v6403_v13 = vunpack.i.l.bf16 %v6402_v12  ;;  %6641 = vrot.lane.b32.xlu2 %v9087_v42, %s7030_s26  ;;  %4295 = vmatpush.bf16.msrb.mxu0 %v5368_v48 }
 0x354   : > { %v6412_v55 = vpop.permute.xlu1 %6411 }
 0x355   : > { %v4052_v52 = vsel %vm2300_vm7, %v4020_v63, %v6403_v13  ;;  %v4053_v47 = vsel %vm2300_vm7, %v4021_v49, %v6404_v30  ;;  %v9102_v32 = vpop.permute.xlu2 %6456  ;;  %v6414_v39 = vunpack.i.h.bf16 %v6412_v55  ;;  %v6413_v21 = vunpack.i.l.bf16 %v6412_v55 }
 0x356   : > { %v9112_v11 = vsel %vm2333_vm8, %v4052_v52, %v6408_v0  ;;  %v9115_v48 = vsel %vm2333_vm8, %v4053_v47, %v6409_v10  ;;  %v6655_v30 = vpack.i.bf16 %v2851_v15, %v2850_v14  ;;  %5379 = vmatpush.bf16.msrb.mxu1 %v5367_v33  ;;  %v2819_v0 = vld [vmem:[#allocation2 + $0x24c] sm:$0xff]  ;;  %v2868_v52 = vld [vmem:[#allocation2 + $0x254] sm:$0xff]  ;;  %v6434_v47 = vunpack.i.h.bf16 %v9020_v29 }
 0x357   : > { %v4109_v12 = vsel %vm2366_vm9, %v4077_v20, %v6414_v39  ;;  %v4108_v16 = vsel %vm2366_vm9, %v4076_v19, %v6413_v21  ;;  %4296 = vmatpush.bf16.msrb.mxu0 %v5367_v33  ;;  %v6433_v55 = vunpack.i.l.bf16 %v9020_v29  ;;  %v9144_v19 = vpack.i.bf16 %v2868_v52, %v2819_v0  ;;  %v2820_v52 = vld [vmem:[#allocation2 + $0x264] sm:$0xff] }
 0x358   : > { %6606 = vrot.lane.b32.xlu0 %v8997_v62, %s7029_s20  ;;  %v4140_v13 = vsel %vm2399_vm10, %v4108_v16, %v6418_v40  ;;  %v4141_v51 = vsel %vm2399_vm10, %v4109_v12, %v6419_v37  ;;  %v6194_v29 = vunpack.i.h.bf16 %v8782_v57  ;;  %v3967_v33 = vsel %vm644_vm1, %v8800_v17, %v6434_v47  ;;  %v2890_v47 = vld [vmem:[#allocation2 + $0x244] sm:$0xff] }
 0x359   : > { %v3966_v37 = vsel %vm644_vm1, %v8824_v50, %v6433_v55  ;;  %v6219_v40 = vunpack.i.h.bf16 %v8789_v53  ;;  %v6218_v12 = vunpack.i.l.bf16 %v8789_v53  ;;  %v6199_v17 = vunpack.i.h.bf16 %v8762_v24  ;;  %v6883_v50 = vld [vmem:[#allocation2 + $0x84] sm:$0xff] }
 0x35a   : > { %v9123_v36 = vpop.permute.xlu0 %6426  ;;  %6656 = vrot.lane.b32.xlu1 %v6655_v30, %s7032_s29  ;;  %v6885_v55 = vld [vmem:[#allocation2 + $0x104] sm:$0xff] }
 0x35b   : > { %v6428_v41 = vunpack.i.l.bf16 %v9123_v36  ;;  %6646 = vrot.lane.b32.xlu2 %v9035_v2, %s7031_s23 }
 0x35c   : > { %v9129_v49 = vpop.permute.xlu1 %6421 }
 0x35d   : > { %v9131_v62 = vpop.permute.xlu2 %6486  ;;  %v9134_v63 = vsel %vm2432_vm11, %v4141_v51, %v6428_v41  ;;  %v6423_v10 = vunpack.i.l.bf16 %v9129_v49  ;;  %v6198_v51 = vunpack.i.l.bf16 %v8762_v24  ;;  %v6665_v24 = vpack.i.bf16 %v2819_v0, %v2890_v47 }
 0x35e   : > { %v6453_v47 = vunpack.i.l.bf16 %v9057_v6 }
 0x35f   : > { %v9142_v2 = vsel %vm2432_vm11, %v4140_v13, %v6423_v10  ;;  %v6884_v10 = vld [vmem:[#allocation2 + $0x8c] sm:$0xff] }
 0x360   : > { %6616 = vrot.lane.b32.xlu0 %v9069_v8, %s7031_s23  ;;  %v6193_v8 = vunpack.i.l.bf16 %v8782_v57  ;;  %v9167_v57 = vld [vmem:[#allocation2 + $0x26c] sm:$0xff]  ;;  %v3951_v53 = vsel %vm644_vm1, %v6884_v10, %v6194_v29  ;;  %v6229_v29 = vunpack.i.h.bf16 %v8767_v46 }
 0x362   : > { %v6437_v39 = vpop.permute.xlu0 %6436  ;;  %6671 = vrot.lane.b32.xlu1 %v6655_v30, %s7030_s26  ;;  %v3950_v41 = vsel %vm644_vm1, %v6883_v50, %v6193_v8  ;;  %v6224_v8 = vunpack.i.h.bf16 %v8753_v43 }
 0x363   : > { %v6439_v21 = vunpack.i.h.bf16 %v6437_v39  ;;  %v6438_v15 = vunpack.i.l.bf16 %v6437_v39  ;;  %6661 = vrot.lane.b32.xlu2 %v9144_v19, %s7033_s15  ;;  %v3958_v39 = vsel %vm644_vm1, %v6885_v55, %v6218_v12  ;;  %v3982_v10 = vsel %vm2234_vm5, %v3950_v41, %v6198_v51 }
 0x364   : > { %v6447_v30 = vpop.permute.xlu1 %6446  ;;  %v3983_v12 = vsel %vm2234_vm5, %v3951_v53, %v6199_v17 }
 0x365   : > { %v9160_v16 = vsel %vm2234_vm5, %v3966_v37, %v6438_v15  ;;  %v9163_v14 = vsel %vm2234_vm5, %v3967_v33, %v6439_v21  ;;  %v9165_v13 = vpop.permute.xlu2 %6501  ;;  %v6886_v21 = vld [vmem:[#allocation2 + $0x10c] sm:$0xff]  ;;  %v9178_v33 = vpack.i.bf16 %v9167_v57, %v2820_v52  ;;  %v6223_v37 = vunpack.i.l.bf16 %v8753_v43 }
 0x366   : > { %v3959_v15 = vsel %vm644_vm1, %v6886_v21, %v6219_v40  ;;  %v6449_v0 = vunpack.i.h.bf16 %v6447_v30  ;;  %v6448_v40 = vunpack.i.l.bf16 %v6447_v30 }
 0x367   : > { %v3990_v43 = vsel %vm2234_vm5, %v3958_v39, %v6223_v37  ;;  %v3991_v52 = vsel %vm2234_vm5, %v3959_v15, %v6224_v8  ;;  %v6239_v15 = vunpack.i.h.bf16 %v8808_v34  ;;  %v6238_v8 = vunpack.i.l.bf16 %v8808_v34 }
 0x368   : > { %6626 = vrot.lane.b32.xlu0 %v9087_v42, %s7032_s29  ;;  %v6228_v42 = vunpack.i.l.bf16 %v8767_v46  ;;  %v6454_v46 = vunpack.i.h.bf16 %v9057_v6  ;;  %v6459_v37 = vunpack.i.h.bf16 %v9102_v32 }
 0x36a   : > { %v6442_v50 = vpop.permute.xlu0 %6441  ;;  %6681 = vrot.lane.b32.xlu1 %v9178_v33, %s7034_s18 }
 0x36b   : > { %v6444_v55 = vunpack.i.h.bf16 %v6442_v50  ;;  %v6443_v20 = vunpack.i.l.bf16 %v6442_v50  ;;  %6666 = vrot.lane.b32.xlu2 %v6665_v24, %s7029_s20  ;;  %v6234_v50 = vunpack.i.h.bf16 %v8815_v3  ;;  %v4015_v3 = vsel %vm2267_vm6, %v3983_v12, %v6229_v29 }
 0x36c   : > { %v6467_v41 = vpop.permute.xlu1 %6466 }
 0x36d   : > { %v4022_v51 = vsel %vm2267_vm6, %v3990_v43, %v6443_v20  ;;  %v4023_v17 = vsel %vm2267_vm6, %v3991_v52, %v6444_v55  ;;  %v9195_v53 = vpop.permute.xlu2 %6516  ;;  %v6458_v55 = vunpack.i.l.bf16 %v9102_v32  ;;  %v4047_v43 = vsel %vm2300_vm7, %v4015_v3, %v6234_v50  ;;  %v9222_v32 = vld [vmem:[#allocation2 + $0x274] sm:$0xff] }
 0x36e   : > { %v4054_v30 = vsel %vm2300_vm7, %v4022_v51, %v6448_v40  ;;  %v4055_v39 = vsel %vm2300_vm7, %v4023_v17, %v6449_v0  ;;  %v4014_v0 = vsel %vm2267_vm6, %v3982_v10, %v6228_v42  ;;  %v6705_v40 = vpack.i.bf16 %v9167_v57, %v6886_v21 }
 0x36f   : > { %v9204_v6 = vsel %vm2333_vm8, %v4054_v30, %v6453_v47  ;;  %v9207_v20 = vsel %vm2333_vm8, %v4055_v39, %v6454_v46  ;;  %v4046_v34 = vsel %vm2300_vm7, %v4014_v0, %v6233_v25  ;;  %v4079_v47 = vsel %vm2333_vm8, %v4047_v43, %v6239_v15 }
 0x370   : > { %6651 = vrot.lane.b32.xlu0 %v6665_v24, %s7034_s18  ;;  %v4078_v46 = vsel %vm2333_vm8, %v4046_v34, %v6238_v8  ;;  %v4111_v25 = vsel %vm2366_vm9, %v4079_v47, %v6459_v37  ;;  %v6469_v24 = vunpack.i.h.bf16 %v6467_v41  ;;  %v6468_v29 = vunpack.i.l.bf16 %v6467_v41 }
 0x371   : > { %v4110_v21 = vsel %vm2366_vm9, %v4078_v46, %v6458_v55  ;;  %v6690_v15 = vpack.i.bf16 %v9222_v32, %v9167_v57  ;;  %v6279_v8 = vunpack.i.h.bf16 %v8822_v45  ;;  %v6278_v41 = vunpack.i.l.bf16 %v8822_v45 }
 0x372   : > { %v6462_v52 = vpop.permute.xlu0 %6461  ;;  %6706 = vrot.lane.b32.xlu1 %v6705_v40, %s7031_s23  ;;  %v2852_v40 = vld [vmem:[#allocation2 + $0x268] sm:$0xff]  ;;  %v6284_v43 = vunpack.i.h.bf16 %v8842_v18 }
 0x373   : > { %v6464_v51 = vunpack.i.h.bf16 %v6462_v52  ;;  %v6463_v17 = vunpack.i.l.bf16 %v6462_v52  ;;  %6676 = vrot.lane.b32.xlu2 %v9144_v19, %s7031_s23  ;;  %v2853_v19 = vld [vmem:[#allocation2 + $0x270] sm:$0xff]  ;;  %v6283_v52 = vunpack.i.l.bf16 %v8842_v18 }
 0x374   : > { %v6477_v12 = vpop.permute.xlu1 %6476  ;;  %v6685_v34 = vpack.i.bf16 %v2853_v19, %v2852_v40 }
 0x375   : > { %v4142_v42 = vsel %vm2399_vm10, %v4110_v21, %v6463_v17  ;;  %v4143_v10 = vsel %vm2399_vm10, %v4111_v25, %v6464_v51  ;;  %v6522_v50 = vpop.permute.xlu2 %6521  ;;  %v6888_v51 = vld [vmem:[#allocation2 + $0x124] sm:$0xff]  ;;  %v6254_v21 = vunpack.i.h.bf16 %v8833_v61  ;;  %v6253_v25 = vunpack.i.l.bf16 %v8833_v61 }
 0x376   : > { %v6524_v30 = vunpack.i.h.bf16 %v6522_v50  ;;  %v6523_v39 = vunpack.i.l.bf16 %v6522_v50  ;;  %v4174_v55 = vsel %vm2432_vm11, %v4142_v42, %v6468_v29  ;;  %v4175_v37 = vsel %vm2432_vm11, %v4143_v10, %v6469_v24 }
 0x377   : > { %v4202_v57 = vpack.c.bf16 %v4175_v37, %v4174_v55  ;;  %v3960_v17 = vsel %vm644_vm1, %v6888_v51, %v6278_v41  ;;  %v6479_v24 = vunpack.i.h.bf16 %v6477_v12  ;;  %v6478_v29 = vunpack.i.l.bf16 %v6477_v12  ;;  %v6889_v37 = vld [vmem:[#allocation2 + $0xac] sm:$0xff] }
 0x378   : > { %v9236_v3 = vsel %vm2267_vm6, %v8993_v28, %v6524_v30  ;;  %v9240_v0 = vsel %vm2267_vm6, %v8988_v58, %v6523_v39  ;;  %6691 = vrot.lane.b32.xlu0 %v6690_v15, %s7033_s15  ;;  %v6887_v28 = vld [vmem:[#allocation2 + $0x12c] sm:$0xff]  ;;  %v3992_v30 = vsel %vm2234_vm5, %v3960_v17, %v6283_v52  ;;  %v6488_v61 = vunpack.i.l.bf16 %v9131_v62 }
 0x379   : > { %5339 = vmatmul.msk.bf16.vlgmr.msrb.gmra.mxu1 %vm2505_vm12, %v4202_v57  ;;  %v3961_v58 = vsel %vm644_vm1, %v6887_v28, %v6279_v8  ;;  %v6489_v8 = vunpack.i.h.bf16 %v9131_v62  ;;  %v3953_v41 = vsel %vm644_vm1, %v6889_v37, %v6254_v21  ;;  %v6890_v57 = vld [vmem:[#allocation2 + $0xa4] sm:$0xff]  ;;  %v6259_v52 = vunpack.i.h.bf16 %v8791_v38 }
 0x37a   : > { %v6472_v45 = vpop.permute.xlu0 %6471  ;;  %v3993_v39 = vsel %vm2234_vm5, %v3961_v58, %v6284_v43  ;;  %v3952_v40 = vsel %vm644_vm1, %v6890_v57, %v6253_v25  ;;  %v6294_v21 = vunpack.i.h.bf16 %v8866_v31  ;;  %v6293_v25 = vunpack.i.l.bf16 %v8866_v31 }
 0x37b   : > { %v6474_v46 = vunpack.i.h.bf16 %v6472_v45  ;;  %v6473_v47 = vunpack.i.l.bf16 %v6472_v45  ;;  %6686 = vrot.lane.b32.xlu2 %v6685_v34, %s7032_s29  ;;  %v6258_v45 = vunpack.i.l.bf16 %v8791_v38  ;;  %v3985_v17 = vsel %vm2234_vm5, %v3953_v41, %v6259_v52 }
 0x37c   : > { %v6482_v10 = vpop.permute.xlu1 %6481  ;;  %v6298_v31 = vunpack.i.l.bf16 %v8835_v35 }
 0x37d   : > { %v3969_v18 = vsel %vm644_vm1, %v8837_v60, %v6474_v46  ;;  %v3968_v42 = vsel %vm644_vm1, %v8850_v5, %v6473_v47  ;;  %v9255_v50 = vpop.permute.xlu2 %6551  ;;  %v6484_v15 = vunpack.i.h.bf16 %v6482_v10  ;;  %v6483_v19 = vunpack.i.l.bf16 %v6482_v10 }
 0x37e   : > { %v9262_v12 = vsel %vm2234_vm5, %v3968_v42, %v6478_v29  ;;  %v9265_v60 = vsel %vm2234_vm5, %v3969_v18, %v6479_v24  ;;  %v6289_v46 = vunpack.i.h.bf16 %v8857_v23  ;;  %v6288_v47 = vunpack.i.l.bf16 %v8857_v23 }
 0x37f   : > { %v4024_v5 = vsel %vm2267_vm6, %v3992_v30, %v6483_v19  ;;  %v4025_v55 = vsel %vm2267_vm6, %v3993_v39, %v6484_v15  ;;  %v3984_v51 = vsel %vm2234_vm5, %v3952_v40, %v6258_v45  ;;  %v6299_v30 = vunpack.i.h.bf16 %v8835_v35 }
 0x380   : > { %6696 = vrot.lane.b32.xlu0 %v9178_v33, %s7029_s20  ;;  %v4056_v62 = vsel %vm2300_vm7, %v4024_v5, %v6488_v61  ;;  %v4057_v43 = vsel %vm2300_vm7, %v4025_v55, %v6489_v8  ;;  %v4016_v18 = vsel %vm2267_vm6, %v3984_v51, %v6288_v47  ;;  %v6504_v5 = vunpack.i.h.bf16 %v9165_v13  ;;  %s5168_s20 = sshll.u32 %s9744_s17, 4  ;;  %s5169_s20 = int_to_ptr.vmem [resolvable:$true] %s5168_s20 }
 0x381   : > { %v4048_v42 = vsel %vm2300_vm7, %v4016_v18, %v6293_v25  ;;  %v6503_v55 = vunpack.i.l.bf16 %v9165_v13  ;;  %v6519_v40 = vunpack.i.h.bf16 %v9195_v53 }
 0x382   : > { %v6492_v28 = vpop.permute.xlu0 %6491  ;;  %v4080_v8 = vsel %vm2333_vm8, %v4048_v42, %v6298_v31 }
 0x383   : > { %v6494_v33 = vunpack.i.h.bf16 %v6492_v28  ;;  %v6493_v58 = vunpack.i.l.bf16 %v6492_v28  ;;  %6701 = vrot.lane.b32.xlu2 %v6685_v34, %s7030_s26  ;;  %v4017_v34 = vsel %vm2267_vm6, %v3985_v17, %v6289_v46  ;;  %s5170_s26 = sshll.u32 %s5167_s19, 4  ;;  %s5171_s26 = int_to_ptr.hbm [resolvable:$true] %s5170_s26 }
 0x384   : > { %v6507_v23 = vpop.permute.xlu1 %6506  ;;  %v4049_v10 = vsel %vm2300_vm7, %v4017_v34, %v6294_v21  ;;  %s6969_s12 = sshra.s32 %s5171_s26, 4  ;;  %s6970_s12 = int_to_ptr.hbm [resolvable:$true] %s6969_s12 }
 0x385   : > { %v9285_v24 = vsel %vm2333_vm8, %v4056_v62, %v6493_v58  ;;  %v9288_v38 = vsel %vm2333_vm8, %v4057_v43, %v6494_v33  ;;  %v9290_v29 = vpop.permute.xlu2 %6571  ;;  %v4081_v61 = vsel %vm2333_vm8, %v4049_v10, %v6299_v30  ;;  %v6518_v62 = vunpack.i.l.bf16 %v9195_v53  ;;  %s6971_s29 = scalar_lea.hbm %s6970_s12, 256  ;;  %p6976_p0 = scmp.lt.s32.totalorder %s6970_s12, %s10042_s13 }
 0x386   : > { %v6509_v52 = vunpack.i.h.bf16 %v6507_v23  ;;  %v6508_v45 = vunpack.i.l.bf16 %v6507_v23  ;;  %p6972_p6 = scmp.ne.s32.totalorder %s6970_s12, %s6971_s29  ;;  %p6977_p1 = scmp.lt.s32.totalorder %s6975_s21, %s6971_s29 }
 0x388   : > { %p6973_p9 = pnand %p6972_p6, %p7160_p11  ;;  %p6978_p3 = por %p6977_p1, %p6976_p0 }
 0x38a   : > { %v6497_v39 = vpop.permute.xlu0 %6496  ;;  %p6974_p13 = pneg %p6973_p9 }
 0x38b   : > { %v6499_v15 = vunpack.i.h.bf16 %v6497_v39  ;;  %v6498_v19 = vunpack.i.l.bf16 %v6497_v39  ;;  %3892 = vrot.lane.b32.xlu2 %v9222_v32, %s7031_s23  ;;  %s5156_s23 = scalar_lea.sflag [#allocation6], %s7196_s14 }
 0x38c   : > { %v6512_v57 = vpop.permute.xlu1 %6511  ;;  %p6979_p4 = pnand %p6978_p3, %p6974_p13 }
 0x38d   : > { %v4112_v37 = vsel %vm2366_vm9, %v4080_v8, %v6498_v19  ;;  %v4113_v41 = vsel %vm2366_vm9, %v4081_v61, %v6499_v15  ;;  %v9306_v35 = vpop.permute.xlu2 %6576  ;;  %v6514_v32 = vunpack.i.h.bf16 %v6512_v57  ;;  %v6513_v43 = vunpack.i.l.bf16 %v6512_v57 }
 0x38e   : > { %v4144_v46 = vsel %vm2399_vm10, %v4112_v37, %v6503_v55  ;;  %v4145_v47 = vsel %vm2399_vm10, %v4113_v41, %v6504_v5 }
 0x38f   : > { %v3971_v13 = vsel %vm644_vm1, %v8870_v59, %v6514_v32  ;;  %v3970_v28 = vsel %vm644_vm1, %v8895_v7, %v6513_v43  ;;  %v4176_v33 = vsel %vm2432_vm11, %v4144_v46, %v6508_v45  ;;  %v4177_v58 = vsel %vm2432_vm11, %v4145_v47, %v6509_v52 }
 0x390   : > { %v9319_v53 = vsel %vm2234_vm5, %v3970_v28, %v6518_v62  ;;  %v9322_v51 = vsel %vm2234_vm5, %v3971_v13, %v6519_v40  ;;  %v4203_v21 = vpack.c.bf16 %v4177_v58, %v4176_v33  ;;  %v6553_v13 = vunpack.i.l.bf16 %v9255_v50 }
 0x392   : > { %v6527_v17 = vpop.permute.xlu0 %6526  ;;  %5340 = vmatmul.msk.bf16.gmra.mxu1 %vm2505_vm12, %v4203_v21 }
 0x393   : > { %v6529_v25 = vunpack.i.h.bf16 %v6527_v17  ;;  %v6528_v23 = vunpack.i.l.bf16 %v6527_v17 }
 0x394   : > { %v6532_v18 = vpop.permute.xlu1 %6531 }
 0x395   : > { %v4058_v59 = vsel %vm2300_vm7, %v9240_v0, %v6528_v23  ;;  %v4059_v7 = vsel %vm2300_vm7, %v9236_v3, %v6529_v25  ;;  %v9329_v34 = vpop.permute.xlu2 %6581  ;;  %v6534_v42 = vunpack.i.h.bf16 %v6532_v18  ;;  %v6533_v10 = vunpack.i.l.bf16 %v6532_v18 }
 0x396   : > { %v3972_v23 = vsel %vm644_vm1, %v8964_v4, %v6553_v13 }
 0x397   : > { %v9332_v30 = vsel %vm2333_vm8, %v4058_v59, %v6533_v10  ;;  %v9335_v31 = vsel %vm2333_vm8, %v4059_v7, %v6534_v42 }
 0x39a   : > { %v6542_v39 = vpop.permute.xlu0 %6541 }
 0x39b   : > { %v6544_v5 = vunpack.i.h.bf16 %v6542_v39  ;;  %v6543_v55 = vunpack.i.l.bf16 %v6542_v39 }
 0x39c   : > { %v6537_v15 = vpop.permute.xlu1 %6536 }
 0x39d   : > { %v6597_v19 = vpop.permute.xlu2 %6596  ;;  %v6539_v8 = vunpack.i.h.bf16 %v6537_v15  ;;  %v6538_v61 = vunpack.i.l.bf16 %v6537_v15 }
 0x39e   : > { %v6599_v42 = vunpack.i.h.bf16 %v6597_v19  ;;  %v6598_v10 = vunpack.i.l.bf16 %v6597_v19 }
 0x39f   : > { %v4114_v0 = vsel %vm2366_vm9, %v9004_v26, %v6538_v61  ;;  %v4115_v3 = vsel %vm2366_vm9, %v9007_v22, %v6539_v8  ;;  %v6554_v22 = vunpack.i.h.bf16 %v9255_v50 }
 0x3a0   : > { %v4146_v40 = vsel %vm2399_vm10, %v4114_v0, %v6543_v55  ;;  %v4147_v62 = vsel %vm2399_vm10, %v4115_v3, %v6544_v5  ;;  %v6574_v55 = vunpack.i.h.bf16 %v9290_v29 }
 0x3a1   : > { %v3973_v25 = vsel %vm644_vm1, %v8935_v9, %v6554_v22 }
 0x3a2   : > { %v6547_v37 = vpop.permute.xlu0 %6546 }
 0x3a3   : > { %v6549_v41 = vunpack.i.h.bf16 %v6547_v37  ;;  %v6548_v57 = vunpack.i.l.bf16 %v6547_v37  ;;  %v6573_v37 = vunpack.i.l.bf16 %v9290_v29 }
 0x3a4   : > { %v6567_v32 = vpop.permute.xlu1 %6566 }
 0x3a5   : > { %v6622_v43 = vpop.permute.xlu2 %6621  ;;  %v4178_v52 = vsel %vm2432_vm11, %v4146_v40, %v6548_v57  ;;  %v4179_v45 = vsel %vm2432_vm11, %v4147_v62, %v6549_v41  ;;  %v6569_v3 = vunpack.i.h.bf16 %v6567_v32  ;;  %v6568_v5 = vunpack.i.l.bf16 %v6567_v32 }
 0x3a6   : > { %v6624_v46 = vunpack.i.h.bf16 %v6622_v43  ;;  %v6623_v26 = vunpack.i.l.bf16 %v6622_v43  ;;  %v4204_v47 = vpack.c.bf16 %v4179_v45, %v4178_v52  ;;  %v6579_v62 = vunpack.i.h.bf16 %v9306_v35 }
 0x3a7   : > { %v6578_v32 = vunpack.i.l.bf16 %v9306_v35 }
 0x3a8   : > { %v9349_v28 = vsel %vm2267_vm6, %v9265_v60, %v6624_v46  ;;  %v9353_v33 = vsel %vm2267_vm6, %v9262_v12, %v6623_v26  ;;  %5341 = vmatmul.msk.bf16.gmra.mxu1 %vm2505_vm12, %v4204_v47  ;;  %v4117_v46 = vsel %vm2366_vm9, %v9115_v48, %v6579_v62 }
 0x3a9   : > { %v4116_v45 = vsel %vm2366_vm9, %v9112_v11, %v6578_v32  ;;  %v10192_v32 = vld [vmem:[#allocation35_spill] sm:$0xff] }
 0x3aa   : > { %v6557_v58 = vpop.permute.xlu0 %6556 }
 0x3ab   : > { %v6559_v17 = vunpack.i.h.bf16 %v6557_v58  ;;  %v6558_v21 = vunpack.i.l.bf16 %v6557_v58 }
 0x3ac   : > { %v6592_v59 = vpop.permute.xlu1 %6591 }
 0x3ad   : > { %v9361_v50 = vsel %vm2234_vm5, %v3972_v23, %v6558_v21  ;;  %v9364_v60 = vsel %vm2234_vm5, %v3973_v25, %v6559_v17  ;;  %v9366_v12 = vpop.permute.xlu2 %6641  ;;  %v6594_v7 = vunpack.i.h.bf16 %v6592_v59  ;;  %v6593_v18 = vunpack.i.l.bf16 %v6592_v59  ;;  %v10190_v25 = vld [vmem:[#allocation37_spill] sm:$0xff] }
 0x3ae   : > { %v5584_v48 = vunpack.i.h.bf16 %v10190_v25 }
 0x3af   : > { %v4030_v39 = vsel %vm2267_vm6, %v9160_v16, %v6593_v18  ;;  %v4031_v9 = vsel %vm2267_vm6, %v9163_v14, %v6594_v7  ;;  %v5583_v7 = vunpack.i.l.bf16 %v10190_v25  ;;  %v6134_v18 = vunpack.i.h.bf16 %v8671_v44 }
 0x3b0   : > { %v4062_v4 = vsel %vm2300_vm7, %v4030_v39, %v6598_v10  ;;  %v4063_v15 = vsel %vm2300_vm7, %v4031_v9, %v6599_v42  ;;  %v6133_v42 = vunpack.i.l.bf16 %v8671_v44  ;;  %v10191_v10 = vld [vmem:[#allocation24_spill] sm:$0xff]  ;;  %v6644_v9 = vunpack.i.h.bf16 %v9366_v12 }
 0x3b1   : > { %v6319_v39 = vunpack.i.h.bf16 %v10191_v10  ;;  %v10195_v10 = vld [vmem:[#allocation32_spill] sm:$0xff] }
 0x3b2   : > { %v6562_v8 = vpop.permute.xlu0 %6561 }
 0x3b3   : > { %v6564_v61 = vunpack.i.h.bf16 %v6562_v8  ;;  %v6563_v0 = vunpack.i.l.bf16 %v6562_v8  ;;  %v6643_v8 = vunpack.i.l.bf16 %v9366_v12 }
 0x3b4   : > { %v9380_v14 = vpop.permute.xlu1 %6611 }
 0x3b5   : > { %v4028_v19 = vsel %vm2267_vm6, %v9038_v27, %v6563_v0  ;;  %v4029_v16 = vsel %vm2267_vm6, %v9041_v54, %v6564_v61  ;;  %v6647_v41 = vpop.permute.xlu2 %6646  ;;  %v6584_v27 = vunpack.i.h.bf16 %v9329_v34  ;;  %v6583_v54 = vunpack.i.l.bf16 %v9329_v34 }
 0x3b6   : > { %v4060_v57 = vsel %vm2300_vm7, %v4028_v19, %v6568_v5  ;;  %v4061_v40 = vsel %vm2300_vm7, %v4029_v16, %v6569_v3  ;;  %v6649_v16 = vunpack.i.h.bf16 %v6647_v41 }
 0x3b7   : > { %v9387_v43 = vsel %vm2333_vm8, %v4060_v57, %v6573_v37  ;;  %v9390_v29 = vsel %vm2333_vm8, %v4061_v40, %v6574_v55  ;;  %v4148_v35 = vsel %vm2399_vm10, %v4116_v45, %v6583_v54  ;;  %v4149_v22 = vsel %vm2399_vm10, %v4117_v46, %v6584_v27  ;;  %v10193_v54 = vld [vmem:[#allocation23_spill] sm:$0xff] }
 0x3b8   : > { %v6648_v57 = vunpack.i.l.bf16 %v6647_v41  ;;  %v5544_v41 = vunpack.i.h.bf16 %v10193_v54  ;;  %v5543_v46 = vunpack.i.l.bf16 %v10193_v54  ;;  %v10198_v54 = vld [vmem:[#allocation42_spill] sm:$0xff] }
 0x3ba   : > { %v6587_v52 = vpop.permute.xlu0 %6586 }
 0x3bb   : > { %v6589_v26 = vunpack.i.h.bf16 %v6587_v52  ;;  %v6588_v47 = vunpack.i.l.bf16 %v6587_v52 }
 0x3bc   : > { %v9400_v13 = vpop.permute.xlu1 %6631 }
 0x3bd   : > { %v4180_v58 = vsel %vm2432_vm11, %v4148_v35, %v6588_v47  ;;  %v4181_v17 = vsel %vm2432_vm11, %v4149_v22, %v6589_v26  ;;  %v9404_v34 = vpop.permute.xlu2 %6661  ;;  %v10194_v22 = vld [vmem:[#allocation36_spill] sm:$0xff] }
 0x3be   : > { %v4205_v21 = vpack.c.bf16 %v4181_v17, %v4180_v58  ;;  %v5564_v58 = vunpack.i.h.bf16 %v10194_v22  ;;  %v6891_v17 = vld [vmem:[#allocation2 + $0xc] sm:$0xff] }
 0x3c0   : > { %5342 = vmatmul.msk.bf16.gmra.mxu1 %vm2505_vm12, %v4205_v21  ;;  %v3943_v21 = vsel %vm644_vm1, %v6891_v17, %v5544_v41  ;;  %v6149_v41 = vunpack.i.h.bf16 %v10198_v54 }
 0x3c2   : > { %v6602_v11 = vpop.permute.xlu0 %6601 }
 0x3c3   : > { %v6604_v23 = vunpack.i.h.bf16 %v6602_v11  ;;  %v6603_v59 = vunpack.i.l.bf16 %v6602_v11  ;;  %v5563_v11 = vunpack.i.l.bf16 %v10194_v22 }
 0x3c4   : > { %v6637_v3 = vpop.permute.xlu1 %6636 }
 0x3c5   : > { %v4094_v61 = vsel %vm2333_vm8, %v4062_v4, %v6603_v59  ;;  %v4095_v0 = vsel %vm2333_vm8, %v4063_v15, %v6604_v23  ;;  %v6639_v37 = vunpack.i.h.bf16 %v6637_v3  ;;  %v6638_v19 = vunpack.i.l.bf16 %v6637_v3  ;;  %v6667_v15 = vpop.permute.xlu2 %6666  ;;  %v6892_v59 = vld [vmem:[#allocation2 + $0x4] sm:$0xff] }
 0x3c6   : > { %v4126_v5 = vsel %vm2366_vm9, %v4094_v61, %v5583_v7  ;;  %v4127_v55 = vsel %vm2366_vm9, %v4095_v0, %v5584_v48  ;;  %v3942_v7 = vsel %vm644_vm1, %v6892_v59, %v5543_v46  ;;  %v5588_v61 = vunpack.i.l.bf16 %v10195_v10 }
 0x3c7   : > { %v4158_v44 = vsel %vm2399_vm10, %v4126_v5, %v6133_v42  ;;  %v4159_v40 = vsel %vm2399_vm10, %v4127_v55, %v6134_v18  ;;  %v4120_v12 = vsel %vm2366_vm9, %v9285_v24, %v6638_v19  ;;  %v4121_v4 = vsel %vm2366_vm9, %v9288_v38, %v6639_v37  ;;  %v10196_v19 = vld [vmem:[#allocation41_spill] sm:$0xff] }
 0x3c8   : > { %v9425_v62 = vsel %vm2432_vm11, %v4158_v44, %v6319_v39  ;;  %v9429_v27 = vsel %vm2432_vm11, %v4159_v40, %v10192_v32  ;;  %v4152_v52 = vsel %vm2399_vm10, %v4120_v12, %v6643_v8  ;;  %v4153_v45 = vsel %vm2399_vm10, %v4121_v4, %v6644_v9 }
 0x3c9   : > { %v9436_v26 = vsel %vm2432_vm11, %v4152_v52, %v6648_v57  ;;  %v9439_v38 = vsel %vm2432_vm11, %v4153_v45, %v6649_v16  ;;  %v4210_v47 = vpack.c.bf16 %v9429_v27, %v9425_v62  ;;  %v3975_v18 = vsel %vm2234_vm5, %v3943_v21, %v5564_v58 }
 0x3ca   : > { %v6607_v24 = vpop.permute.xlu0 %6606  ;;  %v4207_v35 = vpack.c.bf16 %v9439_v38, %v9436_v26  ;;  %v3974_v42 = vsel %vm2234_vm5, %v3942_v7, %v5563_v11  ;;  %v5589_v39 = vunpack.i.h.bf16 %v10195_v10  ;;  %v6614_v0 = vunpack.i.h.bf16 %v9380_v14  ;;  %v10203_v10 = vld [vmem:[#allocation51_spill] sm:$0xff] }
 0x3cb   : > { %v6609_v25 = vunpack.i.h.bf16 %v6607_v24  ;;  %v6608_v48 = vunpack.i.l.bf16 %v6607_v24  ;;  %v6613_v3 = vunpack.i.l.bf16 %v9380_v14  ;;  %v6668_v5 = vunpack.i.l.bf16 %v6667_v15  ;;  %v10207_v38 = vld [vmem:[#allocation39_spill] sm:$0xff] }
 0x3cc   : > { %v9448_v23 = vpop.permute.xlu1 %6656  ;;  %v5594_v16 = vunpack.i.h.bf16 %v10196_v19  ;;  %v6669_v57 = vunpack.i.h.bf16 %v6667_v15  ;;  %v5593_v12 = vunpack.i.l.bf16 %v10196_v19  ;;  %v6148_v15 = vunpack.i.l.bf16 %v10198_v54  ;;  %v10202_v54 = vld [vmem:[#allocation16_spill] sm:$0xff]  ;;  %v10206_v19 = vld [vmem:[#allocation45_spill] sm:$0xff] }
 0x3cd   : > { %v4118_v9 = vsel %vm2366_vm9, %v9204_v6, %v6608_v48  ;;  %v4119_v8 = vsel %vm2366_vm9, %v9207_v20, %v6609_v25  ;;  %v6677_v55 = vpop.permute.xlu2 %6676  ;;  %v10197_v6 = vld [vmem:[#allocation44_spill] sm:$0xff]  ;;  %v4122_v24 = vsel %vm2366_vm9, %v9332_v30, %v6668_v5  ;;  %v10199_v48 = vld [vmem:[#allocation49_spill] sm:$0xff] }
 0x3ce   : > { %v6204_v4 = vunpack.i.h.bf16 %v10197_v6  ;;  %v4150_v20 = vsel %vm2399_vm10, %v4118_v9, %v6613_v3  ;;  %v4151_v32 = vsel %vm2399_vm10, %v4119_v8, %v6614_v0  ;;  %v6203_v14 = vunpack.i.l.bf16 %v10197_v6  ;;  %v10200_v0 = vld [vmem:[#allocation47_spill] sm:$0xff] }
 0x3cf   : > { %v4123_v17 = vsel %vm2366_vm9, %v9335_v31, %v6669_v57  ;;  %v6679_v21 = vunpack.i.h.bf16 %v6677_v55  ;;  %v6678_v11 = vunpack.i.l.bf16 %v6677_v55  ;;  %v6154_v59 = vunpack.i.h.bf16 %v10199_v48 }
 0x3d0   : > { %v4007_v7 = vsel %vm2267_vm6, %v3975_v18, %v6204_v4  ;;  %v6209_v3 = vunpack.i.h.bf16 %v10200_v0  ;;  %v4006_v30 = vsel %vm2267_vm6, %v3974_v42, %v6203_v14  ;;  %v6153_v55 = vunpack.i.l.bf16 %v10199_v48 }
 0x3d1   : > { %v6208_v18 = vunpack.i.l.bf16 %v10200_v0  ;;  %v6244_v14 = vunpack.i.h.bf16 %v10202_v54 }
 0x3d2   : > { %v6617_v37 = vpop.permute.xlu0 %6616  ;;  %v4039_v6 = vsel %vm2300_vm7, %v4007_v7, %v6209_v3 }
 0x3d3   : > { %v6619_v44 = vunpack.i.h.bf16 %v6617_v37  ;;  %v6618_v40 = vunpack.i.l.bf16 %v6617_v37  ;;  %v10201_v37 = vld [vmem:[#allocation50_spill] sm:$0xff] }
 0x3d4   : > { %v6672_v52 = vpop.permute.xlu1 %6671  ;;  %v6214_v57 = vunpack.i.h.bf16 %v10201_v37  ;;  %v6213_v42 = vunpack.i.l.bf16 %v10201_v37 }
 0x3d5   : > { %v4182_v45 = vsel %vm2432_vm11, %v4150_v20, %v6618_v40  ;;  %v4183_v46 = vsel %vm2432_vm11, %v4151_v32, %v6619_v44  ;;  %v6674_v22 = vunpack.i.h.bf16 %v6672_v52  ;;  %v6673_v58 = vunpack.i.l.bf16 %v6672_v52 }
 0x3d6   : > { %v4206_v25 = vpack.c.bf16 %v4183_v46, %v4182_v45  ;;  %v4038_v32 = vsel %vm2300_vm7, %v4006_v30, %v6208_v18  ;;  %v6634_v52 = vunpack.i.h.bf16 %v9400_v13  ;;  %v6633_v45 = vunpack.i.l.bf16 %v9400_v13  ;;  %v6687_v46 = vpop.permute.xlu2 %6686 }
 0x3d7   : > { %v4154_v9 = vsel %vm2399_vm10, %v4122_v24, %v6673_v58  ;;  %v4155_v8 = vsel %vm2399_vm10, %v4123_v17, %v6674_v22  ;;  %v6243_v24 = vunpack.i.l.bf16 %v10202_v54  ;;  %v6424_v22 = vunpack.i.h.bf16 %v9129_v49  ;;  %v10205_v54 = vld [vmem:[#allocation21_spill] sm:$0xff] }
 0x3d8   : > { %5343 = vmatmul.msk.bf16.gmra.mxu1 %vm2505_vm12, %v4206_v25  ;;  %v9483_v5 = vsel %vm2432_vm11, %v4154_v9, %v6678_v11  ;;  %v9486_v31 = vsel %vm2432_vm11, %v4155_v8, %v6679_v21  ;;  %v6689_v8 = vunpack.i.h.bf16 %v6687_v46  ;;  %v6688_v13 = vunpack.i.l.bf16 %v6687_v46 }
 0x3d9   : > { %v4208_v40 = vpack.c.bf16 %v9486_v31, %v9483_v5  ;;  %v10214_v5 = vpack.c.bf16 %v9134_v63, %v9142_v2  ;;  %v9630_v2 = vld [vmem:[%s10040_s11] ss:$0 sm:$0xff] }
 0x3da   : > { %v6627_v44 = vpop.permute.xlu0 %6626 }
 0x3db   : > { %v6629_v4 = vunpack.i.h.bf16 %v6627_v44  ;;  %v6628_v20 = vunpack.i.l.bf16 %v6627_v44  ;;  %v10204_v44 = vld [vmem:[#allocation48_spill] sm:$0xff] }
 0x3dc   : > { %v6682_v21 = vpop.permute.xlu1 %6681 }
 0x3dd   : > { %v4064_v58 = vsel %vm2300_vm7, %v9353_v33, %v6628_v20  ;;  %v4065_v17 = vsel %vm2300_vm7, %v9349_v28, %v6629_v4  ;;  %v6684_v7 = vunpack.i.h.bf16 %v6682_v21  ;;  %v6683_v9 = vunpack.i.l.bf16 %v6682_v21 }
 0x3de   : > { %v4096_v11 = vsel %vm2333_vm8, %v4064_v58, %v6633_v45  ;;  %v4097_v25 = vsel %vm2333_vm8, %v4065_v17, %v6634_v52  ;;  %v4070_v4 = vsel %vm2333_vm8, %v4038_v32, %v6213_v42  ;;  %v6313_v52 = vunpack.i.l.bf16 %v10205_v54 }
 0x3df   : > { %v4128_v0 = vsel %vm2366_vm9, %v4096_v11, %v5588_v61  ;;  %v4129_v49 = vsel %vm2366_vm9, %v4097_v25, %v5589_v39  ;;  %v4036_v33 = vsel %vm2267_vm6, %v9361_v50, %v6683_v9  ;;  %v4037_v28 = vsel %vm2267_vm6, %v9364_v60, %v6684_v7 }
 0x3e0   : > { %v4160_v3 = vsel %vm2399_vm10, %v4128_v0, %v6148_v15  ;;  %v4161_v30 = vsel %vm2399_vm10, %v4129_v49, %v6149_v41  ;;  %v4068_v18 = vsel %vm2300_vm7, %v4036_v33, %v6688_v13  ;;  %v4069_v37 = vsel %vm2300_vm7, %v4037_v28, %v6689_v8 }
 0x3e1   : > { %v9520_v61 = vsel %vm2432_vm11, %v4160_v3, %v6424_v22  ;;  %v9524_v39 = vsel %vm2432_vm11, %v4161_v30, %v10203_v10  ;;  %v6249_v50 = vunpack.i.h.bf16 %v10204_v44  ;;  %v4071_v60 = vsel %vm2333_vm8, %v4039_v6, %v6214_v57 }
 0x3e2   : > { %v6652_v15 = vpop.permute.xlu0 %6651  ;;  %v4211_v41 = vpack.c.bf16 %v9524_v39, %v9520_v61  ;;  %v4103_v20 = vsel %vm2366_vm9, %v4071_v60, %v6244_v14  ;;  %v6248_v22 = vunpack.i.l.bf16 %v10204_v44  ;;  %v4102_v58 = vsel %vm2366_vm9, %v4070_v4, %v6243_v24  ;;  %v10208_v44 = vld [vmem:[#allocation43_spill] sm:$0xff]  ;;  %v10209_v60 = vld [vmem:[#allocation40_spill] sm:$0xff] }
 0x3e3   : > { %v6654_v45 = vunpack.i.h.bf16 %v6652_v15  ;;  %v6653_v46 = vunpack.i.l.bf16 %v6652_v15  ;;  %v6659_v17 = vunpack.i.h.bf16 %v9448_v23  ;;  %v6658_v42 = vunpack.i.l.bf16 %v9448_v23 }
 0x3e4   : > { %v6664_v57 = vunpack.i.h.bf16 %v9404_v34  ;;  %v6663_v6 = vunpack.i.l.bf16 %v9404_v34  ;;  %v6707_v21 = vpop.permute.xlu1 %6706  ;;  %v4135_v11 = vsel %vm2399_vm10, %v4103_v20, %v6249_v50  ;;  %v4134_v8 = vsel %vm2399_vm10, %v4102_v58, %v6248_v22 }
 0x3e5   : > { %v4034_v32 = vsel %vm2267_vm6, %v9319_v53, %v6653_v46  ;;  %v4035_v14 = vsel %vm2267_vm6, %v9322_v51, %v6654_v45  ;;  %v6708_v7 = vunpack.i.l.bf16 %v6707_v21  ;;  %v4167_v23 = vsel %vm2432_vm11, %v4135_v11, %v6313_v52 }
 0x3e6   : > { %v4066_v25 = vsel %vm2300_vm7, %v4034_v32, %v6658_v42  ;;  %v4067_v24 = vsel %vm2300_vm7, %v4035_v14, %v6659_v17  ;;  %v6429_v53 = vunpack.i.h.bf16 %v9123_v36  ;;  %v5598_v10 = vunpack.i.l.bf16 %v10207_v38 }
 0x3e7   : > { %v4098_v9 = vsel %vm2333_vm8, %v4066_v25, %v6663_v6  ;;  %v4099_v34 = vsel %vm2333_vm8, %v4067_v24, %v6664_v57  ;;  %v4166_v51 = vsel %vm2432_vm11, %v4134_v8, %v6708_v7  ;;  %v6159_v48 = vunpack.i.h.bf16 %v10208_v44 }
 0x3e8   : > { %v4130_v13 = vsel %vm2366_vm9, %v4098_v9, %v5593_v12  ;;  %v4131_v0 = vsel %vm2366_vm9, %v4099_v34, %v5594_v16  ;;  %v4198_v49 = vpack.c.bf16 %v4167_v23, %v4166_v51  ;;  %5344 = vmatmul.msk.bf16.gmra.mxu1 %vm2505_vm12, %v4207_v35  ;;  %v5599_v35 = vunpack.i.h.bf16 %v10207_v38 }
 0x3e9   : > { %v4162_v36 = vsel %vm2399_vm10, %v4130_v13, %v6153_v55  ;;  %v4163_v33 = vsel %vm2399_vm10, %v4131_v0, %v6154_v59  ;;  %v6702_v55 = vpop.permute.xlu2 %6701  ;;  %v6158_v59 = vunpack.i.l.bf16 %v10208_v44  ;;  %v6164_v15 = vunpack.i.h.bf16 %v10209_v60 }
 0x3ea   : > { %v6692_v28 = vpop.permute.xlu0 %6691  ;;  %v4194_v12 = vsel %vm2432_vm11, %v4162_v36, %v6429_v53  ;;  %v4195_v16 = vsel %vm2432_vm11, %v4163_v33, %v10206_v19  ;;  %5335 = vmatmul.msk.bf16.vlgmr.msrb.gmra.mxu0 %vm2505_vm12, %v4198_v49  ;;  %v6163_v20 = vunpack.i.l.bf16 %v10209_v60  ;;  %v6704_v57 = vunpack.i.h.bf16 %v6702_v55 }
 0x3eb   : > { %v6694_v3 = vunpack.i.h.bf16 %v6692_v28  ;;  %v6693_v30 = vunpack.i.l.bf16 %v6692_v28  ;;  %v4212_v26 = vpack.c.bf16 %v4195_v16, %v4194_v12  ;;  %v6703_v6 = vunpack.i.l.bf16 %v6702_v55 }
 0x3ec   : > { %v6709_v32 = vunpack.i.h.bf16 %v6707_v21  ;;  %v10210_v21 = vld [vmem:[#allocation25_spill] sm:$0xff] }
 0x3ed   : > { %v4100_v50 = vsel %vm2333_vm8, %v4068_v18, %v6693_v30  ;;  %v4101_v4 = vsel %vm2333_vm8, %v4069_v37, %v6694_v3 }
 0x3ee   : > { %v4132_v54 = vsel %vm2366_vm9, %v4100_v50, %v5598_v10  ;;  %v4133_v52 = vsel %vm2366_vm9, %v4101_v4, %v5599_v35 }
 0x3ef   : > { %v4164_v45 = vsel %vm2399_vm10, %v4132_v54, %v6158_v59  ;;  %v4165_v46 = vsel %vm2399_vm10, %v4133_v52, %v6159_v48 }
 0x3f0   : > { %v4196_v22 = vsel %vm2432_vm11, %v4164_v45, %v6163_v20  ;;  %v4197_v58 = vsel %vm2432_vm11, %v4165_v46, %v6164_v15 }
 0x3f1   : > { %v4213_v17 = vpack.c.bf16 %v4197_v58, %v4196_v22  ;;  %v3893_v25 = vpop.permute.xlu2 %3892 }
 0x3f2   : > { %v6697_v18 = vpop.permute.xlu0 %6696 }
 0x3f3   : > { %v6699_v42 = vunpack.i.h.bf16 %v6697_v18  ;;  %v6698_v37 = vunpack.i.l.bf16 %v6697_v18 }
 0x3f5   : > { %v4124_v14 = vsel %vm2366_vm9, %v9387_v43, %v6698_v37  ;;  %v4125_v11 = vsel %vm2366_vm9, %v9390_v29, %v6699_v42  ;;  %v10211_v43 = vld [vmem:[#allocation22_spill] sm:$0xff]  ;;  %v10213_v29 = vpack.c.bf16 %v9063_v56, %v9060_v1  ;;  %v9624_v1 = vld [vmem:[%s10039_s10] ss:$0 sm:$0xff] }
 0x3f6   : > { %v4156_v24 = vsel %vm2399_vm10, %v4124_v14, %v6703_v6  ;;  %v4157_v7 = vsel %vm2399_vm10, %v4125_v11, %v6704_v57  ;;  %v10212_v8 = vpack.c.bf16 %v10210_v21, %v10211_v43  ;;  %v4318_v56 = vpop.f32.mrf.mxu1 }
 0x3f7   : > { %v4188_v23 = vsel %vm2432_vm11, %v4156_v24, %v6709_v32  ;;  %v4189_v9 = vsel %vm2432_vm11, %v4157_v7, %v3893_v25  ;;  %v4319_v4 = vadd.f32 %v9624_v1, %v4318_v56 }
 0x3f8   : > { %v4209_v34 = vpack.c.bf16 %v4189_v9, %v4188_v23  ;;  %5345 = vmatmul.msk.bf16.gmra.mxu1 %vm2505_vm12, %v4208_v40 }
 0x3f9   : > { %v4386_v54 = vmax.f32 %v4319_v4, 0.0 }
 0x3fa   : > { %5336 = vmatmul.msk.bf16.gmra.mxu0 %vm2505_vm12, %v10212_v8 }
 0x3fb   : > { %v4422_v22 = vmul.f32 %v9630_v2, %v4386_v54 }
 0x3fd   : > { %v4470_v32 = vsel %vm644_vm1, %v4422_v22, 0.0 }
 0x3fe   : > { %v4320_v39 = vpop.f32.mrf.mxu1 }
 0x3ff   : > { %v4321_v58 = vadd.f32 %v9624_v1, %v4320_v39 }
 0x401   : > { %v4387_v57 = vmax.f32 %v4321_v58, 0.0 }
 0x403   : > { %v4423_v24 = vmul.f32 %v9630_v2, %v4387_v57 }
 0x405   : > { %v4473_v56 = vsel %vm644_vm1, %v4423_v24, 0.0 }
 0x408   : > { %5346 = vmatmul.msk.bf16.gmra.mxu1 %vm2505_vm12, %v4209_v34 }
 0x40a   : > { %5337 = vmatmul.msk.bf16.gmra.mxu0 %vm2505_vm12, %v10213_v29 }
 0x40f   : > { %v4323_v49 = vpop.f32.mrf.mxu1 }
 0x410   : > { %v4324_v7 = vadd.f32 %v9624_v1, %v4323_v49 }
 0x412   : > { %v4388_v8 = vmax.f32 %v4324_v7, 0.0 }
 0x417   : > { %v4325_v3 = vpop.f32.mrf.mxu1 }
 0x418   : > { %5347 = vmatmul.msk.bf16.gmra.mxu1 %vm2505_vm12, %v4210_v47  ;;  %v4326_v18 = vadd.f32 %v9624_v1, %v4325_v3 }
 0x41a   : > { %5338 = vmatmul.msk.bf16.gmra.mxu0 %vm2505_vm12, %v10214_v5  ;;  %v4389_v14 = vmax.f32 %v4326_v18, 0.0 }
 0x41c   : > { %v4425_v34 = vmul.f32 %v9630_v2, %v4389_v14 }
 0x425   : > { %v4328_v55 = vpop.f32.mrf.mxu1 }
 0x426   : > { %v4329_v23 = vadd.f32 %v9624_v1, %v4328_v55 }
 0x428   : > { %5348 = vmatmul.msk.bf16.gmra.mxu1 %vm2505_vm12, %v4211_v41  ;;  %v4390_v29 = vmax.f32 %v4329_v23, 0.0 }
 0x42d   : > { %v4330_v20 = vpop.f32.mrf.mxu1 }
 0x438   : > { %5349 = vmatmul.msk.bf16.gmra.mxu1 %vm2505_vm12, %v4212_v26 }
 0x43d   : > { %v4333_v37 = vpop.f32.mrf.mxu1 }
 0x43e   : > { %v4334_v21 = vadd.f32 %v9624_v1, %v4333_v37 }
 0x448   : > { %5350 = vmatmul.msk.bf16.gmra.mxu1 %vm2505_vm12, %v4213_v17 }
 0x467   : > { %v4298_v62 = vpop.f32.mrf.mxu0 }
 0x468   : > { %v4299_v63 = vadd.f32 %v9624_v1, %v4298_v62  ;;  %v4392_v62 = vmax.f32 %v4334_v21, 0.0 }
 0x46a   : > { %v4378_v27 = vmax.f32 %v4299_v63, 0.0  ;;  %v4335_v63 = vpop.f32.mrf.mxu1  ;;  %v4428_v39 = vmul.f32 %v9630_v2, %v4392_v62 }
 0x46c   : > { %v4414_v47 = vmul.f32 %v9630_v2, %v4378_v27  ;;  %v4479_v27 = vsel %vm644_vm1, %v4425_v34, 0.0  ;;  %v4488_v49 = vsel %vm644_vm1, %v4428_v39, 0.0 }
 0x46e   : > { %v4446_v31 = vsel %vm644_vm1, %v4414_v47, 0.0  ;;  %v4424_v47 = vmul.f32 %v9630_v2, %v4388_v8 }
 0x46f   : > { %v4300_v40 = vpop.f32.mrf.mxu0  ;;  %4447 = vadd.xlane.f32.xlu0 %v4446_v31  ;;  %v4426_v31 = vmul.f32 %v9630_v2, %v4390_v29 }
 0x470   : > { %v4301_v61 = vadd.f32 %v9624_v1, %v4300_v40  ;;  %v4331_v40 = vadd.f32 %v9624_v1, %v4330_v20 }
 0x472   : > { %v4379_v41 = vmax.f32 %v4301_v61, 0.0  ;;  %v4336_v61 = vadd.f32 %v9624_v1, %v4335_v63 }
 0x474   : > { %v4415_v53 = vmul.f32 %v9630_v2, %v4379_v41  ;;  %v4391_v41 = vmax.f32 %v4331_v40, 0.0 }
 0x476   : > { %v4449_v51 = vsel %vm644_vm1, %v4415_v53, 0.0  ;;  %v4393_v53 = vmax.f32 %v4336_v61, 0.0  ;;  %v10215_v61 = vld [vmem:[#allocation46_spill] sm:$0xff] }
 0x477   : > { %v4303_v13 = vpop.f32.mrf.mxu0  ;;  %4450 = vadd.xlane.f32.xlu1 %v4449_v51  ;;  %v4476_v51 = vsel %vm644_vm1, %v4424_v47, 0.0 }
 0x478   : > { %v4304_v0 = vadd.f32 %v9624_v1, %v4303_v13  ;;  %v4482_v13 = vsel %vm644_vm1, %v4426_v31, 0.0 }
 0x47a   : > { %v4380_v36 = vmax.f32 %v4304_v0, 0.0  ;;  %v4338_v0 = vpop.f32.mrf.mxu1 }
 0x47c   : > { %v4416_v33 = vmul.f32 %v9630_v2, %v4380_v36  ;;  %v4427_v36 = vmul.f32 %v9630_v2, %v4391_v41 }
 0x47e   : > { %v4452_v28 = vsel %vm644_vm1, %v4416_v33, 0.0  ;;  %v4429_v33 = vmul.f32 %v9630_v2, %v4393_v53 }
 0x47f   : > { %v4305_v12 = vpop.f32.mrf.mxu0  ;;  %4453 = vadd.xlane.f32.xlu2 %v4452_v28  ;;  %v4339_v28 = vadd.f32 %v9624_v1, %v4338_v0 }
 0x480   : > { %v4306_v19 = vadd.f32 %v9624_v1, %v4305_v12 }
 0x481   : > { %v4394_v12 = vmax.f32 %v4339_v28, 0.0 }
 0x482   : > { %v4381_v16 = vmax.f32 %v4306_v19, 0.0  ;;  %v4485_v19 = vsel %vm644_vm1, %v4427_v36, 0.0  ;;  %v4340_v55 = vpop.f32.mrf.mxu1 }
 0x483   : > { %v4430_v3 = vmul.f32 %v9630_v2, %v4394_v12 }
 0x484   : > { %v4417_v30 = vmul.f32 %v9630_v2, %v4381_v16  ;;  %v4491_v16 = vsel %vm644_vm1, %v4429_v33, 0.0 }
 0x486   : > { %v4455_v26 = vsel %vm644_vm1, %v4417_v30, 0.0  ;;  %v4494_v30 = vsel %vm644_vm1, %v4430_v3, 0.0 }
 0x487   : > { %v4308_v38 = vpop.f32.mrf.mxu0  ;;  %4456 = vadd.xlane.f32.xlu2 %v4455_v26  ;;  %v7035_v26 = vmov 0  }
 0x488   : > { %v4309_v35 = vadd.f32 %v9624_v1, %v4308_v38  ;;  %6710 = vset.pattern.permute.xlu1 %v7035_v26  ;;  %6711 = vset.pattern.permute.xlu2 %v7035_v26  ;;  %v9682_v38 = vld [vmem:[#allocation3] ss:$0 sm:$0xff] }
 0x489   : > { %6712 = vset.pattern.permute.xlu0 %v7035_v26 }
 0x48a   : > { %v4382_v10 = vmax.f32 %v4309_v35, 0.0 }
 0x48c   : > { %v4418_v44 = vmul.f32 %v9630_v2, %v4382_v10 }
 0x48e   : > { %v4458_v48 = vsel %vm644_vm1, %v4418_v44, 0.0 }
 0x48f   : > { %v4310_v59 = vpop.f32.mrf.mxu0  ;;  %4459 = vadd.xlane.f32.xlu0 %v4458_v48 }
 0x490   : > { %v4311_v50 = vadd.f32 %v9624_v1, %v4310_v59  ;;  %v4343_v59 = vpop.f32.mrf.mxu1 }
 0x492   : > { %v4383_v60 = vmax.f32 %v4311_v50, 0.0 }
 0x494   : > { %v4419_v15 = vmul.f32 %v9630_v2, %v4383_v60 }
 0x496   : > { %v4461_v52 = vsel %vm644_vm1, %v4419_v15, 0.0  ;;  %v4341_v15 = vadd.f32 %v9624_v1, %v4340_v55 }
 0x497   : > { %v4313_v45 = vpop.f32.mrf.mxu0  ;;  %4462 = vadd.xlane.f32.xlu1 %v4461_v52  ;;  %v4344_v52 = vadd.f32 %v9624_v1, %v4343_v59 }
 0x498   : > { %v4314_v46 = vadd.f32 %v9624_v1, %v4313_v45  ;;  %v4345_v60 = vpop.f32.mrf.mxu1  ;;  %v4395_v54 = vmax.f32 %v4341_v15, 0.0 }
 0x499   : > { %v4346_v18 = vadd.f32 %v9624_v1, %v4345_v60 }
 0x49a   : > { %v4384_v17 = vmax.f32 %v4314_v46, 0.0  ;;  %v4431_v45 = vmul.f32 %v9630_v2, %v4395_v54  ;;  %v4396_v46 = vmax.f32 %v4344_v52, 0.0 }
 0x49b   : > { %v4397_v37 = vmax.f32 %v4346_v18, 0.0 }
 0x49c   : > { %v4420_v42 = vmul.f32 %v9630_v2, %v4384_v17  ;;  %v4497_v58 = vsel %vm644_vm1, %v4431_v45, 0.0  ;;  %v4432_v17 = vmul.f32 %v9630_v2, %v4396_v46 }
 0x49e   : > { %v4464_v6 = vsel %vm644_vm1, %v4420_v42, 0.0  ;;  %v4500_v42 = vsel %vm644_vm1, %v4432_v17, 0.0 }
 0x49f   : > { %v4315_v11 = vpop.f32.mrf.mxu0  ;;  %4465 = vadd.xlane.f32.xlu2 %v4464_v6  ;;  %4471 = vadd.xlane.f32.xlu1 %v4470_v32  ;;  %v4433_v32 = vmul.f32 %v9630_v2, %v4397_v37 }
 0x4a0   : > { %v4316_v25 = vadd.f32 %v9624_v1, %v4315_v11  ;;  %v4348_v20 = vpop.f32.mrf.mxu1 }
 0x4a1   : > { %v4349_v28 = vadd.f32 %v9624_v1, %v4348_v20 }
 0x4a2   : > { %v4385_v9 = vmax.f32 %v4316_v25, 0.0  ;;  %v4503_v25 = vsel %vm644_vm1, %v4433_v32, 0.0 }
 0x4a4   : > { %v4421_v43 = vmul.f32 %v9630_v2, %v4385_v9 }
 0x4a6   : > { %v4467_v5 = vsel %vm644_vm1, %v4421_v43, 0.0 }
 0x4a7   : > { %4468 = vadd.xlane.f32.xlu0 %v4467_v5  ;;  %4474 = vadd.xlane.f32.xlu2 %v4473_v56 }
 0x4a8   : > { %4480 = vadd.xlane.f32.xlu1 %v4479_v27  ;;  %v4350_v22 = vpop.f32.mrf.mxu1  ;;  %v643_v27 = vld [vmem:[%s10033_s4] sm:$0x1] }
 0x4a9   : > { %v662_v39 = vadd.f32 %v10215_v61, %v643_v27  ;;  %v4351_v3 = vadd.f32 %v9624_v1, %v4350_v22 }
 0x4ab   : > { %v9718_v53 = vperm.slane %v662_v39, 0  ;;  %v4399_v55 = vmax.f32 %v4351_v3, 0.0 }
 0x4ad   : > { %v4435_v60 = vmul.f32 %v9630_v2, %v4399_v55 }
 0x4af   : > { %4477 = vadd.xlane.f32.xlu0 %v4476_v51  ;;  %4483 = vadd.xlane.f32.xlu2 %v4482_v13  ;;  %v4509_v45 = vsel %vm644_vm1, %v4435_v60, 0.0 }
 0x4b0   : > { %4489 = vadd.xlane.f32.xlu1 %v4488_v49  ;;  %v4353_v57 = vpop.f32.mrf.mxu1 }
 0x4b1   : > { %v4354_v14 = vadd.f32 %v9624_v1, %v4353_v57  ;;  %v6893_v57 = vld [vmem:[%s7202_s24 + $0x8] sm:$0xff] }
 0x4b3   : > { %v4400_v11 = vmax.f32 %v4354_v14, 0.0 }
 0x4b5   : > { %v4436_v7 = vmul.f32 %v9630_v2, %v4400_v11 }
 0x4b7   : > { %4486 = vadd.xlane.f32.xlu0 %v4485_v19  ;;  %4492 = vadd.xlane.f32.xlu2 %v4491_v16  ;;  %v4512_v9 = vsel %vm644_vm1, %v4436_v7, 0.0  ;;  %v4398_v16 = vmax.f32 %v4349_v28, 0.0 }
 0x4b8   : > { %v9713_v31 = vpop.f32.mrf.mxu1 }
 0x4bf   : > { %4495 = vadd.xlane.f32.xlu0 %v4494_v30  ;;  %v4434_v30 = vmul.f32 %v9630_v2, %v4398_v16  ;;  %v4356_v16 = vadd.f32 %v9624_v1, %v9713_v31 }
 0x4c0   : > { %v9721_v49 = vpop.f32.mrf.mxu1 }
 0x4c8   : > { %v4360_v26 = vpop.f32.mrf.mxu1 }
 0x4c9   : > { %v4361_v59 = vadd.f32 %v9624_v1, %v4360_v26 }
 0x4cb   : > { %v4403_v20 = vmax.f32 %v4361_v59, 0.0 }
 0x4e2   : > { %v4448_v35 = vpop.xlane.xlu0 %4447 }
 0x4e3   : > { %v4546_v10 = vadd.f32 %v9682_v38, %v4448_v35 }
 0x4e5   : > { %4581 = vperm.xlu1 %6710, %v4546_v10  }
 0x4ea   : > { %v4451_v44 = vpop.xlane.xlu1 %4450 }
 0x4eb   : > { %v4547_v48 = vadd.f32 %v9682_v38, %v4451_v44 }
 0x4ed   : > { %4586 = vperm.xlu2 %6711, %v4547_v48  }
 0x4f2   : > { %v4454_v50 = vpop.xlane.xlu2 %4453 }
 0x4f3   : > { %v4548_v4 = vadd.f32 %v9682_v38, %v4454_v50 }
 0x4f5   : > { %4591 = vperm.xlu0 %6712, %v4548_v4   ;;  %v4506_v4 = vsel %vm644_vm1, %v4434_v30, 0.0 }
 0x4fa   : > { %v4457_v6 = vpop.xlane.xlu2 %4456 }
 0x4fb   : > { %v4549_v23 = vadd.f32 %v9682_v38, %v4457_v6 }
 0x502   : > { %v4460_v34 = vpop.xlane.xlu0 %4459 }
 0x503   : > { %v4550_v8 = vadd.f32 %v9682_v38, %v4460_v34 }
 0x50a   : > { %v4463_v21 = vpop.xlane.xlu1 %4462 }
 0x50b   : > { %v4551_v29 = vadd.f32 %v9682_v38, %v4463_v21 }
 0x50f   : > { %4498 = vadd.xlane.f32.xlu1 %v4497_v58  ;;  %v4439_v58 = vmul.f32 %v9630_v2, %v4403_v20 }
 0x511   : > { %v4521_v37 = vsel %vm644_vm1, %v4439_v58, 0.0 }
 0x512   : > { %v4466_v24 = vpop.xlane.xlu2 %4465  ;;  %v9706_v63 = vpop.xlane.xlu1 %4471 }
 0x513   : > { %v4552_v5 = vadd.f32 %v9682_v38, %v4466_v24 }
 0x516   : > { %4501 = vadd.xlane.f32.xlu2 %v4500_v42 }
 0x51a   : > { %v4475_v43 = vpop.xlane.xlu2 %4474  ;;  %v4469_v40 = vpop.xlane.xlu0 %4468 }
 0x51b   : > { %v4555_v62 = vadd.f32 %v9682_v38, %v4475_v43  ;;  %v9716_v41 = vpop.xlane.xlu1 %4480  ;;  %v4553_v21 = vadd.f32 %v9682_v38, %v4469_v40 }
 0x51f   : > { %4504 = vadd.xlane.f32.xlu0 %v4503_v25 }
 0x522   : > { %v9703_v56 = vpop.xlane.xlu2 %4483  ;;  %v9723_v36 = vpop.xlane.xlu0 %4477 }
 0x523   : > { %v9726_v19 = vpop.xlane.xlu1 %4489  ;;  %v4558_v61 = vadd.f32 %v9682_v38, %v9703_v56 }
 0x527   : > { %4513 = vadd.xlane.f32.xlu0 %v4512_v9 }
 0x528   : > { %4596 = vperm.xlu1 %6710, %v4549_v23  }
 0x52a   : > { %v9711_v47 = vpop.xlane.xlu2 %4492  ;;  %v9730_v35 = vpop.xlane.xlu0 %4486 }
 0x52e   : > { %4601 = vperm.xlu2 %6711, %v4550_v8  }
 0x530   : > { %4606 = vperm.xlu1 %6710, %v4551_v29   ;;  %v4554_v29 = vadd.f32 %v9682_v38, %v9706_v63 }
 0x532   : > { %v9737_v22 = vpop.xlane.xlu0 %4495 }
 0x536   : > { %4611 = vperm.xlu2 %6711, %v4552_v5   ;;  %v6894_v5 = vld [vmem:[%s7202_s24] sm:$0xff] }
 0x53b   : > { %4626 = vperm.xlu0 %6712, %v4555_v62  }
 0x547   : > { %v4587_v51 = vpop.permute.xlu2 %4586 }
 0x548   : > { %v4740_v13 = vmul.f32 %v4587_v51, %v9718_v53  ;;  %v9757_v51 = vpop.f32.mrf.mxu1 }
 0x54a   : > { %v4772_v0 = vand.u32 2147483647, %v4740_v13  ;;  %vm4964_vm13 = vcmp.ge.f32.partialorder %v4740_v13, 0.0 }
 0x54c   : > { %v4804_v33 = vsub.f32 0.0, %v4772_v0 }
 0x54e   : > { %v4837_v12 = vmul.f32 1.442695, %v4804_v33  ;;  %v6895_v33 = vld [vmem:[%s7202_s24 + $0x10] sm:$0xff] }
 0x550   : > { %6720 = vpow2.f32 %v4837_v12  ;;  %v9762_v12 = vpop.f32.mrf.mxu1 }
 0x556   : > { %v6721_v10 = vpop.eup %6720 }
 0x557   : > { %v4900_v44 = vadd.f32 1.0, %v6721_v10  ;;  %v4582_v48 = vpop.permute.xlu1 %4581 }
 0x558   : > { %v4739_v50 = vmul.f32 %v4582_v48, %v9718_v53  ;;  %v4368_v55 = vpop.f32.mrf.mxu1 }
 0x559   : > { %6722 = vrcp.f32 %v4900_v44  ;;  %v4401_v44 = vmax.f32 %v4356_v16, 0.0  ;;  %v4369_v59 = vadd.f32 %v9624_v1, %v4368_v55 }
 0x55a   : > { %v4771_v15 = vand.u32 2147483647, %v4739_v50  ;;  %4507 = vadd.xlane.f32.xlu1 %v4506_v4  ;;  %vm4963_vm14 = vcmp.ge.f32.partialorder %v4739_v50, 0.0 }
 0x55b   : > { %v4437_v60 = vmul.f32 %v9630_v2, %v4401_v44  ;;  %v4406_v31 = vmax.f32 %v4369_v59, 0.0 }
 0x55c   : > { %v4803_v54 = vsub.f32 0.0, %v4771_v15 }
 0x55e   : > { %v4835_v52 = vmul.f32 1.442695, %v4803_v54 }
 0x55f   : > { %v6723_v46 = vpop.eup %6722  ;;  %4510 = vadd.xlane.f32.xlu2 %v4509_v45 }
 0x560   : > { %v4996_v17 = vmul.f32 %v6723_v46, %v6721_v10  ;;  %6724 = vpow2.f32 %v4835_v52  ;;  %v4359_v10 = vadd.f32 %v9624_v1, %v9721_v49 }
 0x562   : > { %v5028_v18 = vsel %vm4964_vm13, %v6723_v46, %v4996_v17  ;;  %v4402_v4 = vmax.f32 %v4359_v10, 0.0  ;;  %v4515_v17 = vsel %vm644_vm1, %v4437_v60, 0.0  ;;  %v4561_v60 = vadd.f32 %v9682_v38, %v9711_v47  ;;  %v6898_v47 = vld [vmem:[%s7202_s24 + $0x18] sm:$0xff] }
 0x563   : > { %v5060_v42 = vadd.f32 1.0, %v5028_v18 }
 0x564   : > { %v4438_v45 = vmul.f32 %v9630_v2, %v4402_v4 }
 0x565   : > { %v5092_v6 = vmul.f32 %v6893_v57, %v5060_v42  ;;  %4522 = vadd.xlane.f32.xlu0 %v4521_v37  ;;  %v4442_v42 = vmul.f32 %v9630_v2, %v4406_v31 }
 0x566   : > { %v6725_v32 = vpop.eup %6724 }
 0x567   : > { %5124 = vst.msk [vmem:[%s9744_s17 + $0x8] sm:$0xff] %vm512_vm0, %v5092_v6  ;;  %v4899_v14 = vadd.f32 1.0, %v6725_v32  ;;  %v4592_v11 = vpop.permute.xlu0 %4591  ;;  %v4518_v6 = vsel %vm644_vm1, %v4438_v45, 0.0 }
 0x568   : > { %v4741_v25 = vmul.f32 %v4592_v11, %v9718_v53 }
 0x569   : > { %6726 = vrcp.f32 %v4899_v14 }
 0x56a   : > { %v4773_v24 = vand.u32 2147483647, %v4741_v25  ;;  %vm4965_vm15 = vcmp.ge.f32.partialorder %v4741_v25, 0.0 }
 0x56c   : > { %v4805_v7 = vsub.f32 0.0, %v4773_v24 }
 0x56e   : > { %v4839_v23 = vmul.f32 1.442695, %v4805_v7  ;;  %v4530_v7 = vsel %vm644_vm1, %v4442_v42, 0.0 }
 0x56f   : > { %v6727_v9 = vpop.eup %6726 }
 0x570   : > { %v4995_v34 = vmul.f32 %v6727_v9, %v6725_v32  ;;  %6728 = vpow2.f32 %v4839_v23 }
 0x572   : > { %v5027_v43 = vsel %vm4963_vm14, %v6727_v9, %v4995_v34 }
 0x573   : > { %v5059_v8 = vadd.f32 1.0, %v5027_v43  ;;  %4616 = vperm.xlu1 %6710, %v4553_v21  }
 0x575   : > { %v5091_v62 = vmul.f32 %v6894_v5, %v5059_v8 }
 0x576   : > { %v6729_v27 = vpop.eup %6728 }
 0x577   : > { %5123 = vst.msk [vmem:[%s9744_s17] sm:$0xff] %vm512_vm0, %v5091_v62  ;;  %v4901_v39 = vadd.f32 1.0, %v6729_v27  ;;  %4621 = vperm.xlu2 %6711, %v4554_v29  }
 0x579   : > { %6730 = vrcp.f32 %v4901_v39  ;;  %4641 = vperm.xlu0 %6712, %v4558_v61  }
 0x57f   : > { %v6731_v40 = vpop.eup %6730 }
 0x580   : > { %v4997_v13 = vmul.f32 %v6731_v40, %v6729_v27 }
 0x582   : > { %v5029_v63 = vsel %vm4965_vm15, %v6731_v40, %v4997_v13  ;;  %v9768_v30 = vpop.xlane.xlu1 %4498 }
 0x583   : > { %v5061_v0 = vadd.f32 1.0, %v5029_v63 }
 0x585   : > { %v5093_v28 = vmul.f32 %v6895_v33, %v5061_v0  ;;  %v6896_v0 = vld [vmem:[%s7202_s24 + $0x20] sm:$0xff] }
 0x587   : > { %5125 = vst.msk [vmem:[%s9744_s17 + $0x10] sm:$0xff] %vm512_vm0, %v5093_v28 }
 0x589   : > { %v9764_v56 = vpop.xlane.xlu2 %4501 }
 0x591   : > { %v4602_v3 = vpop.permute.xlu2 %4601 }
 0x592   : > { %v4743_v26 = vmul.f32 %v4602_v3, %v9718_v53  ;;  %v9777_v46 = vpop.xlane.xlu0 %4504 }
 0x594   : > { %v4775_v48 = vand.u32 2147483647, %v4743_v26  ;;  %vm4967_vm2 = vcmp.ge.f32.partialorder %v4743_v26, 0.0 }
 0x596   : > { %v4807_v50 = vsub.f32 0.0, %v4775_v48  ;;  %v4556_v48 = vadd.f32 %v9682_v38, %v9723_v36 }
 0x598   : > { %v4843_v15 = vmul.f32 1.442695, %v4807_v50 }
 0x599   : > { %v4612_v20 = vpop.permute.xlu2 %4611 }
 0x59a   : > { %6732 = vpow2.f32 %v4843_v15  ;;  %v4745_v54 = vmul.f32 %v4612_v20, %v9718_v53  ;;  %v4597_v52 = vpop.permute.xlu1 %4596  ;;  %v9785_v9 = vpop.xlane.xlu0 %4513  ;;  %v4557_v20 = vadd.f32 %v9682_v38, %v9716_v41 }
 0x59b   : > { %v4742_v49 = vmul.f32 %v4597_v52, %v9718_v53  ;;  %v9803_v41 = vpop.f32.mrf.mxu1 }
 0x59c   : > { %v4777_v58 = vand.u32 2147483647, %v4745_v54  ;;  %vm4969_vm3 = vcmp.ge.f32.partialorder %v4745_v54, 0.0  ;;  %v6897_v54 = vld [vmem:[%s7202_s24 + $0x30] sm:$0xff] }
 0x59d   : > { %v4774_v18 = vand.u32 2147483647, %v4742_v49  ;;  %4516 = vadd.xlane.f32.xlu1 %v4515_v17  ;;  %vm4966_vm4 = vcmp.ge.f32.partialorder %v4742_v49, 0.0 }
 0x59e   : > { %v4809_v37 = vsub.f32 0.0, %v4777_v58 }
 0x59f   : > { %v4806_v57 = vsub.f32 0.0, %v4774_v18 }
 0x5a0   : > { %v6733_v32 = vpop.eup %6732  ;;  %v4847_v14 = vmul.f32 1.442695, %v4809_v37  ;;  %4519 = vadd.xlane.f32.xlu2 %v4518_v6 }
 0x5a1   : > { %v4903_v11 = vadd.f32 1.0, %v6733_v32  ;;  %v4841_v25 = vmul.f32 1.442695, %v4806_v57  ;;  %v6899_v57 = vld [vmem:[%s7202_s24 + $0x28] sm:$0xff] }
 0x5a2   : > { %6734 = vpow2.f32 %v4847_v14  ;;  %v4607_v24 = vpop.permute.xlu1 %4606 }
 0x5a3   : > { %6736 = vrcp.f32 %v4903_v11  ;;  %v4744_v23 = vmul.f32 %v4607_v24, %v9718_v53  ;;  %4531 = vadd.xlane.f32.xlu0 %v4530_v7  ;;  %v9808_v11 = vpop.f32.mrf.mxu1  ;;  %v6900_v7 = vld [vmem:[%s7202_s24 + $0x48] sm:$0xff] }
 0x5a4   : > { %6738 = vpow2.f32 %v4841_v25 }
 0x5a5   : > { %v4776_v34 = vand.u32 2147483647, %v4744_v23  ;;  %vm4968_vm5 = vcmp.ge.f32.partialorder %v4744_v23, 0.0 }
 0x5a7   : > { %v4808_v21 = vsub.f32 0.0, %v4776_v34 }
 0x5a8   : > { %v6735_v43 = vpop.eup %6734 }
 0x5a9   : > { %v6737_v8 = vpop.eup %6736  ;;  %v4905_v29 = vadd.f32 1.0, %v6735_v43  ;;  %v4845_v5 = vmul.f32 1.442695, %v4808_v21 }
 0x5aa   : > { %v6739_v62 = vpop.eup %6738  ;;  %v4999_v27 = vmul.f32 %v6737_v8, %v6733_v32 }
 0x5ab   : > { %6740 = vrcp.f32 %v4905_v29  ;;  %v4902_v61 = vadd.f32 1.0, %v6739_v62  ;;  %v4375_v23 = vpop.f32.mrf.mxu1 }
 0x5ac   : > { %v5031_v39 = vsel %vm4967_vm2, %v6737_v8, %v4999_v27  ;;  %6742 = vpow2.f32 %v4845_v5  ;;  %v4366_v8 = vadd.f32 %v9624_v1, %v9762_v12  ;;  %v4376_v29 = vadd.f32 %v9624_v1, %v4375_v23 }
 0x5ad   : > { %v5063_v40 = vadd.f32 1.0, %v5031_v39  ;;  %6744 = vrcp.f32 %v4902_v61  ;;  %v4627_v13 = vpop.permute.xlu0 %4626 }
 0x5ae   : > { %v4748_v63 = vmul.f32 %v4627_v13, %v9718_v53  ;;  %v4409_v27 = vmax.f32 %v4376_v29, 0.0 }
 0x5af   : > { %v5095_v33 = vmul.f32 %v6896_v0, %v5063_v40 }
 0x5b0   : > { %v4780_v28 = vand.u32 2147483647, %v4748_v63  ;;  %vm4972_vm6 = vcmp.ge.f32.partialorder %v4748_v63, 0.0  ;;  %v4445_v63 = vmul.f32 %v9630_v2, %v4409_v27  ;;  %v4374_v27 = vadd.f32 %v9624_v1, %v9808_v11 }
 0x5b1   : > { %v6741_v16 = vpop.eup %6740  ;;  %5127 = vst.msk [vmem:[%s9744_s17 + $0x20] sm:$0xff] %vm512_vm0, %v5095_v33 }
 0x5b2   : > { %v6743_v3 = vpop.eup %6742  ;;  %v5001_v10 = vmul.f32 %v6741_v16, %v6735_v43  ;;  %v4812_v55 = vsub.f32 0.0, %v4780_v28  ;;  %v4364_v43 = vadd.f32 %v9624_v1, %v9757_v51 }
 0x5b3   : > { %v6745_v26 = vpop.eup %6744  ;;  %v4904_v44 = vadd.f32 1.0, %v6743_v3 }
 0x5b4   : > { %v5033_v59 = vsel %vm4969_vm3, %v6741_v16, %v5001_v10  ;;  %v4998_v50 = vmul.f32 %v6745_v26, %v6739_v62  ;;  %v4853_v4 = vmul.f32 1.442695, %v4812_v55  ;;  %v4404_v5 = vmax.f32 %v4364_v43, 0.0 }
 0x5b5   : > { %v5065_v15 = vadd.f32 1.0, %v5033_v59  ;;  %6746 = vrcp.f32 %v4904_v44  ;;  %v4405_v62 = vmax.f32 %v4366_v8, 0.0  ;;  %v4539_v16 = vsel %vm644_vm1, %v4445_v63, 0.0 }
 0x5b6   : > { %v5030_v31 = vsel %vm4966_vm4, %v6745_v26, %v4998_v50  ;;  %6748 = vpow2.f32 %v4853_v4  ;;  %4631 = vperm.xlu1 %6710, %v4556_v48   ;;  %v4440_v39 = vmul.f32 %v9630_v2, %v4404_v5 }
 0x5b7   : > { %v5097_v36 = vmul.f32 %v6897_v54, %v5065_v15  ;;  %v5062_v52 = vadd.f32 1.0, %v5030_v31  ;;  %4656 = vperm.xlu0 %6712, %v4561_v60   ;;  %v4441_v13 = vmul.f32 %v9630_v2, %v4405_v62 }
 0x5b8   : > { %4636 = vperm.xlu2 %6711, %v4557_v20   ;;  %v4524_v12 = vsel %vm644_vm1, %v4440_v39, 0.0  ;;  %v4408_v39 = vmax.f32 %v4374_v27, 0.0 }
 0x5b9   : > { %5129 = vst.msk [vmem:[%s9744_s17 + $0x30] sm:$0xff] %vm512_vm0, %v5097_v36  ;;  %v5094_v45 = vmul.f32 %v6898_v47, %v5062_v52  ;;  %v4527_v28 = vsel %vm644_vm1, %v4441_v13, 0.0  ;;  %v4564_v52 = vadd.f32 %v9682_v38, %v9764_v56 }
 0x5bb   : > { %v6747_v58 = vpop.eup %6746  ;;  %5126 = vst.msk [vmem:[%s9744_s17 + $0x18] sm:$0xff] %vm512_vm0, %v5094_v45 }
 0x5bc   : > { %v6749_v49 = vpop.eup %6748  ;;  %v5000_v17 = vmul.f32 %v6747_v58, %v6743_v3 }
 0x5bd   : > { %v4908_v18 = vadd.f32 1.0, %v6749_v49 }
 0x5be   : > { %v5032_v42 = vsel %vm4968_vm5, %v6747_v58, %v5000_v17 }
 0x5bf   : > { %v5064_v37 = vadd.f32 1.0, %v5032_v42  ;;  %6750 = vrcp.f32 %v4908_v18  ;;  %v4560_v18 = vadd.f32 %v9682_v38, %v9726_v19  ;;  %v4559_v42 = vadd.f32 %v9682_v38, %v9730_v35 }
 0x5c1   : > { %v5096_v6 = vmul.f32 %v6899_v57, %v5064_v37  ;;  %v6901_v37 = vld [vmem:[%s7202_s24 + $0x40] sm:$0xff] }
 0x5c3   : > { %5128 = vst.msk [vmem:[%s9744_s17 + $0x28] sm:$0xff] %vm512_vm0, %v5096_v6 }
 0x5c5   : > { %v6751_v32 = vpop.eup %6750 }
 0x5c6   : > { %v5004_v14 = vmul.f32 %v6751_v32, %v6749_v49 }
 0x5c8   : > { %v5036_v25 = vsel %vm4972_vm6, %v6751_v32, %v5004_v14 }
 0x5c9   : > { %v5068_v24 = vadd.f32 1.0, %v5036_v25 }
 0x5cb   : > { %v5100_v34 = vmul.f32 %v6900_v7, %v5068_v24  ;;  %v6902_v7 = vld [vmem:[%s7202_s24 + $0x38] sm:$0xff] }
 0x5cd   : > { %5132 = vst.msk [vmem:[%s9744_s17 + $0x48] sm:$0xff] %vm512_vm0, %v5100_v34  ;;  %v9822_v0 = vpop.xlane.xlu1 %4507 }
 0x5d2   : > { %v4511_v21 = vpop.xlane.xlu2 %4510 }
 0x5d3   : > { %v4567_v6 = vadd.f32 %v9682_v38, %v4511_v21  ;;  %v6903_v21 = vld [vmem:[%s7202_s24 + $0x60] sm:$0xff] }
 0x5d8   : > { %v9827_v10 = vpop.xlane.xlu0 %4522 }
 0x5da   : > { %v4622_v61 = vpop.permute.xlu2 %4621 }
 0x5db   : > { %v4747_v40 = vmul.f32 %v4622_v61, %v9718_v53  ;;  %v4371_v61 = vadd.f32 %v9624_v1, %v9803_v41 }
 0x5dd   : > { %v4779_v51 = vand.u32 2147483647, %v4747_v40  ;;  %vm4971_vm7 = vcmp.ge.f32.partialorder %v4747_v40, 0.0  ;;  %v4407_v40 = vmax.f32 %v4371_v61, 0.0 }
 0x5df   : > { %v4811_v33 = vsub.f32 0.0, %v4779_v51  ;;  %v4444_v51 = vmul.f32 %v9630_v2, %v4408_v39 }
 0x5e0   : > { %4525 = vadd.xlane.f32.xlu1 %v4524_v12 }
 0x5e1   : > { %v4851_v3 = vmul.f32 1.442695, %v4811_v33  ;;  %4528 = vadd.xlane.f32.xlu2 %v4527_v28  ;;  %4540 = vadd.xlane.f32.xlu0 %v4539_v16  ;;  %v4443_v33 = vmul.f32 %v9630_v2, %v4407_v40  ;;  %v4536_v11 = vsel %vm644_vm1, %v4444_v51, 0.0 }
 0x5e3   : > { %6752 = vpow2.f32 %v4851_v3  ;;  %v4533_v1 = vsel %vm644_vm1, %v4443_v33, 0.0 }
 0x5e5   : > { %v4617_v55 = vpop.permute.xlu1 %4616 }
 0x5e6   : > { %v4746_v26 = vmul.f32 %v4617_v55, %v9718_v53 }
 0x5e8   : > { %v4778_v44 = vand.u32 2147483647, %v4746_v26  ;;  %vm4970_vm8 = vcmp.ge.f32.partialorder %v4746_v26, 0.0 }
 0x5e9   : > { %v6753_v48 = vpop.eup %6752 }
 0x5ea   : > { %v4907_v59 = vadd.f32 1.0, %v6753_v48  ;;  %v4810_v50 = vsub.f32 0.0, %v4778_v44 }
 0x5eb   : > { %v4642_v4 = vpop.permute.xlu0 %4641 }
 0x5ec   : > { %6754 = vrcp.f32 %v4907_v59  ;;  %v4849_v60 = vmul.f32 1.442695, %v4810_v50  ;;  %v4751_v15 = vmul.f32 %v4642_v4, %v9718_v53 }
 0x5ee   : > { %6756 = vpow2.f32 %v4849_v60  ;;  %v4783_v20 = vand.u32 2147483647, %v4751_v15  ;;  %vm4975_vm9 = vcmp.ge.f32.partialorder %v4751_v15, 0.0 }
 0x5f0   : > { %v4815_v31 = vsub.f32 0.0, %v4783_v20 }
 0x5f2   : > { %v6755_v54 = vpop.eup %6754  ;;  %v4859_v36 = vmul.f32 1.442695, %v4815_v31 }
 0x5f3   : > { %v5003_v47 = vmul.f32 %v6755_v54, %v6753_v48 }
 0x5f4   : > { %v6757_v45 = vpop.eup %6756  ;;  %6758 = vpow2.f32 %v4859_v36 }
 0x5f5   : > { %v5035_v58 = vsel %vm4971_vm7, %v6755_v54, %v5003_v47  ;;  %v4906_v49 = vadd.f32 1.0, %v6757_v45  ;;  %4671 = vperm.xlu0 %6712, %v4564_v52  }
 0x5f6   : > { %v5067_v17 = vadd.f32 1.0, %v5035_v58 }
 0x5f7   : > { %6760 = vrcp.f32 %v4906_v49  ;;  %v4563_v49 = vadd.f32 %v9682_v38, %v9768_v30 }
 0x5f8   : > { %v5099_v57 = vmul.f32 %v6901_v37, %v5067_v17 }
 0x5f9   : > { %4651 = vperm.xlu2 %6711, %v4560_v18   ;;  %4646 = vperm.xlu1 %6710, %v4559_v42   ;;  %v6904_v18 = vld [vmem:[%s7202_s24 + $0x58] sm:$0xff] }
 0x5fa   : > { %v6759_v56 = vpop.eup %6758  ;;  %5131 = vst.msk [vmem:[%s9744_s17 + $0x40] sm:$0xff] %vm512_vm0, %v5099_v57  ;;  %v4562_v57 = vadd.f32 %v9682_v38, %v9737_v22 }
 0x5fb   : > { %v4911_v32 = vadd.f32 1.0, %v6759_v56 }
 0x5fd   : > { %v6761_v14 = vpop.eup %6760  ;;  %6762 = vrcp.f32 %v4911_v32  ;;  %4686 = vperm.xlu0 %6712, %v4567_v6   ;;  %v4566_v6 = vadd.f32 %v9682_v38, %v9822_v0 }
 0x5fe   : > { %v5002_v19 = vmul.f32 %v6761_v14, %v6757_v45 }
 0x600   : > { %v5034_v35 = vsel %vm4970_vm8, %v6761_v14, %v5002_v19  ;;  %v4565_v14 = vadd.f32 %v9682_v38, %v9777_v46  ;;  %v4568_v46 = vadd.f32 %v9682_v38, %v9785_v9 }
 0x601   : > { %v5066_v25 = vadd.f32 1.0, %v5034_v35 }
 0x603   : > { %v6763_v24 = vpop.eup %6762  ;;  %v5098_v34 = vmul.f32 %v6902_v7, %v5066_v25  ;;  %v6905_v7 = vld [vmem:[%s7202_s24 + $0x50] sm:$0xff] }
 0x604   : > { %v5007_v23 = vmul.f32 %v6763_v24, %v6759_v56 }
 0x605   : > { %5130 = vst.msk [vmem:[%s9744_s17 + $0x38] sm:$0xff] %vm512_vm0, %v5098_v34 }
 0x606   : > { %v5039_v43 = vsel %vm4975_vm9, %v6763_v24, %v5007_v23  ;;  %v6906_v23 = vld [vmem:[%s7202_s24 + $0x78] sm:$0xff] }
 0x607   : > { %v5071_v8 = vadd.f32 1.0, %v5039_v43 }
 0x609   : > { %v5103_v29 = vmul.f32 %v6903_v21, %v5071_v8  ;;  %v4571_v8 = vadd.f32 %v9682_v38, %v9827_v10 }
 0x60b   : > { %5135 = vst.msk [vmem:[%s9744_s17 + $0x60] sm:$0xff] %vm512_vm0, %v5103_v29 }
 0x610   : > { %v4517_v28 = vpop.xlane.xlu1 %4516 }
 0x611   : > { %v4569_v43 = vadd.f32 %v9682_v38, %v4517_v28 }
 0x613   : > { %v4520_v5 = vpop.xlane.xlu2 %4519 }
 0x614   : > { %v4570_v62 = vadd.f32 %v9682_v38, %v4520_v5 }
 0x616   : > { %4701 = vperm.xlu0 %6712, %v4570_v62   ;;  %v9855_v3 = vpop.xlane.xlu0 %4531 }
 0x617   : > { %v4574_v27 = vadd.f32 %v9682_v38, %v9855_v3 }
 0x61b   : > { %v4637_v13 = vpop.permute.xlu2 %4636 }
 0x61c   : > { %v4750_v63 = vmul.f32 %v4637_v13, %v9718_v53 }
 0x61e   : > { %v4782_v12 = vand.u32 2147483647, %v4750_v63  ;;  %vm4974_vm1 = vcmp.ge.f32.partialorder %v4750_v63, 0.0 }
 0x620   : > { %v4814_v16 = vsub.f32 0.0, %v4782_v12 }
 0x622   : > { %v4857_v55 = vmul.f32 1.442695, %v4814_v16  ;;  %4537 = vadd.xlane.f32.xlu2 %v4536_v11 }
 0x623   : > { %4534 = vadd.xlane.f32.xlu1 %v4533_v1 }
 0x624   : > { %6764 = vpow2.f32 %v4857_v55 }
 0x628   : > { %v4632_v41 = vpop.permute.xlu1 %4631 }
 0x629   : > { %v4749_v26 = vmul.f32 %v4632_v41, %v9718_v53  ;;  %v4657_v44 = vpop.permute.xlu0 %4656 }
 0x62a   : > { %v6765_v48 = vpop.eup %6764  ;;  %v4754_v2 = vmul.f32 %v4657_v44, %v9718_v53 }
 0x62b   : > { %v4910_v59 = vadd.f32 1.0, %v6765_v48  ;;  %v4781_v50 = vand.u32 2147483647, %v4749_v26  ;;  %vm4973_vm10 = vcmp.ge.f32.partialorder %v4749_v26, 0.0 }
 0x62c   : > { %v4786_v4 = vand.u32 2147483647, %v4754_v2  ;;  %vm4978_vm11 = vcmp.ge.f32.partialorder %v4754_v2, 0.0 }
 0x62d   : > { %6766 = vrcp.f32 %v4910_v59  ;;  %v4813_v60 = vsub.f32 0.0, %v4781_v50 }
 0x62e   : > { %v4818_v15 = vsub.f32 0.0, %v4786_v4 }
 0x62f   : > { %v4855_v20 = vmul.f32 1.442695, %v4813_v60 }
 0x630   : > { %v4865_v31 = vmul.f32 1.442695, %v4818_v15 }
 0x631   : > { %6768 = vpow2.f32 %v4855_v20 }
 0x632   : > { %6770 = vpow2.f32 %v4865_v31 }
 0x633   : > { %v6767_v54 = vpop.eup %6766 }
 0x634   : > { %v5006_v36 = vmul.f32 %v6767_v54, %v6765_v48 }
 0x636   : > { %v5038_v52 = vsel %vm4974_vm1, %v6767_v54, %v5006_v36 }
 0x637   : > { %v6769_v47 = vpop.eup %6768  ;;  %v5070_v45 = vadd.f32 1.0, %v5038_v52 }
 0x638   : > { %v6771_v58 = vpop.eup %6770  ;;  %v4909_v17 = vadd.f32 1.0, %v6769_v47 }
 0x639   : > { %v5102_v42 = vmul.f32 %v6904_v18, %v5070_v45  ;;  %v4914_v37 = vadd.f32 1.0, %v6771_v58 }
 0x63a   : > { %6772 = vrcp.f32 %v4909_v17  ;;  %4666 = vperm.xlu2 %6711, %v4563_v49  }
 0x63b   : > { %5134 = vst.msk [vmem:[%s9744_s17 + $0x58] sm:$0xff] %vm512_vm0, %v5102_v42  ;;  %6774 = vrcp.f32 %v4914_v37 }
 0x63c   : > { %4661 = vperm.xlu1 %6710, %v4562_v57  }
 0x640   : > { %v6773_v56 = vpop.eup %6772 }
 0x641   : > { %v6775_v30 = vpop.eup %6774  ;;  %v5005_v32 = vmul.f32 %v6773_v56, %v6769_v47  ;;  %v6907_v47 = vld [vmem:[%s7202_s24 + $0x70] sm:$0xff] }
 0x642   : > { %v5010_v22 = vmul.f32 %v6775_v30, %v6771_v58  ;;  %4681 = vperm.xlu2 %6711, %v4566_v6  }
 0x643   : > { %v5037_v19 = vsel %vm4973_vm10, %v6773_v56, %v5005_v32 }
 0x644   : > { %v5069_v35 = vadd.f32 1.0, %v5037_v19  ;;  %v5042_v25 = vsel %vm4978_vm11, %v6775_v30, %v5010_v22  ;;  %4676 = vperm.xlu1 %6710, %v4565_v14   ;;  %v6908_v30 = vld [vmem:[%s7202_s24 + $0x90] sm:$0xff] }
 0x645   : > { %v5074_v24 = vadd.f32 1.0, %v5042_v25 }
 0x646   : > { %v5101_v34 = vmul.f32 %v6905_v7, %v5069_v35 }
 0x647   : > { %v5106_v0 = vmul.f32 %v6906_v23, %v5074_v24  ;;  %v6909_v24 = vld [vmem:[%s7202_s24 + $0x68] sm:$0xff] }
 0x648   : > { %5133 = vst.msk [vmem:[%s9744_s17 + $0x50] sm:$0xff] %vm512_vm0, %v5101_v34 }
 0x649   : > { %5138 = vst.msk [vmem:[%s9744_s17 + $0x78] sm:$0xff] %vm512_vm0, %v5106_v0 }
 0x64a   : > { %4696 = vperm.xlu2 %6711, %v4569_v43  }
 0x64c   : > { %4691 = vperm.xlu1 %6710, %v4568_v46   ;;  %v6910_v46 = vld [vmem:[%s7202_s24 + $0xa8] sm:$0xff] }
 0x653   : > { %v4526_v21 = vpop.xlane.xlu1 %4525 }
 0x654   : > { %v4572_v29 = vadd.f32 %v9682_v38, %v4526_v21  ;;  %v4529_v5 = vpop.xlane.xlu2 %4528  ;;  %4706 = vperm.xlu1 %6710, %v4571_v8   ;;  %v4541_v39 = vpop.xlane.xlu0 %4540 }
 0x655   : > { %v4573_v62 = vadd.f32 %v9682_v38, %v4529_v5  ;;  %v4577_v10 = vadd.f32 %v9682_v38, %v4541_v39 }
 0x656   : > { %4711 = vperm.xlu2 %6711, %v4572_v29  }
 0x657   : > { %4716 = vperm.xlu0 %6712, %v4573_v62  }
 0x65c   : > { %v4652_v61 = vpop.permute.xlu2 %4651  ;;  %4721 = vperm.xlu1 %6710, %v4574_v27  }
 0x65d   : > { %v4753_v9 = vmul.f32 %v4652_v61, %v9718_v53 }
 0x65f   : > { %v4785_v40 = vand.u32 2147483647, %v4753_v9  ;;  %vm4977_vm12 = vcmp.ge.f32.partialorder %v4753_v9, 0.0 }
 0x661   : > { %v4817_v13 = vsub.f32 0.0, %v4785_v40 }
 0x663   : > { %v4863_v63 = vmul.f32 1.442695, %v4817_v13 }
 0x664   : > { %4736 = vperm.xlu1 %6710, %v4577_v10  }
 0x665   : > { %6776 = vpow2.f32 %v4863_v63 }
 0x667   : > { %v4672_v51 = vpop.permute.xlu0 %4671 }
 0x668   : > { %v4757_v33 = vmul.f32 %v4672_v51, %v9718_v53 }
 0x66a   : > { %v4789_v12 = vand.u32 2147483647, %v4757_v33  ;;  %vm4981_vm13 = vcmp.ge.f32.partialorder %v4757_v33, 0.0 }
 0x66b   : > { %v6777_v28 = vpop.eup %6776  ;;  %v4647_v16 = vpop.permute.xlu1 %4646 }
 0x66c   : > { %v4913_v11 = vadd.f32 1.0, %v6777_v28  ;;  %v4821_v3 = vsub.f32 0.0, %v4789_v12  ;;  %v4752_v55 = vmul.f32 %v4647_v16, %v9718_v53 }
 0x66e   : > { %6778 = vrcp.f32 %v4913_v11  ;;  %v4871_v1 = vmul.f32 1.442695, %v4821_v3  ;;  %v4784_v41 = vand.u32 2147483647, %v4752_v55  ;;  %vm4976_vm14 = vcmp.ge.f32.partialorder %v4752_v55, 0.0  ;;  %v6911_v3 = vld [vmem:[%s7202_s24 + $0xc0] sm:$0xff] }
 0x66f   : > { %v4687_v26 = vpop.permute.xlu0 %4686 }
 0x670   : > { %6780 = vpow2.f32 %v4871_v1  ;;  %v4816_v44 = vsub.f32 0.0, %v4784_v41  ;;  %v4760_v48 = vmul.f32 %v4687_v26, %v9718_v53 }
 0x672   : > { %v4861_v2 = vmul.f32 1.442695, %v4816_v44  ;;  %v4792_v59 = vand.u32 2147483647, %v4760_v48  ;;  %vm4984_vm15 = vcmp.ge.f32.partialorder %v4760_v48, 0.0 }
 0x674   : > { %v6779_v50 = vpop.eup %6778  ;;  %6782 = vpow2.f32 %v4861_v2  ;;  %v4824_v4 = vsub.f32 0.0, %v4792_v59 }
 0x675   : > { %v5009_v60 = vmul.f32 %v6779_v50, %v6777_v28 }
 0x676   : > { %v6781_v15 = vpop.eup %6780  ;;  %v4877_v20 = vmul.f32 1.442695, %v4824_v4 }
 0x677   : > { %v5041_v31 = vsel %vm4977_vm12, %v6779_v50, %v5009_v60  ;;  %v4917_v54 = vadd.f32 1.0, %v6781_v15 }
 0x678   : > { %v5073_v36 = vadd.f32 1.0, %v5041_v31  ;;  %6784 = vpow2.f32 %v4877_v20 }
 0x679   : > { %6786 = vrcp.f32 %v4917_v54 }
 0x67a   : > { %v6783_v52 = vpop.eup %6782  ;;  %v5105_v45 = vmul.f32 %v6907_v47, %v5073_v36 }
 0x67b   : > { %v4912_v58 = vadd.f32 1.0, %v6783_v52 }
 0x67c   : > { %5137 = vst.msk [vmem:[%s9744_s17 + $0x70] sm:$0xff] %vm512_vm0, %v5105_v45 }
 0x67d   : > { %6788 = vrcp.f32 %v4912_v58 }
 0x67e   : > { %v6785_v49 = vpop.eup %6784 }
 0x67f   : > { %v6787_v17 = vpop.eup %6786  ;;  %v4920_v18 = vadd.f32 1.0, %v6785_v49 }
 0x680   : > { %v5013_v42 = vmul.f32 %v6787_v17, %v6781_v15 }
 0x681   : > { %6790 = vrcp.f32 %v4920_v18 }
 0x682   : > { %v5045_v37 = vsel %vm4981_vm13, %v6787_v17, %v5013_v42 }
 0x683   : > { %v6789_v57 = vpop.eup %6788  ;;  %v5077_v56 = vadd.f32 1.0, %v5045_v37 }
 0x684   : > { %v5008_v6 = vmul.f32 %v6789_v57, %v6783_v52 }
 0x685   : > { %v5109_v32 = vmul.f32 %v6908_v30, %v5077_v56 }
 0x686   : > { %v5040_v14 = vsel %vm4976_vm14, %v6789_v57, %v5008_v6 }
 0x687   : > { %v6791_v22 = vpop.eup %6790  ;;  %5141 = vst.msk [vmem:[%s9744_s17 + $0x90] sm:$0xff] %vm512_vm0, %v5109_v32  ;;  %v5072_v19 = vadd.f32 1.0, %v5040_v14  ;;  %v6912_v32 = vld [vmem:[%s7202_s24 + $0x88] sm:$0xff] }
 0x688   : > { %v5016_v35 = vmul.f32 %v6791_v22, %v6785_v49  ;;  %v4702_v25 = vpop.permute.xlu0 %4701 }
 0x689   : > { %v5104_v7 = vmul.f32 %v6909_v24, %v5072_v19  ;;  %v4763_v34 = vmul.f32 %v4702_v25, %v9718_v53 }
 0x68a   : > { %v5048_v23 = vsel %vm4984_vm15, %v6791_v22, %v5016_v35 }
 0x68b   : > { %5136 = vst.msk [vmem:[%s9744_s17 + $0x68] sm:$0xff] %vm512_vm0, %v5104_v7  ;;  %v5080_v0 = vadd.f32 1.0, %v5048_v23  ;;  %v4795_v43 = vand.u32 2147483647, %v4763_v34  ;;  %vm4987_vm2 = vcmp.ge.f32.partialorder %v4763_v34, 0.0 }
 0x68d   : > { %v5112_v8 = vmul.f32 %v6910_v46, %v5080_v0  ;;  %v4827_v21 = vsub.f32 0.0, %v4795_v43 }
 0x68f   : > { %5144 = vst.msk [vmem:[%s9744_s17 + $0xa8] sm:$0xff] %vm512_vm0, %v5112_v8  ;;  %v4883_v29 = vmul.f32 1.442695, %v4827_v21 }
 0x691   : > { %6792 = vpow2.f32 %v4883_v29 }
 0x695   : > { %v4538_v5 = vpop.xlane.xlu2 %4537 }
 0x696   : > { %v4576_v62 = vadd.f32 %v9682_v38, %v4538_v5  ;;  %v4535_v27 = vpop.xlane.xlu1 %4534  ;;  %v6913_v5 = vld [vmem:[%s7202_s24 + $0xa0] sm:$0xff] }
 0x697   : > { %v6793_v61 = vpop.eup %6792  ;;  %v4575_v9 = vadd.f32 %v9682_v38, %v4535_v27 }
 0x698   : > { %v4923_v39 = vadd.f32 1.0, %v6793_v61  ;;  %4731 = vperm.xlu0 %6712, %v4576_v62  }
 0x699   : > { %4726 = vperm.xlu2 %6711, %v4575_v9  }
 0x69a   : > { %6794 = vrcp.f32 %v4923_v39 }
 0x69d   : > { %v4667_v40 = vpop.permute.xlu2 %4666 }
 0x69e   : > { %v4756_v13 = vmul.f32 %v4667_v40, %v9718_v53 }
 0x6a0   : > { %v6795_v10 = vpop.eup %6794  ;;  %v4788_v63 = vand.u32 2147483647, %v4756_v13  ;;  %vm4980_vm3 = vcmp.ge.f32.partialorder %v4756_v13, 0.0 }
 0x6a1   : > { %v5019_v51 = vmul.f32 %v6795_v10, %v6793_v61 }
 0x6a2   : > { %v4820_v33 = vsub.f32 0.0, %v4788_v63 }
 0x6a3   : > { %v5051_v12 = vsel %vm4987_vm2, %v6795_v10, %v5019_v51 }
 0x6a4   : > { %v5083_v28 = vadd.f32 1.0, %v5051_v12  ;;  %v4869_v16 = vmul.f32 1.442695, %v4820_v33 }
 0x6a5   : > { %v4682_v11 = vpop.permute.xlu2 %4681 }
 0x6a6   : > { %v5115_v38 = vmul.f32 %v6911_v3, %v5083_v28  ;;  %6796 = vpow2.f32 %v4869_v16  ;;  %v4759_v55 = vmul.f32 %v4682_v11, %v9718_v53 }
 0x6a8   : > { %5147 = vst.msk [vmem:[%s9744_s17 + $0xc0] sm:$0xff] %vm512_vm0, %v5115_v38  ;;  %v4791_v1 = vand.u32 2147483647, %v4759_v55  ;;  %vm4983_vm4 = vcmp.ge.f32.partialorder %v4759_v55, 0.0 }
 0x6aa   : > { %v4823_v41 = vsub.f32 0.0, %v4791_v1 }
 0x6ac   : > { %v6797_v26 = vpop.eup %6796  ;;  %v4875_v44 = vmul.f32 1.442695, %v4823_v41  ;;  %v6914_v41 = vld [vmem:[%s7202_s24 + $0xb8] sm:$0xff] }
 0x6ad   : > { %v4916_v48 = vadd.f32 1.0, %v6797_v26  ;;  %v4697_v2 = vpop.permute.xlu2 %4696 }
 0x6ae   : > { %6798 = vpow2.f32 %v4875_v44  ;;  %v9913_v59 = vmul.f32 %v4697_v2, %v9718_v53  ;;  %v4662_v50 = vpop.permute.xlu1 %4661 }
 0x6af   : > { %6800 = vrcp.f32 %v4916_v48  ;;  %v9916_v4 = vmul.f32 %v4662_v50, %v9718_v53  ;;  %v6915_v50 = vld [vmem:[%s7202_s24 + $0x80] sm:$0xff] }
 0x6b0   : > { %v4794_v60 = vand.u32 2147483647, %v9913_v59  ;;  %vm4986_vm5 = vcmp.ge.f32.partialorder %v9913_v59, 0.0 }
 0x6b1   : > { %v4787_v15 = vand.u32 2147483647, %v9916_v4  ;;  %vm4979_vm6 = vcmp.ge.f32.partialorder %v9916_v4, 0.0 }
 0x6b2   : > { %v4826_v20 = vsub.f32 0.0, %v4794_v60 }
 0x6b3   : > { %v4819_v31 = vsub.f32 0.0, %v4787_v15 }
 0x6b4   : > { %v6799_v54 = vpop.eup %6798  ;;  %v4881_v36 = vmul.f32 1.442695, %v4826_v20 }
 0x6b5   : > { %v6801_v52 = vpop.eup %6800  ;;  %v4919_v47 = vadd.f32 1.0, %v6799_v54  ;;  %v4867_v45 = vmul.f32 1.442695, %v4819_v31  ;;  %v4712_v58 = vpop.permute.xlu2 %4711 }
 0x6b6   : > { %v5012_v49 = vmul.f32 %v6801_v52, %v6797_v26  ;;  %6802 = vpow2.f32 %v4881_v36  ;;  %v9921_v17 = vmul.f32 %v4712_v58, %v9718_v53  ;;  %v4677_v18 = vpop.permute.xlu1 %4676 }
 0x6b7   : > { %6804 = vrcp.f32 %v4919_v47  ;;  %v9924_v42 = vmul.f32 %v4677_v18, %v9718_v53 }
 0x6b8   : > { %v5044_v37 = vsel %vm4980_vm3, %v6801_v52, %v5012_v49  ;;  %6806 = vpow2.f32 %v4867_v45  ;;  %v4797_v57 = vand.u32 2147483647, %v9921_v17  ;;  %vm4989_vm7 = vcmp.ge.f32.partialorder %v9921_v17, 0.0  ;;  %v6916_v17 = vld [vmem:[%s7202_s24 + $0xd0] sm:$0xff] }
 0x6b9   : > { %v5076_v56 = vadd.f32 1.0, %v5044_v37  ;;  %v4790_v6 = vand.u32 2147483647, %v9924_v42  ;;  %vm4982_vm8 = vcmp.ge.f32.partialorder %v9924_v42, 0.0 }
 0x6ba   : > { %v4829_v30 = vsub.f32 0.0, %v4797_v57 }
 0x6bb   : > { %v5108_v14 = vmul.f32 %v6912_v32, %v5076_v56  ;;  %v4822_v22 = vsub.f32 0.0, %v4790_v6 }
 0x6bc   : > { %v6803_v19 = vpop.eup %6802  ;;  %v4887_v35 = vmul.f32 1.442695, %v4829_v30 }
 0x6bd   : > { %v6805_v25 = vpop.eup %6804  ;;  %5140 = vst.msk [vmem:[%s9744_s17 + $0x88] sm:$0xff] %vm512_vm0, %v5108_v14  ;;  %v4922_v24 = vadd.f32 1.0, %v6803_v19  ;;  %v4873_v7 = vmul.f32 1.442695, %v4822_v22  ;;  %v6917_v14 = vld [vmem:[%s7202_s24 + $0x98] sm:$0xff] }
 0x6be   : > { %v6807_v34 = vpop.eup %6806  ;;  %v5015_v23 = vmul.f32 %v6805_v25, %v6799_v54  ;;  %6808 = vpow2.f32 %v4887_v35  ;;  %v4692_v0 = vpop.permute.xlu1 %4691 }
 0x6bf   : > { %6810 = vrcp.f32 %v4922_v24  ;;  %v4915_v43 = vadd.f32 1.0, %v6807_v34  ;;  %v9932_v46 = vmul.f32 %v4692_v0, %v9718_v53 }
 0x6c0   : > { %v5047_v8 = vsel %vm4983_vm4, %v6805_v25, %v5015_v23  ;;  %6812 = vpow2.f32 %v4873_v7 }
 0x6c1   : > { %v5079_v21 = vadd.f32 1.0, %v5047_v8  ;;  %6814 = vrcp.f32 %v4915_v43  ;;  %v4793_v29 = vand.u32 2147483647, %v9932_v46  ;;  %vm4985_vm9 = vcmp.ge.f32.partialorder %v9932_v46, 0.0 }
 0x6c3   : > { %v5111_v62 = vmul.f32 %v6913_v5, %v5079_v21  ;;  %v4825_v27 = vsub.f32 0.0, %v4793_v29  ;;  %v6918_v5 = vld [vmem:[%s7202_s24 + $0xb0] sm:$0xff] }
 0x6c4   : > { %v6809_v61 = vpop.eup %6808 }
 0x6c5   : > { %v6811_v9 = vpop.eup %6810  ;;  %5143 = vst.msk [vmem:[%s9744_s17 + $0xa0] sm:$0xff] %vm512_vm0, %v5111_v62  ;;  %v4925_v39 = vadd.f32 1.0, %v6809_v61  ;;  %v4879_v40 = vmul.f32 1.442695, %v4825_v27 }
 0x6c6   : > { %v6813_v13 = vpop.eup %6812  ;;  %v5018_v10 = vmul.f32 %v6811_v9, %v6803_v19  ;;  %v4707_v63 = vpop.permute.xlu1 %4706 }
 0x6c7   : > { %v6815_v51 = vpop.eup %6814  ;;  %6816 = vrcp.f32 %v4925_v39  ;;  %v4918_v33 = vadd.f32 1.0, %v6813_v13  ;;  %v9940_v12 = vmul.f32 %v4707_v63, %v9718_v53  ;;  %v6919_v63 = vld [vmem:[%s7202_s24 + $0xc8] sm:$0xff] }
 0x6c8   : > { %v5050_v28 = vsel %vm4986_vm5, %v6811_v9, %v5018_v10  ;;  %v5011_v16 = vmul.f32 %v6815_v51, %v6807_v34  ;;  %6818 = vpow2.f32 %v4879_v40 }
 0x6c9   : > { %v5082_v11 = vadd.f32 1.0, %v5050_v28  ;;  %6820 = vrcp.f32 %v4918_v33  ;;  %v4796_v3 = vand.u32 2147483647, %v9940_v12  ;;  %v4717_v38 = vpop.permute.xlu0 %4716  ;;  %vm4988_vm1 = vcmp.ge.f32.partialorder %v9940_v12, 0.0  ;;  %v6920_v12 = vld [vmem:[%s7202_s24 + $0xd8] sm:$0xff] }
 0x6ca   : > { %v5043_v55 = vsel %vm4979_vm6, %v6815_v51, %v5011_v16  ;;  %v9945_v1 = vmul.f32 %v4717_v38, %v9718_v53 }
 0x6cb   : > { %v5114_v26 = vmul.f32 %v6914_v41, %v5082_v11  ;;  %v5075_v44 = vadd.f32 1.0, %v5043_v55  ;;  %v4828_v48 = vsub.f32 0.0, %v4796_v3 }
 0x6cc   : > { %v4798_v2 = vand.u32 2147483647, %v9945_v1  ;;  %vm4990_vm10 = vcmp.ge.f32.partialorder %v9945_v1, 0.0 }
 0x6cd   : > { %v6817_v59 = vpop.eup %6816  ;;  %5146 = vst.msk [vmem:[%s9744_s17 + $0xb8] sm:$0xff] %vm512_vm0, %v5114_v26  ;;  %v5107_v4 = vmul.f32 %v6915_v50, %v5075_v44  ;;  %v4885_v60 = vmul.f32 1.442695, %v4828_v48  ;;  %v6921_v26 = vld [vmem:[%s7202_s24 + $0xe0] sm:$0xff] }
 0x6ce   : > { %v6819_v15 = vpop.eup %6818  ;;  %v5021_v20 = vmul.f32 %v6817_v59, %v6809_v61  ;;  %v4830_v31 = vsub.f32 0.0, %v4798_v2  ;;  %v4722_v54 = vpop.permute.xlu1 %4721 }
 0x6cf   : > { %v6821_v36 = vpop.eup %6820  ;;  %5139 = vst.msk [vmem:[%s9744_s17 + $0x80] sm:$0xff] %vm512_vm0, %v5107_v4  ;;  %v4921_v52 = vadd.f32 1.0, %v6819_v15  ;;  %6822 = vpow2.f32 %v4885_v60  ;;  %v9956_v47 = vmul.f32 %v4722_v54, %v9718_v53  ;;  %v6922_v60 = vld [vmem:[%s7202_s24 + $0xf8] sm:$0xff] }
 0x6d0   : > { %v5053_v45 = vsel %vm4989_vm7, %v6817_v59, %v5021_v20  ;;  %v5014_v58 = vmul.f32 %v6821_v36, %v6813_v13  ;;  %v4889_v49 = vmul.f32 1.442695, %v4830_v31 }
 0x6d1   : > { %v5085_v18 = vadd.f32 1.0, %v5053_v45  ;;  %6824 = vrcp.f32 %v4921_v52  ;;  %v4799_v37 = vand.u32 2147483647, %v9956_v47  ;;  %vm4991_vm11 = vcmp.ge.f32.partialorder %v9956_v47, 0.0 }
 0x6d2   : > { %v5046_v57 = vsel %vm4982_vm8, %v6821_v36, %v5014_v58  ;;  %6826 = vpow2.f32 %v4889_v49 }
 0x6d3   : > { %v5117_v56 = vmul.f32 %v6916_v17, %v5085_v18  ;;  %v5078_v6 = vadd.f32 1.0, %v5046_v57  ;;  %v4831_v30 = vsub.f32 0.0, %v4799_v37 }
 0x6d5   : > { %v6823_v32 = vpop.eup %6822  ;;  %5149 = vst.msk [vmem:[%s9744_s17 + $0xd0] sm:$0xff] %vm512_vm0, %v5117_v56  ;;  %v5110_v22 = vmul.f32 %v6917_v14, %v5078_v6  ;;  %v4891_v19 = vmul.f32 1.442695, %v4831_v30  ;;  %v6923_v6 = vld [vmem:[%s7202_s24 + $0xe8] sm:$0xff] }
 0x6d6   : > { %v4924_v35 = vadd.f32 1.0, %v6823_v32  ;;  %v4737_v25 = vpop.permute.xlu1 %4736 }
 0x6d7   : > { %v6825_v42 = vpop.eup %6824  ;;  %5142 = vst.msk [vmem:[%s9744_s17 + $0x98] sm:$0xff] %vm512_vm0, %v5110_v22  ;;  %6828 = vpow2.f32 %v4891_v19  ;;  %v4770_v24 = vmul.f32 %v4737_v25, %v9718_v53 }
 0x6d8   : > { %v6827_v7 = vpop.eup %6826  ;;  %v5017_v34 = vmul.f32 %v6825_v42, %v6819_v15  ;;  %6830 = vrcp.f32 %v4924_v35 }
 0x6d9   : > { %v4926_v23 = vadd.f32 1.0, %v6827_v7  ;;  %v4802_v0 = vand.u32 2147483647, %v4770_v24  ;;  %vm4994_vm12 = vcmp.ge.f32.partialorder %v4770_v24, 0.0 }
 0x6da   : > { %v5049_v43 = vsel %vm4985_vm9, %v6825_v42, %v5017_v34  ;;  %v6924_v42 = vld [vmem:[%s7202_s24 + $0xf0] sm:$0xff] }
 0x6db   : > { %v5081_v8 = vadd.f32 1.0, %v5049_v43  ;;  %6832 = vrcp.f32 %v4926_v23  ;;  %v4834_v21 = vsub.f32 0.0, %v4802_v0 }
 0x6dd   : > { %v6829_v29 = vpop.eup %6828  ;;  %v5113_v62 = vmul.f32 %v6918_v5, %v5081_v8  ;;  %v4897_v27 = vmul.f32 1.442695, %v4834_v21 }
 0x6de   : > { %v6831_v61 = vpop.eup %6830  ;;  %v4927_v9 = vadd.f32 1.0, %v6829_v29 }
 0x6df   : > { %5145 = vst.msk [vmem:[%s9744_s17 + $0xb0] sm:$0xff] %vm512_vm0, %v5113_v62  ;;  %v5020_v39 = vmul.f32 %v6831_v61, %v6823_v32  ;;  %6834 = vpow2.f32 %v4897_v27 }
 0x6e0   : > { %6836 = vrcp.f32 %v4927_v9 }
 0x6e1   : > { %v6833_v46 = vpop.eup %6832  ;;  %v5052_v40 = vsel %vm4988_vm1, %v6831_v61, %v5020_v39 }
 0x6e2   : > { %v5084_v13 = vadd.f32 1.0, %v5052_v40  ;;  %v5022_v10 = vmul.f32 %v6833_v46, %v6827_v7 }
 0x6e4   : > { %v5116_v51 = vmul.f32 %v6919_v63, %v5084_v13  ;;  %v5054_v33 = vsel %vm4990_vm10, %v6833_v46, %v5022_v10 }
 0x6e5   : > { %v6835_v28 = vpop.eup %6834  ;;  %v5086_v16 = vadd.f32 1.0, %v5054_v33 }
 0x6e6   : > { %v6837_v11 = vpop.eup %6836  ;;  %5148 = vst.msk [vmem:[%s9744_s17 + $0xc8] sm:$0xff] %vm512_vm0, %v5116_v51  ;;  %v4930_v3 = vadd.f32 1.0, %v6835_v28 }
 0x6e7   : > { %v5118_v38 = vmul.f32 %v6920_v12, %v5086_v16  ;;  %v5023_v55 = vmul.f32 %v6837_v11, %v6829_v29 }
 0x6e8   : > { %6838 = vrcp.f32 %v4930_v3 }
 0x6e9   : > { %5150 = vst.msk [vmem:[%s9744_s17 + $0xd8] sm:$0xff] %vm512_vm0, %v5118_v38  ;;  %v5055_v1 = vsel %vm4991_vm11, %v6837_v11, %v5023_v55 }
 0x6ea   : > { %v5087_v41 = vadd.f32 1.0, %v5055_v1 }
 0x6ec   : > { %v5119_v44 = vmul.f32 %v6921_v26, %v5087_v41 }
 0x6ee   : > { %v6839_v48 = vpop.eup %6838  ;;  %5151 = vst.msk [vmem:[%s9744_s17 + $0xe0] sm:$0xff] %vm512_vm0, %v5119_v44 }
 0x6ef   : > { %v5026_v2 = vmul.f32 %v6839_v48, %v6835_v28 }
 0x6f1   : > { %v5058_v59 = vsel %vm4994_vm12, %v6839_v48, %v5026_v2 }
 0x6f2   : > { %v5090_v50 = vadd.f32 1.0, %v5058_v59 }
 0x6f3   : > { %v4727_v4 = vpop.permute.xlu2 %4726 }
 0x6f4   : > { %v5122_v15 = vmul.f32 %v6922_v60, %v5090_v50  ;;  %v4768_v20 = vmul.f32 %v4727_v4, %v9718_v53 }
 0x6f6   : > { %5154 = vst.msk [vmem:[%s9744_s17 + $0xf8] sm:$0xff] %vm512_vm0, %v5122_v15  ;;  %v4800_v31 = vand.u32 2147483647, %v4768_v20  ;;  %vm4992_vm13 = vcmp.ge.f32.partialorder %v4768_v20, 0.0 }
 0x6f8   : > { %v4832_v54 = vsub.f32 0.0, %v4800_v31 }
 0x6fa   : > { %v4893_v36 = vmul.f32 1.442695, %v4832_v54 }
 0x6fc   : > { %6840 = vpow2.f32 %v4893_v36 }
 0x702   : > { %v6841_v52 = vpop.eup %6840 }
 0x703   : > { %v4928_v47 = vadd.f32 1.0, %v6841_v52 }
 0x705   : > { %6842 = vrcp.f32 %v4928_v47 }
 0x70a   : > { %v4732_v45 = vpop.permute.xlu0 %4731 }
 0x70b   : > { %v6843_v58 = vpop.eup %6842  ;;  %v4769_v49 = vmul.f32 %v4732_v45, %v9718_v53 }
 0x70c   : > { %v5024_v18 = vmul.f32 %v6843_v58, %v6841_v52 }
 0x70d   : > { %v4801_v37 = vand.u32 2147483647, %v4769_v49  ;;  %vm4993_vm14 = vcmp.ge.f32.partialorder %v4769_v49, 0.0 }
 0x70e   : > { %v5056_v57 = vsel %vm4992_vm13, %v6843_v58, %v5024_v18 }
 0x70f   : > { %v5088_v17 = vadd.f32 1.0, %v5056_v57  ;;  %v4833_v56 = vsub.f32 0.0, %v4801_v37 }
 0x711   : > { %v5120_v30 = vmul.f32 %v6923_v6, %v5088_v17  ;;  %v4895_v32 = vmul.f32 1.442695, %v4833_v56 }
 0x713   : > { %5152 = vst.msk [vmem:[%s9744_s17 + $0xe8] sm:$0xff] %vm512_vm0, %v5120_v30  ;;  %6844 = vpow2.f32 %v4895_v32 }
 0x719   : > { %v6845_v14 = vpop.eup %6844 }
 0x71a   : > { %v4929_v22 = vadd.f32 1.0, %v6845_v14 }
 0x71c   : > { %6846 = vrcp.f32 %v4929_v22 }
 0x722   : > { %v6847_v53 = vpop.eup %6846 }
 0x723   : > { %v5025_v19 = vmul.f32 %v6847_v53, %v6845_v14 }
 0x725   : > { %v5057_v35 = vsel %vm4993_vm14, %v6847_v53, %v5025_v19 }
 0x726   : > { %v5089_v25 = vadd.f32 1.0, %v5057_v35 }
 0x728   : > { %v5121_v24 = vmul.f32 %v6924_v42, %v5089_v25 }
 0x72a   : > { %5153 = vst.msk [vmem:[%s9744_s17 + $0xf0] sm:$0xff] %vm512_vm0, %v5121_v24 }
 0x72b   : > { %6982 = shalt.err (!%p6979_p4)
}
 0x72c   : > { %s7036_s14 = smov 128  }
 0x72d   : > { %5382 = dma.vmem_to_hbm [thread:$0]  (%p7160_p11), %s5169_s20, 4096, %s5171_s26, %s5156_s23, %s7036_s14, %s7036_s14, %s7027_s22  }
 0x72e PF: > { %s10217_s24 = sld [smem:[#allocation10_spill]]  ;;  %p10219_p7 = scmp.ge.s32.totalorder %s7021_s30, 2 }
 0x730   : > { %p5389_p5 = pnand %p10219_p7, %p7164_p12 }
 0x732   : > { %p5390_p8 = pneg %p5389_p5 }
 0x734   : > { %s5185_s19 = sand.u32 1, %s10217_s24  }
 0x735   : > { %s5186_s15 = scalar_lea.sflag [#allocation6], %s5185_s19 }
 0x736   : > { %7004 = dma.done.wait (%p5390_p8), %s5186_s15, 4096  }
 0x737   : > { %7006 = vsyncadd (%p5390_p8), %s5186_s15, 4294963200  ;;  %s10220_s30 = sld [smem:[#allocation12_spill]]  ;;  %s10223_s27 = smov %s7013_s28 }
 0x738   : > { %s10221_s12 = sld [smem:[#allocation11_spill]] }
 0x739   : > { %s10222_s29 = sld [smem:[#allocation13_spill]] }
 0x73d   : > { %p28_p10 = scmp.ge.s32.totalorder %s10220_s30, 4  }
 0x73e   : > { %s10224_s28 = smov %s10221_s12 }
 0x73f   :  { %30 = sbr.rel (!%p28_p10) target bundleno = 8 (0x8), region = 120 }
 0x744   :  { %5192 = vsyncpa [#allocation5], 1 }
 0x745   :  { %5194 = vsyncpa [#allocation5 + $0x1], 1 }
 0x746   :  { %5195 = vsyncpa [#allocation6], 1 }
 0x747   :  { %5197 = vsyncpa [#allocation6 + $0x1], 1 }

</bundles_post_ra>
